<compile_context>
chip_gen: v7x
topology: tpu7x:2x2x1
jax: 0.10.0
libtpu: 0.0.40
codegen_flags: <defaults>
</compile_context>

<pallas_src>
import functools
import inspect
import math

import jax
import jax.numpy as jnp
import numpy as np
from jax.experimental import pallas as pl
from jax.experimental.pallas import tpu as pltpu

_HAS_BUFFERED = hasattr(pl, "Buffered")
_FORI_HAS_UNROLL = "unroll" in inspect.signature(jax.lax.fori_loop).parameters

_HALO = 8  # sublane-aligned conv history rows kept in the persistent buffer


def _round_up(x, m):
    return ((x + m - 1) // m) * m


def _softplus(x):
    # matches torch.nn.functional.softplus (threshold=20)
    return jnp.where(x > 20.0, x, jnp.log1p(jnp.exp(jnp.minimum(x, 20.0))))


def _silu(x):
    return x * jax.nn.sigmoid(x)


def _mamba_block_kernel(hs_ref, res_ref, norm_w_ref, in_wx_ref, in_wz_ref,
                        conv_w_ref, conv_b_ref, xw_fused_ref, dtw_ref, dtb_ref,
                        A_ref, Dskip_ref, out_w_ref,
                        out_ref, resid_ref,
                        h_ref, xbuf_ref, delta_sc, u_sc, bc_sc, y_sc,
                        *, TL, d_inner, d_state, d_conv, dt_pad, st_pad,
                        eps, SUB):
    c = pl.program_id(1)

    # ---- reset carried state (scan state h + conv history) at sequence start
    @pl.when(c == 0)
    def _():
        h_ref[...] = jnp.zeros_like(h_ref)
        xbuf_ref[0:_HALO, :] = jnp.zeros((_HALO, d_inner), jnp.float32)

    # ---- fused add + RMSNorm (prenorm; residual kept in fp32) ----
    resid = hs_ref[0].astype(jnp.float32) + res_ref[0].astype(jnp.float32)
    resid_ref[0] = resid.astype(resid_ref.dtype)
    var = jnp.mean(resid * resid, axis=-1, keepdims=True)
    xn = resid * jax.lax.rsqrt(var + eps) * norm_w_ref[...]
    # xn is (TL, D) and stays live across the scan; the z half of in_proj is
    # deferred until after the scan (review: shrink the scan's live set).
    xn_mm = xn.astype(in_wx_ref.dtype)

    # ---- in_proj (x half only, f32 accumulation) ----
    x = jnp.dot(xn_mm, in_wx_ref[...], preferred_element_type=jnp.float32)

    # ---- depthwise causal conv1d on a persistent (HALO + TL) buffer ----
    xbuf_ref[_HALO:_HALO + TL, :] = x                      # 8-aligned store
    acc = jnp.zeros((TL, d_inner), jnp.float32) + conv_b_ref[...]
    for k in range(d_conv):
        off = _HALO - (d_conv - 1) + k                     # static sublane offset
        acc = acc + xbuf_ref[off:off + TL, :] * conv_w_ref[k:k + 1, :]
    # carry the last HALO stream elements to the front for the next chunk
    xbuf_ref[0:_HALO, :] = xbuf_ref[TL:TL + _HALO, :]
    u = _silu(acc)                                         # (TL, d_inner) f32
    u_sc[...] = u                                          # needed in scan + D-skip
    u_mm = u.astype(xw_fused_ref.dtype)

    # ---- fused x_proj: one matmul, dt/B/C on 128-lane-aligned segments ----
    x_dbl = jnp.dot(u_mm, xw_fused_ref[...], preferred_element_type=jnp.float32)
    bc_sc[...] = x_dbl[:, dt_pad:]                         # lane-dense B|C store

    # ---- dt_proj (zero-padded K, f32) + softplus(delta + delta_bias) ----
    delta = jnp.dot(x_dbl[:, :dt_pad], dtw_ref[...],
                    preferred_element_type=jnp.float32) + dtb_ref[...]
    delta_sc[...] = _softplus(delta)                       # (TL, d_inner) f32

    # ---- selective scan over SUB-row sub-blocks; h is the only carry ----
    A = A_ref[...]                                         # (d_state, d_inner)
    nsub = TL // SUB

    def scan_body(sub, h):
        l0 = pl.multiple_of(sub * SUB, SUB)
        d_sub = delta_sc[pl.ds(l0, SUB), :]                # (SUB, d_inner)
        du_sub = d_sub * u_sc[pl.ds(l0, SUB), :]           # delta * u (no du_sc)
        b_sub_t = jnp.transpose(bc_sc[pl.ds(l0, SUB), 0:d_state])             # (d_state, SUB)
        c_sub_t = jnp.transpose(bc_sc[pl.ds(l0, SUB), st_pad:st_pad + d_state])
        # one batched exp per sub-block keeps the EUP FIFO full (review)
        dA = jnp.exp(A[None, :, :] * d_sub[:, None, :])    # (SUB, d_state, d_inner)
        rows = []
        for k in range(SUB):                               # static unroll
            h = dA[k] * h + b_sub_t[:, k:k + 1] * du_sub[k:k + 1, :]
            rows.append(jnp.sum(h * c_sub_t[:, k:k + 1], axis=0, keepdims=True))
        y_sc[pl.ds(l0, SUB), :] = jnp.concatenate(rows, axis=0)   # aligned store
        return h

    if _FORI_HAS_UNROLL and nsub > 1:
        h = jax.lax.fori_loop(0, nsub, scan_body, h_ref[...], unroll=2)
    else:
        h = jax.lax.fori_loop(0, nsub, scan_body, h_ref[...])
    h_ref[...] = h                                         # carry to next chunk

    # ---- deferred z half of in_proj, D skip, SiLU(z) gate, out_proj ----
    z = jnp.dot(xn_mm, in_wz_ref[...], preferred_element_type=jnp.float32)
    y = y_sc[...] + u_sc[...] * Dskip_ref[...]
    y = y * _silu(z)
    out = jnp.dot(y.astype(out_w_ref.dtype), out_w_ref[...],
                  preferred_element_type=jnp.float32)
    out_ref[0] = out.astype(out_ref.dtype)


def _weight_spec(arr, single_buffer):
    nd = arr.ndim
    imap = lambda b, c, _nd=nd: (0,) * _nd
    if single_buffer and _HAS_BUFFERED:
        try:
            # Constant index_map -> one buffer is enough; halves weight VMEM.
            return pl.BlockSpec(arr.shape, imap, pipeline_mode=pl.Buffered(1))
        except Exception:
            pass
    return pl.BlockSpec(arr.shape, imap)


def _pick_chunk_and_vmem(L, D, d_inner, d_state, st_pad, weight_bytes,
                         requested_chunk, requested_vmem):
    """VMEM-aware sequence-chunk selection + vmem_limit_bytes (review items)."""
    try:
        cap = int(pltpu.get_tpu_info().vmem_capacity_bytes)
    except Exception:
        cap = 128 * 1024 * 1024            # assume v5e/v6e-class if unknown

    def estimate(chunk):
        f32 = 4
        scratch = (3 * chunk * d_inner                 # delta, u, y
                   + 2 * chunk * st_pad                # fused B|C
                   + (_HALO + chunk) * d_inner         # conv history buffer
                   + d_state * d_inner) * f32          # carried scan state
        seq = 4 * 2 * chunk * D * f32                  # hs/res/out/resid, 2 bufs
        temps = (5 * chunk * d_inner                   # x, conv acc, x_dbl, z, gated y
                 + _HALO * d_state * d_inner) * f32    # batched dA block
        # be conservative: assume weights are double-buffered even though we
        # request Buffered(1) single-buffering when available.
        return scratch + seq + temps + 2 * weight_bytes

    if requested_chunk is not None:
        chunk = requested_chunk
    else:
        budget = int(0.85 * min(cap, 100 * 1024 * 1024))
        chunk = None
        for cand in (1024, 512, 256, 128, 64, 32, 16, 8):
            if L % cand == 0 and estimate(cand) <= budget:
                chunk = cand
                break
        if chunk is None:
            # nothing fits the conservative budget -> pick the smallest
            # standard divisor and rely on the raised vmem_limit below.
            chunk = next((c for c in (8, 16, 32, 64, 128, 256, 512, 1024)
                          if L % c == 0), L)

    if requested_vmem is not None:
        vmem_limit = int(requested_vmem)
    else:
        vmem_limit = int(min(cap, max(int(0.75 * cap),
                                      int(1.25 * estimate(chunk)))))
    return chunk, vmem_limit


def mamba_block_forward(hidden_states, residual, params, *, eps=1e-5,
                        chunk=None, sub_block=8,
                        matmul_dtype=jnp.float32,   # use jnp.bfloat16 on real HW
                        out_dtype=jnp.float32,
                        vmem_limit_bytes=None,
                        single_buffer_weights=True):
    B, L, D = hidden_states.shape
    d_inner, d_state = params["A"].shape
    d_conv = params["conv_w"].shape[1]
    dt_rank = params["dt_proj_w"].shape[1]
    assert d_conv - 1 <= _HALO, "conv kernel longer than carried halo"

    if residual is None:
        residual = jnp.zeros_like(hidden_states)

    mm = matmul_dtype
    dt_pad = _round_up(max(dt_rank, 1), 128)
    st_pad = _round_up(d_state, 128)

    # ---- pre-split / pre-pack weights (all lane-dense / 128-aligned) ----
    norm_w = params["norm_w"][None, :].astype(jnp.float32)            # (1, D)
    in_wx = params["in_proj_w"][:d_inner, :].T.astype(mm)             # (D, d_inner)
    in_wz = params["in_proj_w"][d_inner:, :].T.astype(mm)             # (D, d_inner)
    conv_w_t = params["conv_w"].T.astype(jnp.float32)                 # (d_conv, d_inner)
    conv_b = params["conv_b"][None, :].astype(jnp.float32)            # (1, d_inner)
    xw = params["x_proj_w"]                                           # (dt_rank+2*d_state, d_inner)
    xw_fused = jnp.zeros((d_inner, dt_pad + 2 * st_pad), jnp.float32)
    xw_fused = xw_fused.at[:, :dt_rank].set(xw[:dt_rank, :].T)
    xw_fused = xw_fused.at[:, dt_pad:dt_pad + d_state].set(
        xw[dt_rank:dt_rank + d_state, :].T)
    xw_fused = xw_fused.at[:, dt_pad + st_pad:dt_pad + st_pad + d_state].set(
        xw[dt_rank + d_state:, :].T)
    xw_fused = xw_fused.astype(mm)                                    # (d_inner, dt_pad+2*st_pad)
    dtw = jnp.zeros((dt_pad, d_inner), jnp.float32)                   # zero-padded K, kept f32
    dtw = dtw.at[:dt_rank, :].set(params["dt_proj_w"].T.astype(jnp.float32))
    dtb = params["dt_proj_b"][None, :].astype(jnp.float32)            # (1, d_inner)
    A_t = params["A"].T.astype(jnp.float32)                           # (d_state, d_inner)
    Dskip = params["D"][None, :].astype(jnp.float32)                  # (1, d_inner)
    out_w = params["out_proj_w"].T.astype(mm)                         # (d_inner, D)

    weights = [norm_w, in_wx, in_wz, conv_w_t, conv_b, xw_fused, dtw, dtb,
               A_t, Dskip, out_w]
    weight_bytes = sum(int(w.size) * w.dtype.itemsize for w in weights)

    chunk, vmem_limit = _pick_chunk_and_vmem(
        L, D, d_inner, d_state, st_pad, weight_bytes, chunk, vmem_limit_bytes)
    assert L % chunk == 0, "seqlen must be divisible by the sequence chunk"
    SUB = sub_block if chunk % sub_block == 0 else (8 if chunk % 8 == 0 else chunk)
    NC = L // chunk

    seq_spec = pl.BlockSpec((1, chunk, D), lambda b, c: (b, c, 0))

    scratch = [
        pltpu.VMEM((d_state, d_inner), jnp.float32),        # h (carried)
        pltpu.VMEM((_HALO + chunk, d_inner), jnp.float32),  # conv buffer (halo carried)
        pltpu.VMEM((chunk, d_inner), jnp.float32),          # delta
        pltpu.VMEM((chunk, d_inner), jnp.float32),          # u (conv + SiLU)
        pltpu.VMEM((chunk, 2 * st_pad), jnp.float32),       # fused B|C (lane-dense)
        pltpu.VMEM((chunk, d_inner), jnp.float32),          # y
    ]

    kernel = functools.partial(
        _mamba_block_kernel, TL=chunk, d_inner=d_inner, d_state=d_state,
        d_conv=d_conv, dt_pad=dt_pad, st_pad=st_pad, eps=eps, SUB=SUB)

    flops = 2 * B * L * (D * 2 * d_inner
                         + d_inner * (dt_pad + 2 * st_pad)
                         + dt_pad * d_inner
                         + d_inner * D
                         + d_conv * d_inner)
    flops += 7 * B * L * d_state * d_inner
    transcendentals = B * L * d_inner * (d_state + 4)
    bytes_accessed = (2 * B * L * D * 4
                      + B * L * D * (jnp.dtype(out_dtype).itemsize + 4)
                      + weight_bytes)
    cost = pl.CostEstimate(flops=int(flops),
                           transcendentals=int(transcendentals),
                           bytes_accessed=int(bytes_accessed))

    cp = pltpu.CompilerParams(dimension_semantics=("parallel", "arbitrary"),
                              vmem_limit_bytes=int(vmem_limit))

    def _call(use_single_buffer):
        in_specs = [seq_spec, seq_spec] + [
            _weight_spec(w, use_single_buffer) for w in weights]
        return pl.pallas_call(
            kernel,
            out_shape=(jax.ShapeDtypeStruct((B, L, D), out_dtype),
                       jax.ShapeDtypeStruct((B, L, D), jnp.float32)),
            grid_spec=pltpu.PrefetchScalarGridSpec(
                num_scalar_prefetch=0,
                grid=(B, NC),
                in_specs=in_specs,
                out_specs=[seq_spec, seq_spec],
                scratch_shapes=scratch,
            ),
            compiler_params=cp,
            cost_estimate=cost,
        )(hidden_states, residual, *weights)

    if single_buffer_weights and _HAS_BUFFERED:
        try:
            return _call(True)
        except Exception:
            # pipeline_mode=pl.Buffered(1) not supported by this jax version /
            # backend — fall back to the default double-buffered pipeline.
            return _call(False)
    return _call(False)


def init_params(key, d_model, d_state=16, d_conv=4, expand=2,
                dt_min=0.001, dt_max=0.1, dt_init_floor=1e-4):
    """Deterministic parameter init mirroring Mamba.__init__ shapes."""
    d_inner = int(expand * d_model)
    dt_rank = math.ceil(d_model / 16)
    ks = jax.random.split(key, 8)

    def uni(k, shape, bound):
        return jax.random.uniform(k, shape, jnp.float32, -bound, bound)

    in_proj_w = uni(ks[0], (2 * d_inner, d_model), 1.0 / math.sqrt(d_model))
    conv_w = uni(ks[1], (d_inner, d_conv), 1.0 / math.sqrt(d_conv))
    conv_b = uni(ks[2], (d_inner,), 1.0 / math.sqrt(d_conv))
    x_proj_w = uni(ks[3], (dt_rank + 2 * d_state, d_inner), 1.0 / math.sqrt(d_inner))
    dt_init_std = dt_rank ** -0.5
    dt_proj_w = uni(ks[4], (d_inner, dt_rank), dt_init_std)
    dt = jnp.exp(jax.random.uniform(ks[5], (d_inner,), jnp.float32)
                 * (math.log(dt_max) - math.log(dt_min)) + math.log(dt_min))
    dt = jnp.maximum(dt, dt_init_floor)
    dt_proj_b = dt + jnp.log(-jnp.expm1(-dt))              # inverse softplus of dt
    A = jnp.tile(jnp.arange(1, d_state + 1, dtype=jnp.float32)[None, :],
                 (d_inner, 1))
    A_neg = -A                                             # == -exp(A_log)
    D_param = jnp.ones((d_inner,), jnp.float32)
    out_proj_w = uni(ks[6], (d_model, d_inner), 1.0 / math.sqrt(d_inner))
    norm_w = jnp.ones((d_model,), jnp.float32)             # RMSNorm weight (no bias)
    return dict(norm_w=norm_w, in_proj_w=in_proj_w, conv_w=conv_w,
                conv_b=conv_b, x_proj_w=x_proj_w, dt_proj_w=dt_proj_w,
                dt_proj_b=dt_proj_b, A=A_neg, D=D_param,
                out_proj_w=out_proj_w)


def ref_mamba_block(hidden, residual, p, eps=1e-5, matmul_dtype=jnp.float32):
    """Pure-JAX reference of MambaBlock.forward (same matmul dtype policy)."""
    if residual is None:
        residual = jnp.zeros_like(hidden)
    mm = matmul_dtype
    resid = (hidden + residual).astype(jnp.float32)
    var = jnp.mean(resid * resid, axis=-1, keepdims=True)
    xn = resid * jax.lax.rsqrt(var + eps) * p["norm_w"]
    xz = jnp.einsum("bld,ed->ble", xn.astype(mm), p["in_proj_w"].astype(mm),
                    preferred_element_type=jnp.float32)
    d_inner, d_state = p["A"].shape
    x, z = xz[..., :d_inner], xz[..., d_inner:]
    d_conv = p["conv_w"].shape[1]
    B_, L, _ = x.shape
    xp = jnp.pad(x, ((0, 0), (d_conv - 1, 0), (0, 0)))
    conv = jnp.zeros_like(x) + p["conv_b"][None, None, :]
    for k in range(d_conv):
        conv = conv + xp[:, k:k + L, :] * p["conv_w"][:, k][None, None, :]
    u = _silu(conv)
    x_dbl = jnp.einsum("bld,ed->ble", u.astype(mm), p["x_proj_w"].astype(mm),
                       preferred_element_type=jnp.float32)
    dt_rank = p["dt_proj_w"].shape[1]
    dt_low = x_dbl[..., :dt_rank]
    Bm = x_dbl[..., dt_rank:dt_rank + d_state]
    Cm = x_dbl[..., dt_rank + d_state:]
    delta = _softplus(jnp.einsum("blr,dr->bld", dt_low, p["dt_proj_w"],
                                 preferred_element_type=jnp.float32)
                      + p["dt_proj_b"])
    A = p["A"]
    h = jnp.zeros((B_, d_inner, d_state), jnp.float32)
    ys = []
    for l in range(L):
        dA = jnp.exp(delta[:, l, :, None] * A[None])
        dBu = (delta[:, l, :] * u[:, l, :])[:, :, None] * Bm[:, l, None, :]
        h = dA * h + dBu
        ys.append(jnp.sum(h * Cm[:, l, None, :], axis=-1))
    y = jnp.stack(ys, axis=1)
    y = y + u * p["D"]
    y = y * _silu(z)
    out = jnp.einsum("bld,ed->ble", y.astype(mm), p["out_proj_w"].astype(mm),
                     preferred_element_type=jnp.float32)
    return out, resid


if __name__ == "__main__":
    B, L, d_model = 2, 16, 32
    key = jax.random.PRNGKey(0)
    kp, kx, kr = jax.random.split(key, 3)
    params = init_params(kp, d_model)
    hidden = jax.random.normal(kx, (B, L, d_model), jnp.float32)
    residual = jax.random.normal(kr, (B, L, d_model), jnp.float32)

    # chunk=8 -> 2 sequence chunks per batch element, exercising the carried
    # scan state and conv halo across chunk boundaries.
    out, resid = mamba_block_forward(hidden, residual, params, chunk=8)
    out = jax.block_until_ready(out)
    resid = jax.block_until_ready(resid)

    ref_out, ref_resid = ref_mamba_block(hidden, residual, params)
    np.testing.assert_allclose(np.asarray(resid), np.asarray(ref_resid),
                               atol=1e-5, rtol=1e-5)
    np.testing.assert_allclose(np.asarray(out), np.asarray(ref_out),
                               atol=2e-3, rtol=2e-3)
    print("KERNEL_OK")
</pallas_src>

<mosaic_0001>
module attributes {stable_mosaic.version = 11 : i64} {
  func.func @_mamba_block_kernel(%arg0: i32, %arg1: i32, %arg2: memref<1x8x32xf32, #tpu.memory_space<vmem>>, %arg3: memref<1x8x32xf32, #tpu.memory_space<vmem>>, %arg4: memref<1x32xf32, #tpu.memory_space<vmem>>, %arg5: memref<32x64xf32, #tpu.memory_space<vmem>>, %arg6: memref<32x64xf32, #tpu.memory_space<vmem>>, %arg7: memref<4x64xf32, #tpu.memory_space<vmem>>, %arg8: memref<1x64xf32, #tpu.memory_space<vmem>>, %arg9: memref<64x384xf32, #tpu.memory_space<vmem>>, %arg10: memref<128x64xf32, #tpu.memory_space<vmem>>, %arg11: memref<1x64xf32, #tpu.memory_space<vmem>>, %arg12: memref<16x64xf32, #tpu.memory_space<vmem>>, %arg13: memref<1x64xf32, #tpu.memory_space<vmem>>, %arg14: memref<64x32xf32, #tpu.memory_space<vmem>>, %arg15: memref<1x8x32xf32, #tpu.memory_space<vmem>>, %arg16: memref<1x8x32xf32, #tpu.memory_space<vmem>>, %arg17: memref<16x64xf32, #tpu.memory_space<vmem>>, %arg18: memref<16x64xf32, #tpu.memory_space<vmem>>, %arg19: memref<8x64xf32, #tpu.memory_space<vmem>>, %arg20: memref<8x64xf32, #tpu.memory_space<vmem>>, %arg21: memref<8x256xf32, #tpu.memory_space<vmem>>, %arg22: memref<8x64xf32, #tpu.memory_space<vmem>>) attributes {dimension_semantics = [#tpu.dimension_semantics<parallel>, #tpu.dimension_semantics<arbitrary>], iteration_bounds = array<i64: 2, 2>, scalar_prefetch = 0 : i64, scratch_operands = 6 : i64, tpu.core_type = #tpu.core_type<tc>, window_params = [{transform_indices = @transform_0, window_bounds = array<i64: 1, 8, 32>}, {transform_indices = @transform_1, window_bounds = array<i64: 1, 8, 32>}, {pipeline_mode = #tpu.pipeline_mode<synchronous>, transform_indices = @transform_2, window_bounds = array<i64: 1, 32>}, {pipeline_mode = #tpu.pipeline_mode<synchronous>, transform_indices = @transform_3, window_bounds = array<i64: 32, 64>}, {pipeline_mode = #tpu.pipeline_mode<synchronous>, transform_indices = @transform_4, window_bounds = array<i64: 32, 64>}, {pipeline_mode = #tpu.pipeline_mode<synchronous>, transform_indices = @transform_5, window_bounds = array<i64: 4, 64>}, {pipeline_mode = #tpu.pipeline_mode<synchronous>, transform_indices = @transform_6, window_bounds = array<i64: 1, 64>}, {pipeline_mode = #tpu.pipeline_mode<synchronous>, transform_indices = @transform_7, window_bounds = array<i64: 64, 384>}, {pipeline_mode = #tpu.pipeline_mode<synchronous>, transform_indices = @transform_8, window_bounds = array<i64: 128, 64>}, {pipeline_mode = #tpu.pipeline_mode<synchronous>, transform_indices = @transform_9, window_bounds = array<i64: 1, 64>}, {pipeline_mode = #tpu.pipeline_mode<synchronous>, transform_indices = @transform_10, window_bounds = array<i64: 16, 64>}, {pipeline_mode = #tpu.pipeline_mode<synchronous>, transform_indices = @transform_11, window_bounds = array<i64: 1, 64>}, {pipeline_mode = #tpu.pipeline_mode<synchronous>, transform_indices = @transform_12, window_bounds = array<i64: 64, 32>}, {transform_indices = @transform_13, window_bounds = array<i64: 1, 8, 32>}, {transform_indices = @transform_14, window_bounds = array<i64: 1, 8, 32>}]} {
    %c0_i32 = arith.constant 0 : i32
    %0 = arith.cmpi eq, %arg1, %c0_i32 : i32
    %1 = arith.extui %0 : i1 to i32
    %c0_i32_0 = arith.constant 0 : i32
    %2 = arith.cmpi ne, %1, %c0_i32_0 : i32
    scf.if %2 {
      %cst_86 = arith.constant 0.000000e+00 : f32
      %235 = vector.broadcast %cst_86 : f32 to vector<16x64xf32>
      %c0_87 = arith.constant 0 : index
      %c0_88 = arith.constant 0 : index
      %236 = vector.load %arg17[%c0_87, %c0_88] : memref<16x64xf32, #tpu.memory_space<vmem>>, vector<16x64xf32>
      tpu.vector_store %arg17[%c0_87, %c0_88], %235 {strides = array<i32>} : memref<16x64xf32, #tpu.memory_space<vmem>>, vector<16x64xf32>,
      %cst_89 = arith.constant 0.000000e+00 : f32
      %237 = vector.broadcast %cst_89 : f32 to vector<8x64xf32>
      %c0_90 = arith.constant 0 : index
      %c0_91 = arith.constant 0 : index
      %238 = vector.load %arg18[%c0_90, %c0_91] : memref<16x64xf32, #tpu.memory_space<vmem>>, vector<8x64xf32>
      tpu.vector_store %arg18[%c0_90, %c0_91], %237 {strides = array<i32>} : memref<16x64xf32, #tpu.memory_space<vmem>>, vector<8x64xf32>,
    } else {
    }
    %c0 = arith.constant 0 : index
    %c0_1 = arith.constant 0 : index
    %c0_2 = arith.constant 0 : index
    %3 = vector.load %arg2[%c0, %c0_1, %c0_2] : memref<1x8x32xf32, #tpu.memory_space<vmem>>, vector<1x8x32xf32>
    %4 = vector.shape_cast %3 : vector<1x8x32xf32> to vector<8x32xf32>
    %c0_3 = arith.constant 0 : index
    %c0_4 = arith.constant 0 : index
    %c0_5 = arith.constant 0 : index
    %5 = vector.load %arg3[%c0_3, %c0_4, %c0_5] : memref<1x8x32xf32, #tpu.memory_space<vmem>>, vector<1x8x32xf32>
    %6 = vector.shape_cast %5 : vector<1x8x32xf32> to vector<8x32xf32>
    %7 = arith.addf %4, %6 : vector<8x32xf32>
    %c0_6 = arith.constant 0 : index
    %c0_7 = arith.constant 0 : index
    %c0_8 = arith.constant 0 : index
    %8 = vector.load %arg16[%c0_6, %c0_7, %c0_8] : memref<1x8x32xf32, #tpu.memory_space<vmem>>, vector<1x8x32xf32>
    %9 = vector.shape_cast %8 : vector<1x8x32xf32> to vector<8x32xf32>
    %10 = vector.shape_cast %7 : vector<8x32xf32> to vector<1x8x32xf32>
    tpu.vector_store %arg16[%c0_6, %c0_7, %c0_8], %10 {strides = array<i32>} : memref<1x8x32xf32, #tpu.memory_space<vmem>>, vector<1x8x32xf32>,
    %11 = arith.mulf %7, %7 : vector<8x32xf32>
    %cst = arith.constant dense<0.000000e+00> : vector<8xf32>
    %12 = vector.multi_reduction <add>, %11, %cst [1] : vector<8x32xf32> to vector<8xf32>
    %13 = vector.shape_cast %12 : vector<8xf32> to vector<8x1xf32>
    %cst_9 = arith.constant 3.200000e+01 : f32
    %14 = vector.broadcast %cst_9 : f32 to vector<8x1xf32>
    %15 = arith.divf %13, %14 : vector<8x1xf32>
    %cst_10 = arith.constant 9.99999974E-6 : f32
    %16 = vector.broadcast %cst_10 : f32 to vector<8x1xf32>
    %17 = arith.addf %15, %16 : vector<8x1xf32>
    %18 = math.rsqrt %17 : vector<8x1xf32>
    %19 = vector.broadcast %18 : vector<8x1xf32> to vector<8x32xf32>
    %20 = arith.mulf %7, %19 : vector<8x32xf32>
    %c0_11 = arith.constant 0 : index
    %c0_12 = arith.constant 0 : index
    %21 = vector.load %arg4[%c0_11, %c0_12] : memref<1x32xf32, #tpu.memory_space<vmem>>, vector<1x32xf32>
    %22 = vector.broadcast %21 : vector<1x32xf32> to vector<8x32xf32>
    %23 = arith.mulf %20, %22 : vector<8x32xf32>
    %c0_13 = arith.constant 0 : index
    %c0_14 = arith.constant 0 : index
    %24 = vector.load %arg5[%c0_13, %c0_14] : memref<32x64xf32, #tpu.memory_space<vmem>>, vector<32x64xf32>
    %cst_15 = arith.constant dense<0.000000e+00> : vector<8x64xf32>
    %25 = tpu.matmul %23, %24, %cst_15 {dimension_numbers = #tpu.dot_dimension_numbers<[1], [0], [0], [1], [0, 0, 1, 1], [], []>} : vector<8x32xf32>, vector<32x64xf32>, vector<8x64xf32> -> vector<8x64xf32>
    %c8 = arith.constant 8 : index
    %c0_16 = arith.constant 0 : index
    %26 = vector.load %arg18[%c8, %c0_16] : memref<16x64xf32, #tpu.memory_space<vmem>>, vector<8x64xf32>
    tpu.vector_store %arg18[%c8, %c0_16], %25 {strides = array<i32>} : memref<16x64xf32, #tpu.memory_space<vmem>>, vector<8x64xf32>,
    %cst_17 = arith.constant 0.000000e+00 : f32
    %27 = vector.broadcast %cst_17 : f32 to vector<8x64xf32>
    %c0_18 = arith.constant 0 : index
    %c0_19 = arith.constant 0 : index
    %28 = vector.load %arg8[%c0_18, %c0_19] : memref<1x64xf32, #tpu.memory_space<vmem>>, vector<1x64xf32>
    %29 = vector.broadcast %28 : vector<1x64xf32> to vector<8x64xf32>
    %30 = arith.addf %27, %29 : vector<8x64xf32>
    %c5 = arith.constant 5 : index
    %c0_20 = arith.constant 0 : index
    %31 = vector.load %arg18[%c5, %c0_20] : memref<16x64xf32, #tpu.memory_space<vmem>>, vector<8x64xf32>
    %c0_21 = arith.constant 0 : index
    %c0_22 = arith.constant 0 : index
    %32 = vector.load %arg7[%c0_21, %c0_22] : memref<4x64xf32, #tpu.memory_space<vmem>>, vector<1x64xf32>
    %33 = vector.broadcast %32 : vector<1x64xf32> to vector<8x64xf32>
    %34 = arith.mulf %31, %33 : vector<8x64xf32>
    %35 = arith.addf %30, %34 : vector<8x64xf32>
    %c6 = arith.constant 6 : index
    %c0_23 = arith.constant 0 : index
    %36 = vector.load %arg18[%c6, %c0_23] : memref<16x64xf32, #tpu.memory_space<vmem>>, vector<8x64xf32>
    %c1 = arith.constant 1 : index
    %c0_24 = arith.constant 0 : index
    %37 = vector.load %arg7[%c1, %c0_24] : memref<4x64xf32, #tpu.memory_space<vmem>>, vector<1x64xf32>
    %38 = vector.broadcast %37 : vector<1x64xf32> to vector<8x64xf32>
    %39 = arith.mulf %36, %38 : vector<8x64xf32>
    %40 = arith.addf %35, %39 : vector<8x64xf32>
    %c7 = arith.constant 7 : index
    %c0_25 = arith.constant 0 : index
    %41 = vector.load %arg18[%c7, %c0_25] : memref<16x64xf32, #tpu.memory_space<vmem>>, vector<8x64xf32>
    %c2 = arith.constant 2 : index
    %c0_26 = arith.constant 0 : index
    %42 = vector.load %arg7[%c2, %c0_26] : memref<4x64xf32, #tpu.memory_space<vmem>>, vector<1x64xf32>
    %43 = vector.broadcast %42 : vector<1x64xf32> to vector<8x64xf32>
    %44 = arith.mulf %41, %43 : vector<8x64xf32>
    %45 = arith.addf %40, %44 : vector<8x64xf32>
    %c8_27 = arith.constant 8 : index
    %c0_28 = arith.constant 0 : index
    %46 = vector.load %arg18[%c8_27, %c0_28] : memref<16x64xf32, #tpu.memory_space<vmem>>, vector<8x64xf32>
    %c3 = arith.constant 3 : index
    %c0_29 = arith.constant 0 : index
    %47 = vector.load %arg7[%c3, %c0_29] : memref<4x64xf32, #tpu.memory_space<vmem>>, vector<1x64xf32>
    %48 = vector.broadcast %47 : vector<1x64xf32> to vector<8x64xf32>
    %49 = arith.mulf %46, %48 : vector<8x64xf32>
    %50 = arith.addf %45, %49 : vector<8x64xf32>
    %c8_30 = arith.constant 8 : index
    %c0_31 = arith.constant 0 : index
    %51 = vector.load %arg18[%c8_30, %c0_31] : memref<16x64xf32, #tpu.memory_space<vmem>>, vector<8x64xf32>
    %c0_32 = arith.constant 0 : index
    %c0_33 = arith.constant 0 : index
    %52 = vector.load %arg18[%c0_32, %c0_33] : memref<16x64xf32, #tpu.memory_space<vmem>>, vector<8x64xf32>
    tpu.vector_store %arg18[%c0_32, %c0_33], %51 {strides = array<i32>} : memref<16x64xf32, #tpu.memory_space<vmem>>, vector<8x64xf32>,
    %53 = arith.negf %50 : vector<8x64xf32>
    %54 = math.exp %53 : vector<8x64xf32>
    %cst_34 = arith.constant 1.000000e+00 : f32
    %55 = vector.broadcast %cst_34 : f32 to vector<8x64xf32>
    %56 = arith.addf %55, %54 : vector<8x64xf32>
    %57 = arith.divf %55, %56 : vector<8x64xf32>
    %58 = arith.mulf %50, %57 : vector<8x64xf32>
    %c0_35 = arith.constant 0 : index
    %c0_36 = arith.constant 0 : index
    %59 = vector.load %arg20[%c0_35, %c0_36] : memref<8x64xf32, #tpu.memory_space<vmem>>, vector<8x64xf32>
    tpu.vector_store %arg20[%c0_35, %c0_36], %58 {strides = array<i32>} : memref<8x64xf32, #tpu.memory_space<vmem>>, vector<8x64xf32>,
    %c0_37 = arith.constant 0 : index
    %c0_38 = arith.constant 0 : index
    %60 = vector.load %arg9[%c0_37, %c0_38] : memref<64x384xf32, #tpu.memory_space<vmem>>, vector<64x384xf32>
    %cst_39 = arith.constant dense<0.000000e+00> : vector<8x384xf32>
    %61 = tpu.matmul %58, %60, %cst_39 {dimension_numbers = #tpu.dot_dimension_numbers<[1], [0], [0], [1], [0, 0, 1, 1], [], []>} : vector<8x64xf32>, vector<64x384xf32>, vector<8x384xf32> -> vector<8x384xf32>
    %62 = vector.extract_strided_slice %61 {offsets = [0, 128], sizes = [8, 256], strides = [1, 1]} : vector<8x384xf32> to vector<8x256xf32>
    %c0_40 = arith.constant 0 : index
    %c0_41 = arith.constant 0 : index
    %63 = vector.load %arg21[%c0_40, %c0_41] : memref<8x256xf32, #tpu.memory_space<vmem>>, vector<8x256xf32>
    tpu.vector_store %arg21[%c0_40, %c0_41], %62 {strides = array<i32>} : memref<8x256xf32, #tpu.memory_space<vmem>>, vector<8x256xf32>,
    %64 = vector.extract_strided_slice %61 {offsets = [0, 0], sizes = [8, 128], strides = [1, 1]} : vector<8x384xf32> to vector<8x128xf32>
    %c0_42 = arith.constant 0 : index
    %c0_43 = arith.constant 0 : index
    %65 = vector.load %arg10[%c0_42, %c0_43] : memref<128x64xf32, #tpu.memory_space<vmem>>, vector<128x64xf32>
    %cst_44 = arith.constant dense<0.000000e+00> : vector<8x64xf32>
    %66 = tpu.matmul %64, %65, %cst_44 {dimension_numbers = #tpu.dot_dimension_numbers<[1], [0], [0], [1], [0, 0, 1, 1], [], []>} : vector<8x128xf32>, vector<128x64xf32>, vector<8x64xf32> -> vector<8x64xf32>
    %c0_45 = arith.constant 0 : index
    %c0_46 = arith.constant 0 : index
    %67 = vector.load %arg11[%c0_45, %c0_46] : memref<1x64xf32, #tpu.memory_space<vmem>>, vector<1x64xf32>
    %68 = vector.broadcast %67 : vector<1x64xf32> to vector<8x64xf32>
    %69 = arith.addf %66, %68 : vector<8x64xf32>
    %cst_47 = arith.constant 2.000000e+01 : f32
    %70 = vector.broadcast %cst_47 : f32 to vector<8x64xf32>
    %71 = arith.cmpf ogt, %69, %70 : vector<8x64xf32>
    %cst_48 = arith.constant 2.000000e+01 : f32
    %72 = vector.broadcast %cst_48 : f32 to vector<8x64xf32>
    %73 = arith.minimumf %69, %72 : vector<8x64xf32>
    %74 = math.exp %73 : vector<8x64xf32>
    %75 = math.log1p %74 : vector<8x64xf32>
    %76 = arith.select %71, %69, %75 : vector<8x64xi1>, vector<8x64xf32>
    %c0_49 = arith.constant 0 : index
    %c0_50 = arith.constant 0 : index
    %77 = vector.load %arg19[%c0_49, %c0_50] : memref<8x64xf32, #tpu.memory_space<vmem>>, vector<8x64xf32>
    tpu.vector_store %arg19[%c0_49, %c0_50], %76 {strides = array<i32>} : memref<8x64xf32, #tpu.memory_space<vmem>>, vector<8x64xf32>,
    %c0_51 = arith.constant 0 : index
    %c0_52 = arith.constant 0 : index
    %78 = vector.load %arg12[%c0_51, %c0_52] : memref<16x64xf32, #tpu.memory_space<vmem>>, vector<16x64xf32>
    %c0_53 = arith.constant 0 : index
    %c0_54 = arith.constant 0 : index
    %79 = vector.load %arg17[%c0_53, %c0_54] : memref<16x64xf32, #tpu.memory_space<vmem>>, vector<16x64xf32>
    %c0_i32_55 = arith.constant 0 : i32
    %c8_i32 = arith.constant 8 : i32
    %80 = arith.muli %c0_i32_55, %c8_i32 : i32
    %81 = tpu.assume_multiple %80, 8 : i32
    %82 = arith.index_cast %81 : i32 to index
    %c0_56 = arith.constant 0 : index
    %83 = vector.load %arg19[%82, %c0_56] : memref<8x64xf32, #tpu.memory_space<vmem>>, vector<8x64xf32>
    %84 = arith.index_cast %81 : i32 to index
    %c0_57 = arith.constant 0 : index
    %85 = vector.load %arg20[%84, %c0_57] : memref<8x64xf32, #tpu.memory_space<vmem>>, vector<8x64xf32>
    %86 = arith.mulf %83, %85 : vector<8x64xf32>
    %87 = arith.index_cast %81 : i32 to index
    %c0_58 = arith.constant 0 : index
    %88 = vector.load %arg21[%87, %c0_58] : memref<8x256xf32, #tpu.memory_space<vmem>>, vector<8x16xf32>
    %89 = tpu.transpose %88, [1, 0] : vector<8x16xf32> -> vector<16x8xf32>
    %90 = arith.index_cast %81 : i32 to index
    %c128 = arith.constant 128 : index
    %91 = vector.load %arg21[%90, %c128] : memref<8x256xf32, #tpu.memory_space<vmem>>, vector<8x16xf32>
    %92 = tpu.transpose %91, [1, 0] : vector<8x16xf32> -> vector<16x8xf32>
    %93 = vector.shape_cast %78 : vector<16x64xf32> to vector<1x16x64xf32>
    %94 = vector.shape_cast %83 : vector<8x64xf32> to vector<8x1x64xf32>
    %95 = vector.broadcast %93 : vector<1x16x64xf32> to vector<8x16x64xf32>
    %96 = vector.broadcast %94 : vector<8x1x64xf32> to vector<8x16x64xf32>
    %97 = arith.mulf %95, %96 : vector<8x16x64xf32>
    %98 = math.exp %97 : vector<8x16x64xf32>
    %99 = vector.extract_strided_slice %98 {offsets = [0, 0, 0], sizes = [1, 16, 64], strides = [1, 1, 1]} : vector<8x16x64xf32> to vector<1x16x64xf32>
    %100 = vector.shape_cast %99 : vector<1x16x64xf32> to vector<16x64xf32>
    %101 = arith.mulf %100, %79 : vector<16x64xf32>
    %102 = vector.extract_strided_slice %89 {offsets = [0, 0], sizes = [16, 1], strides = [1, 1]} : vector<16x8xf32> to vector<16x1xf32>
    %103 = vector.extract_strided_slice %86 {offsets = [0, 0], sizes = [1, 64], strides = [1, 1]} : vector<8x64xf32> to vector<1x64xf32>
    %104 = vector.broadcast %102 : vector<16x1xf32> to vector<16x64xf32>
    %105 = vector.broadcast %103 : vector<1x64xf32> to vector<16x64xf32>
    %106 = arith.mulf %104, %105 : vector<16x64xf32>
    %107 = arith.addf %101, %106 : vector<16x64xf32>
    %108 = vector.extract_strided_slice %92 {offsets = [0, 0], sizes = [16, 1], strides = [1, 1]} : vector<16x8xf32> to vector<16x1xf32>
    %109 = vector.broadcast %108 : vector<16x1xf32> to vector<16x64xf32>
    %110 = arith.mulf %107, %109 : vector<16x64xf32>
    %cst_59 = arith.constant dense<0.000000e+00> : vector<64xf32>
    %111 = vector.multi_reduction <add>, %110, %cst_59 [0] : vector<16x64xf32> to vector<64xf32>
    %112 = vector.shape_cast %111 : vector<64xf32> to vector<1x64xf32>
    %113 = vector.extract_strided_slice %98 {offsets = [1, 0, 0], sizes = [1, 16, 64], strides = [1, 1, 1]} : vector<8x16x64xf32> to vector<1x16x64xf32>
    %114 = vector.shape_cast %113 : vector<1x16x64xf32> to vector<16x64xf32>
    %115 = arith.mulf %114, %107 : vector<16x64xf32>
    %116 = vector.extract_strided_slice %89 {offsets = [0, 1], sizes = [16, 1], strides = [1, 1]} : vector<16x8xf32> to vector<16x1xf32>
    %117 = vector.extract_strided_slice %86 {offsets = [1, 0], sizes = [1, 64], strides = [1, 1]} : vector<8x64xf32> to vector<1x64xf32>
    %118 = vector.broadcast %116 : vector<16x1xf32> to vector<16x64xf32>
    %119 = vector.broadcast %117 : vector<1x64xf32> to vector<16x64xf32>
    %120 = arith.mulf %118, %119 : vector<16x64xf32>
    %121 = arith.addf %115, %120 : vector<16x64xf32>
    %122 = vector.extract_strided_slice %92 {offsets = [0, 1], sizes = [16, 1], strides = [1, 1]} : vector<16x8xf32> to vector<16x1xf32>
    %123 = vector.broadcast %122 : vector<16x1xf32> to vector<16x64xf32>
    %124 = arith.mulf %121, %123 : vector<16x64xf32>
    %cst_60 = arith.constant dense<0.000000e+00> : vector<64xf32>
    %125 = vector.multi_reduction <add>, %124, %cst_60 [0] : vector<16x64xf32> to vector<64xf32>
    %126 = vector.shape_cast %125 : vector<64xf32> to vector<1x64xf32>
    %127 = vector.extract_strided_slice %98 {offsets = [2, 0, 0], sizes = [1, 16, 64], strides = [1, 1, 1]} : vector<8x16x64xf32> to vector<1x16x64xf32>
    %128 = vector.shape_cast %127 : vector<1x16x64xf32> to vector<16x64xf32>
    %129 = arith.mulf %128, %121 : vector<16x64xf32>
    %130 = vector.extract_strided_slice %89 {offsets = [0, 2], sizes = [16, 1], strides = [1, 1]} : vector<16x8xf32> to vector<16x1xf32>
    %131 = vector.extract_strided_slice %86 {offsets = [2, 0], sizes = [1, 64], strides = [1, 1]} : vector<8x64xf32> to vector<1x64xf32>
    %132 = vector.broadcast %130 : vector<16x1xf32> to vector<16x64xf32>
    %133 = vector.broadcast %131 : vector<1x64xf32> to vector<16x64xf32>
    %134 = arith.mulf %132, %133 : vector<16x64xf32>
    %135 = arith.addf %129, %134 : vector<16x64xf32>
    %136 = vector.extract_strided_slice %92 {offsets = [0, 2], sizes = [16, 1], strides = [1, 1]} : vector<16x8xf32> to vector<16x1xf32>
    %137 = vector.broadcast %136 : vector<16x1xf32> to vector<16x64xf32>
    %138 = arith.mulf %135, %137 : vector<16x64xf32>
    %cst_61 = arith.constant dense<0.000000e+00> : vector<64xf32>
    %139 = vector.multi_reduction <add>, %138, %cst_61 [0] : vector<16x64xf32> to vector<64xf32>
    %140 = vector.shape_cast %139 : vector<64xf32> to vector<1x64xf32>
    %141 = vector.extract_strided_slice %98 {offsets = [3, 0, 0], sizes = [1, 16, 64], strides = [1, 1, 1]} : vector<8x16x64xf32> to vector<1x16x64xf32>
    %142 = vector.shape_cast %141 : vector<1x16x64xf32> to vector<16x64xf32>
    %143 = arith.mulf %142, %135 : vector<16x64xf32>
    %144 = vector.extract_strided_slice %89 {offsets = [0, 3], sizes = [16, 1], strides = [1, 1]} : vector<16x8xf32> to vector<16x1xf32>
    %145 = vector.extract_strided_slice %86 {offsets = [3, 0], sizes = [1, 64], strides = [1, 1]} : vector<8x64xf32> to vector<1x64xf32>
    %146 = vector.broadcast %144 : vector<16x1xf32> to vector<16x64xf32>
    %147 = vector.broadcast %145 : vector<1x64xf32> to vector<16x64xf32>
    %148 = arith.mulf %146, %147 : vector<16x64xf32>
    %149 = arith.addf %143, %148 : vector<16x64xf32>
    %150 = vector.extract_strided_slice %92 {offsets = [0, 3], sizes = [16, 1], strides = [1, 1]} : vector<16x8xf32> to vector<16x1xf32>
    %151 = vector.broadcast %150 : vector<16x1xf32> to vector<16x64xf32>
    %152 = arith.mulf %149, %151 : vector<16x64xf32>
    %cst_62 = arith.constant dense<0.000000e+00> : vector<64xf32>
    %153 = vector.multi_reduction <add>, %152, %cst_62 [0] : vector<16x64xf32> to vector<64xf32>
    %154 = vector.shape_cast %153 : vector<64xf32> to vector<1x64xf32>
    %155 = vector.extract_strided_slice %98 {offsets = [4, 0, 0], sizes = [1, 16, 64], strides = [1, 1, 1]} : vector<8x16x64xf32> to vector<1x16x64xf32>
    %156 = vector.shape_cast %155 : vector<1x16x64xf32> to vector<16x64xf32>
    %157 = arith.mulf %156, %149 : vector<16x64xf32>
    %158 = vector.extract_strided_slice %89 {offsets = [0, 4], sizes = [16, 1], strides = [1, 1]} : vector<16x8xf32> to vector<16x1xf32>
    %159 = vector.extract_strided_slice %86 {offsets = [4, 0], sizes = [1, 64], strides = [1, 1]} : vector<8x64xf32> to vector<1x64xf32>
    %160 = vector.broadcast %158 : vector<16x1xf32> to vector<16x64xf32>
    %161 = vector.broadcast %159 : vector<1x64xf32> to vector<16x64xf32>
    %162 = arith.mulf %160, %161 : vector<16x64xf32>
    %163 = arith.addf %157, %162 : vector<16x64xf32>
    %164 = vector.extract_strided_slice %92 {offsets = [0, 4], sizes = [16, 1], strides = [1, 1]} : vector<16x8xf32> to vector<16x1xf32>
    %165 = vector.broadcast %164 : vector<16x1xf32> to vector<16x64xf32>
    %166 = arith.mulf %163, %165 : vector<16x64xf32>
    %cst_63 = arith.constant dense<0.000000e+00> : vector<64xf32>
    %167 = vector.multi_reduction <add>, %166, %cst_63 [0] : vector<16x64xf32> to vector<64xf32>
    %168 = vector.shape_cast %167 : vector<64xf32> to vector<1x64xf32>
    %169 = vector.extract_strided_slice %98 {offsets = [5, 0, 0], sizes = [1, 16, 64], strides = [1, 1, 1]} : vector<8x16x64xf32> to vector<1x16x64xf32>
    %170 = vector.shape_cast %169 : vector<1x16x64xf32> to vector<16x64xf32>
    %171 = arith.mulf %170, %163 : vector<16x64xf32>
    %172 = vector.extract_strided_slice %89 {offsets = [0, 5], sizes = [16, 1], strides = [1, 1]} : vector<16x8xf32> to vector<16x1xf32>
    %173 = vector.extract_strided_slice %86 {offsets = [5, 0], sizes = [1, 64], strides = [1, 1]} : vector<8x64xf32> to vector<1x64xf32>
    %174 = vector.broadcast %172 : vector<16x1xf32> to vector<16x64xf32>
    %175 = vector.broadcast %173 : vector<1x64xf32> to vector<16x64xf32>
    %176 = arith.mulf %174, %175 : vector<16x64xf32>
    %177 = arith.addf %171, %176 : vector<16x64xf32>
    %178 = vector.extract_strided_slice %92 {offsets = [0, 5], sizes = [16, 1], strides = [1, 1]} : vector<16x8xf32> to vector<16x1xf32>
    %179 = vector.broadcast %178 : vector<16x1xf32> to vector<16x64xf32>
    %180 = arith.mulf %177, %179 : vector<16x64xf32>
    %cst_64 = arith.constant dense<0.000000e+00> : vector<64xf32>
    %181 = vector.multi_reduction <add>, %180, %cst_64 [0] : vector<16x64xf32> to vector<64xf32>
    %182 = vector.shape_cast %181 : vector<64xf32> to vector<1x64xf32>
    %183 = vector.extract_strided_slice %98 {offsets = [6, 0, 0], sizes = [1, 16, 64], strides = [1, 1, 1]} : vector<8x16x64xf32> to vector<1x16x64xf32>
    %184 = vector.shape_cast %183 : vector<1x16x64xf32> to vector<16x64xf32>
    %185 = arith.mulf %184, %177 : vector<16x64xf32>
    %186 = vector.extract_strided_slice %89 {offsets = [0, 6], sizes = [16, 1], strides = [1, 1]} : vector<16x8xf32> to vector<16x1xf32>
    %187 = vector.extract_strided_slice %86 {offsets = [6, 0], sizes = [1, 64], strides = [1, 1]} : vector<8x64xf32> to vector<1x64xf32>
    %188 = vector.broadcast %186 : vector<16x1xf32> to vector<16x64xf32>
    %189 = vector.broadcast %187 : vector<1x64xf32> to vector<16x64xf32>
    %190 = arith.mulf %188, %189 : vector<16x64xf32>
    %191 = arith.addf %185, %190 : vector<16x64xf32>
    %192 = vector.extract_strided_slice %92 {offsets = [0, 6], sizes = [16, 1], strides = [1, 1]} : vector<16x8xf32> to vector<16x1xf32>
    %193 = vector.broadcast %192 : vector<16x1xf32> to vector<16x64xf32>
    %194 = arith.mulf %191, %193 : vector<16x64xf32>
    %cst_65 = arith.constant dense<0.000000e+00> : vector<64xf32>
    %195 = vector.multi_reduction <add>, %194, %cst_65 [0] : vector<16x64xf32> to vector<64xf32>
    %196 = vector.shape_cast %195 : vector<64xf32> to vector<1x64xf32>
    %197 = vector.extract_strided_slice %98 {offsets = [7, 0, 0], sizes = [1, 16, 64], strides = [1, 1, 1]} : vector<8x16x64xf32> to vector<1x16x64xf32>
    %198 = vector.shape_cast %197 : vector<1x16x64xf32> to vector<16x64xf32>
    %199 = arith.mulf %198, %191 : vector<16x64xf32>
    %200 = vector.extract_strided_slice %89 {offsets = [0, 7], sizes = [16, 1], strides = [1, 1]} : vector<16x8xf32> to vector<16x1xf32>
    %201 = vector.extract_strided_slice %86 {offsets = [7, 0], sizes = [1, 64], strides = [1, 1]} : vector<8x64xf32> to vector<1x64xf32>
    %202 = vector.broadcast %200 : vector<16x1xf32> to vector<16x64xf32>
    %203 = vector.broadcast %201 : vector<1x64xf32> to vector<16x64xf32>
    %204 = arith.mulf %202, %203 : vector<16x64xf32>
    %205 = arith.addf %199, %204 : vector<16x64xf32>
    %206 = vector.extract_strided_slice %92 {offsets = [0, 7], sizes = [16, 1], strides = [1, 1]} : vector<16x8xf32> to vector<16x1xf32>
    %207 = vector.broadcast %206 : vector<16x1xf32> to vector<16x64xf32>
    %208 = arith.mulf %205, %207 : vector<16x64xf32>
    %cst_66 = arith.constant dense<0.000000e+00> : vector<64xf32>
    %209 = vector.multi_reduction <add>, %208, %cst_66 [0] : vector<16x64xf32> to vector<64xf32>
    %210 = vector.shape_cast %209 : vector<64xf32> to vector<1x64xf32>
    %211 = tpu.concatenate %112, %126, %140, %154, %168, %182, %196, %210 in 0 : vector<1x64xf32>, vector<1x64xf32>, vector<1x64xf32>, vector<1x64xf32>, vector<1x64xf32>, vector<1x64xf32>, vector<1x64xf32>, vector<1x64xf32> -> vector<8x64xf32>
    %212 = arith.index_cast %81 : i32 to index
    %c0_67 = arith.constant 0 : index
    %213 = vector.load %arg22[%212, %c0_67] : memref<8x64xf32, #tpu.memory_space<vmem>>, vector<8x64xf32>
    tpu.vector_store %arg22[%212, %c0_67], %211 {strides = array<i32>} : memref<8x64xf32, #tpu.memory_space<vmem>>, vector<8x64xf32>,
    %c1_i32 = arith.constant 1 : i32
    %c0_68 = arith.constant 0 : index
    %c0_69 = arith.constant 0 : index
    %214 = vector.load %arg17[%c0_68, %c0_69] : memref<16x64xf32, #tpu.memory_space<vmem>>, vector<16x64xf32>
    tpu.vector_store %arg17[%c0_68, %c0_69], %205 {strides = array<i32>} : memref<16x64xf32, #tpu.memory_space<vmem>>, vector<16x64xf32>,
    %c0_70 = arith.constant 0 : index
    %c0_71 = arith.constant 0 : index
    %215 = vector.load %arg6[%c0_70, %c0_71] : memref<32x64xf32, #tpu.memory_space<vmem>>, vector<32x64xf32>
    %cst_72 = arith.constant dense<0.000000e+00> : vector<8x64xf32>
    %216 = tpu.matmul %23, %215, %cst_72 {dimension_numbers = #tpu.dot_dimension_numbers<[1], [0], [0], [1], [0, 0, 1, 1], [], []>} : vector<8x32xf32>, vector<32x64xf32>, vector<8x64xf32> -> vector<8x64xf32>
    %c0_73 = arith.constant 0 : index
    %c0_74 = arith.constant 0 : index
    %217 = vector.load %arg22[%c0_73, %c0_74] : memref<8x64xf32, #tpu.memory_space<vmem>>, vector<8x64xf32>
    %c0_75 = arith.constant 0 : index
    %c0_76 = arith.constant 0 : index
    %218 = vector.load %arg20[%c0_75, %c0_76] : memref<8x64xf32, #tpu.memory_space<vmem>>, vector<8x64xf32>
    %c0_77 = arith.constant 0 : index
    %c0_78 = arith.constant 0 : index
    %219 = vector.load %arg13[%c0_77, %c0_78] : memref<1x64xf32, #tpu.memory_space<vmem>>, vector<1x64xf32>
    %220 = vector.broadcast %219 : vector<1x64xf32> to vector<8x64xf32>
    %221 = arith.mulf %218, %220 : vector<8x64xf32>
    %222 = arith.addf %217, %221 : vector<8x64xf32>
    %223 = arith.negf %216 : vector<8x64xf32>
    %224 = math.exp %223 : vector<8x64xf32>
    %cst_79 = arith.constant 1.000000e+00 : f32
    %225 = vector.broadcast %cst_79 : f32 to vector<8x64xf32>
    %226 = arith.addf %225, %224 : vector<8x64xf32>
    %227 = arith.divf %225, %226 : vector<8x64xf32>
    %228 = arith.mulf %216, %227 : vector<8x64xf32>
    %229 = arith.mulf %222, %228 : vector<8x64xf32>
    %c0_80 = arith.constant 0 : index
    %c0_81 = arith.constant 0 : index
    %230 = vector.load %arg14[%c0_80, %c0_81] : memref<64x32xf32, #tpu.memory_space<vmem>>, vector<64x32xf32>
    %cst_82 = arith.constant dense<0.000000e+00> : vector<8x32xf32>
    %231 = tpu.matmul %229, %230, %cst_82 {dimension_numbers = #tpu.dot_dimension_numbers<[1], [0], [0], [1], [0, 0, 1, 1], [], []>} : vector<8x64xf32>, vector<64x32xf32>, vector<8x32xf32> -> vector<8x32xf32>
    %c0_83 = arith.constant 0 : index
    %c0_84 = arith.constant 0 : index
    %c0_85 = arith.constant 0 : index
    %232 = vector.load %arg15[%c0_83, %c0_84, %c0_85] : memref<1x8x32xf32, #tpu.memory_space<vmem>>, vector<1x8x32xf32>
    %233 = vector.shape_cast %232 : vector<1x8x32xf32> to vector<8x32xf32>
    %234 = vector.shape_cast %231 : vector<8x32xf32> to vector<1x8x32xf32>
    tpu.vector_store %arg15[%c0_83, %c0_84, %c0_85], %234 {strides = array<i32>} : memref<1x8x32xf32, #tpu.memory_space<vmem>>, vector<1x8x32xf32>,
    return
  }
  func.func @transform_0(%arg0: i32, %arg1: i32) -> (i32, i32, i32) {
    %c0_i32 = arith.constant 0 : i32
    %c0_i32_0 = arith.constant 0 : i32
    return %arg0, %arg1, %c0_i32 : i32, i32, i32
  }
  func.func @transform_1(%arg0: i32, %arg1: i32) -> (i32, i32, i32) {
    %c0_i32 = arith.constant 0 : i32
    %c0_i32_0 = arith.constant 0 : i32
    return %arg0, %arg1, %c0_i32 : i32, i32, i32
  }
  func.func @transform_2(%arg0: i32, %arg1: i32) -> (i32, i32) {
    %c0_i32 = arith.constant 0 : i32
    %c0_i32_0 = arith.constant 0 : i32
    %c0_i32_1 = arith.constant 0 : i32
    return %c0_i32, %c0_i32_0 : i32, i32
  }
  func.func @transform_3(%arg0: i32, %arg1: i32) -> (i32, i32) {
    %c0_i32 = arith.constant 0 : i32
    %c0_i32_0 = arith.constant 0 : i32
    %c0_i32_1 = arith.constant 0 : i32
    return %c0_i32, %c0_i32_0 : i32, i32
  }
  func.func @transform_4(%arg0: i32, %arg1: i32) -> (i32, i32) {
    %c0_i32 = arith.constant 0 : i32
    %c0_i32_0 = arith.constant 0 : i32
    %c0_i32_1 = arith.constant 0 : i32
    return %c0_i32, %c0_i32_0 : i32, i32
  }
  func.func @transform_5(%arg0: i32, %arg1: i32) -> (i32, i32) {
    %c0_i32 = arith.constant 0 : i32
    %c0_i32_0 = arith.constant 0 : i32
    %c0_i32_1 = arith.constant 0 : i32
    return %c0_i32, %c0_i32_0 : i32, i32
  }
  func.func @transform_6(%arg0: i32, %arg1: i32) -> (i32, i32) {
    %c0_i32 = arith.constant 0 : i32
    %c0_i32_0 = arith.constant 0 : i32
    %c0_i32_1 = arith.constant 0 : i32
    return %c0_i32, %c0_i32_0 : i32, i32
  }
  func.func @transform_7(%arg0: i32, %arg1: i32) -> (i32, i32) {
    %c0_i32 = arith.constant 0 : i32
    %c0_i32_0 = arith.constant 0 : i32
    %c0_i32_1 = arith.constant 0 : i32
    return %c0_i32, %c0_i32_0 : i32, i32
  }
  func.func @transform_8(%arg0: i32, %arg1: i32) -> (i32, i32) {
    %c0_i32 = arith.constant 0 : i32
    %c0_i32_0 = arith.constant 0 : i32
    %c0_i32_1 = arith.constant 0 : i32
    return %c0_i32, %c0_i32_0 : i32, i32
  }
  func.func @transform_9(%arg0: i32, %arg1: i32) -> (i32, i32) {
    %c0_i32 = arith.constant 0 : i32
    %c0_i32_0 = arith.constant 0 : i32
    %c0_i32_1 = arith.constant 0 : i32
    return %c0_i32, %c0_i32_0 : i32, i32
  }
  func.func @transform_10(%arg0: i32, %arg1: i32) -> (i32, i32) {
    %c0_i32 = arith.constant 0 : i32
    %c0_i32_0 = arith.constant 0 : i32
    %c0_i32_1 = arith.constant 0 : i32
    return %c0_i32, %c0_i32_0 : i32, i32
  }
  func.func @transform_11(%arg0: i32, %arg1: i32) -> (i32, i32) {
    %c0_i32 = arith.constant 0 : i32
    %c0_i32_0 = arith.constant 0 : i32
    %c0_i32_1 = arith.constant 0 : i32
    return %c0_i32, %c0_i32_0 : i32, i32
  }
  func.func @transform_12(%arg0: i32, %arg1: i32) -> (i32, i32) {
    %c0_i32 = arith.constant 0 : i32
    %c0_i32_0 = arith.constant 0 : i32
    %c0_i32_1 = arith.constant 0 : i32
    return %c0_i32, %c0_i32_0 : i32, i32
  }
  func.func @transform_13(%arg0: i32, %arg1: i32) -> (i32, i32, i32) {
    %c0_i32 = arith.constant 0 : i32
    %c0_i32_0 = arith.constant 0 : i32
    return %arg0, %arg1, %c0_i32 : i32, i32, i32
  }
  func.func @transform_14(%arg0: i32, %arg1: i32) -> (i32, i32, i32) {
    %c0_i32 = arith.constant 0 : i32
    %c0_i32_0 = arith.constant 0 : i32
    return %arg0, %arg1, %c0_i32 : i32, i32, i32
  }
}

module attributes {stable_mosaic.version = 11 : i64} {
  func.func @_mamba_block_kernel(%arg0: i32, %arg1: i32, %arg2: memref<1x8x32xf32, #tpu.memory_space<vmem>>, %arg3: memref<1x8x32xf32, #tpu.memory_space<vmem>>, %arg4: memref<1x32xf32, #tpu.memory_space<vmem>>, %arg5: memref<32x64xf32, #tpu.memory_space<vmem>>, %arg6: memref<32x64xf32, #tpu.memory_space<vmem>>, %arg7: memref<4x64xf32, #tpu.memory_space<vmem>>, %arg8: memref<1x64xf32, #tpu.memory_space<vmem>>, %arg9: memref<64x384xf32, #tpu.memory_space<vmem>>, %arg10: memref<128x64xf32, #tpu.memory_space<vmem>>, %arg11: memref<1x64xf32, #tpu.memory_space<vmem>>, %arg12: memref<16x64xf32, #tpu.memory_space<vmem>>, %arg13: memref<1x64xf32, #tpu.memory_space<vmem>>, %arg14: memref<64x32xf32, #tpu.memory_space<vmem>>, %arg15: memref<1x8x32xf32, #tpu.memory_space<vmem>>, %arg16: memref<1x8x32xf32, #tpu.memory_space<vmem>>, %arg17: memref<16x64xf32, #tpu.memory_space<vmem>>, %arg18: memref<16x64xf32, #tpu.memory_space<vmem>>, %arg19: memref<8x64xf32, #tpu.memory_space<vmem>>, %arg20: memref<8x64xf32, #tpu.memory_space<vmem>>, %arg21: memref<8x256xf32, #tpu.memory_space<vmem>>, %arg22: memref<8x64xf32, #tpu.memory_space<vmem>>) attributes {dimension_semantics = [#tpu.dimension_semantics<parallel>, #tpu.dimension_semantics<arbitrary>], iteration_bounds = array<i64: 2, 2>, scalar_prefetch = 0 : i64, scratch_operands = 6 : i64, tpu.core_type = #tpu.core_type<tc>, window_params = [{transform_indices = @transform_0, window_bounds = array<i64: 1, 8, 32>}, {transform_indices = @transform_1, window_bounds = array<i64: 1, 8, 32>}, {pipeline_mode = #tpu.pipeline_mode<synchronous>, transform_indices = @transform_2, window_bounds = array<i64: 1, 32>}, {pipeline_mode = #tpu.pipeline_mode<synchronous>, transform_indices = @transform_3, window_bounds = array<i64: 32, 64>}, {pipeline_mode = #tpu.pipeline_mode<synchronous>, transform_indices = @transform_4, window_bounds = array<i64: 32, 64>}, {pipeline_mode = #tpu.pipeline_mode<synchronous>, transform_indices = @transform_5, window_bounds = array<i64: 4, 64>}, {pipeline_mode = #tpu.pipeline_mode<synchronous>, transform_indices = @transform_6, window_bounds = array<i64: 1, 64>}, {pipeline_mode = #tpu.pipeline_mode<synchronous>, transform_indices = @transform_7, window_bounds = array<i64: 64, 384>}, {pipeline_mode = #tpu.pipeline_mode<synchronous>, transform_indices = @transform_8, window_bounds = array<i64: 128, 64>}, {pipeline_mode = #tpu.pipeline_mode<synchronous>, transform_indices = @transform_9, window_bounds = array<i64: 1, 64>}, {pipeline_mode = #tpu.pipeline_mode<synchronous>, transform_indices = @transform_10, window_bounds = array<i64: 16, 64>}, {pipeline_mode = #tpu.pipeline_mode<synchronous>, transform_indices = @transform_11, window_bounds = array<i64: 1, 64>}, {pipeline_mode = #tpu.pipeline_mode<synchronous>, transform_indices = @transform_12, window_bounds = array<i64: 64, 32>}, {transform_indices = @transform_13, window_bounds = array<i64: 1, 8, 32>}, {transform_indices = @transform_14, window_bounds = array<i64: 1, 8, 32>}]} {
    %c0_i32 = arith.constant 0 : i32
    %0 = arith.cmpi eq, %arg1, %c0_i32 : i32
    %1 = arith.extui %0 : i1 to i32
    %c0_i32_0 = arith.constant 0 : i32
    %2 = arith.cmpi ne, %1, %c0_i32_0 : i32
    scf.if %2 {
      %cst_86 = arith.constant 0.000000e+00 : f32
      %235 = vector.broadcast %cst_86 : f32 to vector<16x64xf32>
      %c0_87 = arith.constant 0 : index
      %c0_88 = arith.constant 0 : index
      %236 = vector.load %arg17[%c0_87, %c0_88] : memref<16x64xf32, #tpu.memory_space<vmem>>, vector<16x64xf32>
      tpu.vector_store %arg17[%c0_87, %c0_88], %235 {strides = array<i32>} : memref<16x64xf32, #tpu.memory_space<vmem>>, vector<16x64xf32>,
      %cst_89 = arith.constant 0.000000e+00 : f32
      %237 = vector.broadcast %cst_89 : f32 to vector<8x64xf32>
      %c0_90 = arith.constant 0 : index
      %c0_91 = arith.constant 0 : index
      %238 = vector.load %arg18[%c0_90, %c0_91] : memref<16x64xf32, #tpu.memory_space<vmem>>, vector<8x64xf32>
      tpu.vector_store %arg18[%c0_90, %c0_91], %237 {strides = array<i32>} : memref<16x64xf32, #tpu.memory_space<vmem>>, vector<8x64xf32>,
    } else {
    }
    %c0 = arith.constant 0 : index
    %c0_1 = arith.constant 0 : index
    %c0_2 = arith.constant 0 : index
    %3 = vector.load %arg2[%c0, %c0_1, %c0_2] : memref<1x8x32xf32, #tpu.memory_space<vmem>>, vector<1x8x32xf32>
    %4 = vector.shape_cast %3 : vector<1x8x32xf32> to vector<8x32xf32>
    %c0_3 = arith.constant 0 : index
    %c0_4 = arith.constant 0 : index
    %c0_5 = arith.constant 0 : index
    %5 = vector.load %arg3[%c0_3, %c0_4, %c0_5] : memref<1x8x32xf32, #tpu.memory_space<vmem>>, vector<1x8x32xf32>
    %6 = vector.shape_cast %5 : vector<1x8x32xf32> to vector<8x32xf32>
    %7 = arith.addf %4, %6 : vector<8x32xf32>
    %c0_6 = arith.constant 0 : index
    %c0_7 = arith.constant 0 : index
    %c0_8 = arith.constant 0 : index
    %8 = vector.load %arg16[%c0_6, %c0_7, %c0_8] : memref<1x8x32xf32, #tpu.memory_space<vmem>>, vector<1x8x32xf32>
    %9 = vector.shape_cast %8 : vector<1x8x32xf32> to vector<8x32xf32>
    %10 = vector.shape_cast %7 : vector<8x32xf32> to vector<1x8x32xf32>
    tpu.vector_store %arg16[%c0_6, %c0_7, %c0_8], %10 {strides = array<i32>} : memref<1x8x32xf32, #tpu.memory_space<vmem>>, vector<1x8x32xf32>,
    %11 = arith.mulf %7, %7 : vector<8x32xf32>
    %cst = arith.constant dense<0.000000e+00> : vector<8xf32>
    %12 = vector.multi_reduction <add>, %11, %cst [1] : vector<8x32xf32> to vector<8xf32>
    %13 = vector.shape_cast %12 : vector<8xf32> to vector<8x1xf32>
    %cst_9 = arith.constant 3.200000e+01 : f32
    %14 = vector.broadcast %cst_9 : f32 to vector<8x1xf32>
    %15 = arith.divf %13, %14 : vector<8x1xf32>
    %cst_10 = arith.constant 9.99999974E-6 : f32
    %16 = vector.broadcast %cst_10 : f32 to vector<8x1xf32>
    %17 = arith.addf %15, %16 : vector<8x1xf32>
    %18 = math.rsqrt %17 : vector<8x1xf32>
    %19 = vector.broadcast %18 : vector<8x1xf32> to vector<8x32xf32>
    %20 = arith.mulf %7, %19 : vector<8x32xf32>
    %c0_11 = arith.constant 0 : index
    %c0_12 = arith.constant 0 : index
    %21 = vector.load %arg4[%c0_11, %c0_12] : memref<1x32xf32, #tpu.memory_space<vmem>>, vector<1x32xf32>
    %22 = vector.broadcast %21 : vector<1x32xf32> to vector<8x32xf32>
    %23 = arith.mulf %20, %22 : vector<8x32xf32>
    %c0_13 = arith.constant 0 : index
    %c0_14 = arith.constant 0 : index
    %24 = vector.load %arg5[%c0_13, %c0_14] : memref<32x64xf32, #tpu.memory_space<vmem>>, vector<32x64xf32>
    %cst_15 = arith.constant dense<0.000000e+00> : vector<8x64xf32>
    %25 = tpu.matmul %23, %24, %cst_15 {dimension_numbers = #tpu.dot_dimension_numbers<[1], [0], [0], [1], [0, 0, 1, 1], [], []>} : vector<8x32xf32>, vector<32x64xf32>, vector<8x64xf32> -> vector<8x64xf32>
    %c8 = arith.constant 8 : index
    %c0_16 = arith.constant 0 : index
    %26 = vector.load %arg18[%c8, %c0_16] : memref<16x64xf32, #tpu.memory_space<vmem>>, vector<8x64xf32>
    tpu.vector_store %arg18[%c8, %c0_16], %25 {strides = array<i32>} : memref<16x64xf32, #tpu.memory_space<vmem>>, vector<8x64xf32>,
    %cst_17 = arith.constant 0.000000e+00 : f32
    %27 = vector.broadcast %cst_17 : f32 to vector<8x64xf32>
    %c0_18 = arith.constant 0 : index
    %c0_19 = arith.constant 0 : index
    %28 = vector.load %arg8[%c0_18, %c0_19] : memref<1x64xf32, #tpu.memory_space<vmem>>, vector<1x64xf32>
    %29 = vector.broadcast %28 : vector<1x64xf32> to vector<8x64xf32>
    %30 = arith.addf %27, %29 : vector<8x64xf32>
    %c5 = arith.constant 5 : index
    %c0_20 = arith.constant 0 : index
    %31 = vector.load %arg18[%c5, %c0_20] : memref<16x64xf32, #tpu.memory_space<vmem>>, vector<8x64xf32>
    %c0_21 = arith.constant 0 : index
    %c0_22 = arith.constant 0 : index
    %32 = vector.load %arg7[%c0_21, %c0_22] : memref<4x64xf32, #tpu.memory_space<vmem>>, vector<1x64xf32>
    %33 = vector.broadcast %32 : vector<1x64xf32> to vector<8x64xf32>
    %34 = arith.mulf %31, %33 : vector<8x64xf32>
    %35 = arith.addf %30, %34 : vector<8x64xf32>
    %c6 = arith.constant 6 : index
    %c0_23 = arith.constant 0 : index
    %36 = vector.load %arg18[%c6, %c0_23] : memref<16x64xf32, #tpu.memory_space<vmem>>, vector<8x64xf32>
    %c1 = arith.constant 1 : index
    %c0_24 = arith.constant 0 : index
    %37 = vector.load %arg7[%c1, %c0_24] : memref<4x64xf32, #tpu.memory_space<vmem>>, vector<1x64xf32>
    %38 = vector.broadcast %37 : vector<1x64xf32> to vector<8x64xf32>
    %39 = arith.mulf %36, %38 : vector<8x64xf32>
    %40 = arith.addf %35, %39 : vector<8x64xf32>
    %c7 = arith.constant 7 : index
    %c0_25 = arith.constant 0 : index
    %41 = vector.load %arg18[%c7, %c0_25] : memref<16x64xf32, #tpu.memory_space<vmem>>, vector<8x64xf32>
    %c2 = arith.constant 2 : index
    %c0_26 = arith.constant 0 : index
    %42 = vector.load %arg7[%c2, %c0_26] : memref<4x64xf32, #tpu.memory_space<vmem>>, vector<1x64xf32>
    %43 = vector.broadcast %42 : vector<1x64xf32> to vector<8x64xf32>
    %44 = arith.mulf %41, %43 : vector<8x64xf32>
    %45 = arith.addf %40, %44 : vector<8x64xf32>
    %c8_27 = arith.constant 8 : index
    %c0_28 = arith.constant 0 : index
    %46 = vector.load %arg18[%c8_27, %c0_28] : memref<16x64xf32, #tpu.memory_space<vmem>>, vector<8x64xf32>
    %c3 = arith.constant 3 : index
    %c0_29 = arith.constant 0 : index
    %47 = vector.load %arg7[%c3, %c0_29] : memref<4x64xf32, #tpu.memory_space<vmem>>, vector<1x64xf32>
    %48 = vector.broadcast %47 : vector<1x64xf32> to vector<8x64xf32>
    %49 = arith.mulf %46, %48 : vector<8x64xf32>
    %50 = arith.addf %45, %49 : vector<8x64xf32>
    %c8_30 = arith.constant 8 : index
    %c0_31 = arith.constant 0 : index
    %51 = vector.load %arg18[%c8_30, %c0_31] : memref<16x64xf32, #tpu.memory_space<vmem>>, vector<8x64xf32>
    %c0_32 = arith.constant 0 : index
    %c0_33 = arith.constant 0 : index
    %52 = vector.load %arg18[%c0_32, %c0_33] : memref<16x64xf32, #tpu.memory_space<vmem>>, vector<8x64xf32>
    tpu.vector_store %arg18[%c0_32, %c0_33], %51 {strides = array<i32>} : memref<16x64xf32, #tpu.memory_space<vmem>>, vector<8x64xf32>,
    %53 = arith.negf %50 : vector<8x64xf32>
    %54 = math.exp %53 : vector<8x64xf32>
    %cst_34 = arith.constant 1.000000e+00 : f32
    %55 = vector.broadcast %cst_34 : f32 to vector<8x64xf32>
    %56 = arith.addf %55, %54 : vector<8x64xf32>
    %57 = arith.divf %55, %56 : vector<8x64xf32>
    %58 = arith.mulf %50, %57 : vector<8x64xf32>
    %c0_35 = arith.constant 0 : index
    %c0_36 = arith.constant 0 : index
    %59 = vector.load %arg20[%c0_35, %c0_36] : memref<8x64xf32, #tpu.memory_space<vmem>>, vector<8x64xf32>
    tpu.vector_store %arg20[%c0_35, %c0_36], %58 {strides = array<i32>} : memref<8x64xf32, #tpu.memory_space<vmem>>, vector<8x64xf32>,
    %c0_37 = arith.constant 0 : index
    %c0_38 = arith.constant 0 : index
    %60 = vector.load %arg9[%c0_37, %c0_38] : memref<64x384xf32, #tpu.memory_space<vmem>>, vector<64x384xf32>
    %cst_39 = arith.constant dense<0.000000e+00> : vector<8x384xf32>
    %61 = tpu.matmul %58, %60, %cst_39 {dimension_numbers = #tpu.dot_dimension_numbers<[1], [0], [0], [1], [0, 0, 1, 1], [], []>} : vector<8x64xf32>, vector<64x384xf32>, vector<8x384xf32> -> vector<8x384xf32>
    %62 = vector.extract_strided_slice %61 {offsets = [0, 128], sizes = [8, 256], strides = [1, 1]} : vector<8x384xf32> to vector<8x256xf32>
    %c0_40 = arith.constant 0 : index
    %c0_41 = arith.constant 0 : index
    %63 = vector.load %arg21[%c0_40, %c0_41] : memref<8x256xf32, #tpu.memory_space<vmem>>, vector<8x256xf32>
    tpu.vector_store %arg21[%c0_40, %c0_41], %62 {strides = array<i32>} : memref<8x256xf32, #tpu.memory_space<vmem>>, vector<8x256xf32>,
    %64 = vector.extract_strided_slice %61 {offsets = [0, 0], sizes = [8, 128], strides = [1, 1]} : vector<8x384xf32> to vector<8x128xf32>
    %c0_42 = arith.constant 0 : index
    %c0_43 = arith.constant 0 : index
    %65 = vector.load %arg10[%c0_42, %c0_43] : memref<128x64xf32, #tpu.memory_space<vmem>>, vector<128x64xf32>
    %cst_44 = arith.constant dense<0.000000e+00> : vector<8x64xf32>
    %66 = tpu.matmul %64, %65, %cst_44 {dimension_numbers = #tpu.dot_dimension_numbers<[1], [0], [0], [1], [0, 0, 1, 1], [], []>} : vector<8x128xf32>, vector<128x64xf32>, vector<8x64xf32> -> vector<8x64xf32>
    %c0_45 = arith.constant 0 : index
    %c0_46 = arith.constant 0 : index
    %67 = vector.load %arg11[%c0_45, %c0_46] : memref<1x64xf32, #tpu.memory_space<vmem>>, vector<1x64xf32>
    %68 = vector.broadcast %67 : vector<1x64xf32> to vector<8x64xf32>
    %69 = arith.addf %66, %68 : vector<8x64xf32>
    %cst_47 = arith.constant 2.000000e+01 : f32
    %70 = vector.broadcast %cst_47 : f32 to vector<8x64xf32>
    %71 = arith.cmpf ogt, %69, %70 : vector<8x64xf32>
    %cst_48 = arith.constant 2.000000e+01 : f32
    %72 = vector.broadcast %cst_48 : f32 to vector<8x64xf32>
    %73 = arith.minimumf %69, %72 : vector<8x64xf32>
    %74 = math.exp %73 : vector<8x64xf32>
    %75 = math.log1p %74 : vector<8x64xf32>
    %76 = arith.select %71, %69, %75 : vector<8x64xi1>, vector<8x64xf32>
    %c0_49 = arith.constant 0 : index
    %c0_50 = arith.constant 0 : index
    %77 = vector.load %arg19[%c0_49, %c0_50] : memref<8x64xf32, #tpu.memory_space<vmem>>, vector<8x64xf32>
    tpu.vector_store %arg19[%c0_49, %c0_50], %76 {strides = array<i32>} : memref<8x64xf32, #tpu.memory_space<vmem>>, vector<8x64xf32>,
    %c0_51 = arith.constant 0 : index
    %c0_52 = arith.constant 0 : index
    %78 = vector.load %arg12[%c0_51, %c0_52] : memref<16x64xf32, #tpu.memory_space<vmem>>, vector<16x64xf32>
    %c0_53 = arith.constant 0 : index
    %c0_54 = arith.constant 0 : index
    %79 = vector.load %arg17[%c0_53, %c0_54] : memref<16x64xf32, #tpu.memory_space<vmem>>, vector<16x64xf32>
    %c0_i32_55 = arith.constant 0 : i32
    %c8_i32 = arith.constant 8 : i32
    %80 = arith.muli %c0_i32_55, %c8_i32 : i32
    %81 = tpu.assume_multiple %80, 8 : i32
    %82 = arith.index_cast %81 : i32 to index
    %c0_56 = arith.constant 0 : index
    %83 = vector.load %arg19[%82, %c0_56] : memref<8x64xf32, #tpu.memory_space<vmem>>, vector<8x64xf32>
    %84 = arith.index_cast %81 : i32 to index
    %c0_57 = arith.constant 0 : index
    %85 = vector.load %arg20[%84, %c0_57] : memref<8x64xf32, #tpu.memory_space<vmem>>, vector<8x64xf32>
    %86 = arith.mulf %83, %85 : vector<8x64xf32>
    %87 = arith.index_cast %81 : i32 to index
    %c0_58 = arith.constant 0 : index
    %88 = vector.load %arg21[%87, %c0_58] : memref<8x256xf32, #tpu.memory_space<vmem>>, vector<8x16xf32>
    %89 = tpu.transpose %88, [1, 0] : vector<8x16xf32> -> vector<16x8xf32>
    %90 = arith.index_cast %81 : i32 to index
    %c128 = arith.constant 128 : index
    %91 = vector.load %arg21[%90, %c128] : memref<8x256xf32, #tpu.memory_space<vmem>>, vector<8x16xf32>
    %92 = tpu.transpose %91, [1, 0] : vector<8x16xf32> -> vector<16x8xf32>
    %93 = vector.shape_cast %78 : vector<16x64xf32> to vector<1x16x64xf32>
    %94 = vector.shape_cast %83 : vector<8x64xf32> to vector<8x1x64xf32>
    %95 = vector.broadcast %93 : vector<1x16x64xf32> to vector<8x16x64xf32>
    %96 = vector.broadcast %94 : vector<8x1x64xf32> to vector<8x16x64xf32>
    %97 = arith.mulf %95, %96 : vector<8x16x64xf32>
    %98 = math.exp %97 : vector<8x16x64xf32>
    %99 = vector.extract_strided_slice %98 {offsets = [0, 0, 0], sizes = [1, 16, 64], strides = [1, 1, 1]} : vector<8x16x64xf32> to vector<1x16x64xf32>
    %100 = vector.shape_cast %99 : vector<1x16x64xf32> to vector<16x64xf32>
    %101 = arith.mulf %100, %79 : vector<16x64xf32>
    %102 = vector.extract_strided_slice %89 {offsets = [0, 0], sizes = [16, 1], strides = [1, 1]} : vector<16x8xf32> to vector<16x1xf32>
    %103 = vector.extract_strided_slice %86 {offsets = [0, 0], sizes = [1, 64], strides = [1, 1]} : vector<8x64xf32> to vector<1x64xf32>
    %104 = vector.broadcast %102 : vector<16x1xf32> to vector<16x64xf32>
    %105 = vector.broadcast %103 : vector<1x64xf32> to vector<16x64xf32>
    %106 = arith.mulf %104, %105 : vector<16x64xf32>
    %107 = arith.addf %101, %106 : vector<16x64xf32>
    %108 = vector.extract_strided_slice %92 {offsets = [0, 0], sizes = [16, 1], strides = [1, 1]} : vector<16x8xf32> to vector<16x1xf32>
    %109 = vector.broadcast %108 : vector<16x1xf32> to vector<16x64xf32>
    %110 = arith.mulf %107, %109 : vector<16x64xf32>
    %cst_59 = arith.constant dense<0.000000e+00> : vector<64xf32>
    %111 = vector.multi_reduction <add>, %110, %cst_59 [0] : vector<16x64xf32> to vector<64xf32>
    %112 = vector.shape_cast %111 : vector<64xf32> to vector<1x64xf32>
    %113 = vector.extract_strided_slice %98 {offsets = [1, 0, 0], sizes = [1, 16, 64], strides = [1, 1, 1]} : vector<8x16x64xf32> to vector<1x16x64xf32>
    %114 = vector.shape_cast %113 : vector<1x16x64xf32> to vector<16x64xf32>
    %115 = arith.mulf %114, %107 : vector<16x64xf32>
    %116 = vector.extract_strided_slice %89 {offsets = [0, 1], sizes = [16, 1], strides = [1, 1]} : vector<16x8xf32> to vector<16x1xf32>
    %117 = vector.extract_strided_slice %86 {offsets = [1, 0], sizes = [1, 64], strides = [1, 1]} : vector<8x64xf32> to vector<1x64xf32>
    %118 = vector.broadcast %116 : vector<16x1xf32> to vector<16x64xf32>
    %119 = vector.broadcast %117 : vector<1x64xf32> to vector<16x64xf32>
    %120 = arith.mulf %118, %119 : vector<16x64xf32>
    %121 = arith.addf %115, %120 : vector<16x64xf32>
    %122 = vector.extract_strided_slice %92 {offsets = [0, 1], sizes = [16, 1], strides = [1, 1]} : vector<16x8xf32> to vector<16x1xf32>
    %123 = vector.broadcast %122 : vector<16x1xf32> to vector<16x64xf32>
    %124 = arith.mulf %121, %123 : vector<16x64xf32>
    %cst_60 = arith.constant dense<0.000000e+00> : vector<64xf32>
    %125 = vector.multi_reduction <add>, %124, %cst_60 [0] : vector<16x64xf32> to vector<64xf32>
    %126 = vector.shape_cast %125 : vector<64xf32> to vector<1x64xf32>
    %127 = vector.extract_strided_slice %98 {offsets = [2, 0, 0], sizes = [1, 16, 64], strides = [1, 1, 1]} : vector<8x16x64xf32> to vector<1x16x64xf32>
    %128 = vector.shape_cast %127 : vector<1x16x64xf32> to vector<16x64xf32>
    %129 = arith.mulf %128, %121 : vector<16x64xf32>
    %130 = vector.extract_strided_slice %89 {offsets = [0, 2], sizes = [16, 1], strides = [1, 1]} : vector<16x8xf32> to vector<16x1xf32>
    %131 = vector.extract_strided_slice %86 {offsets = [2, 0], sizes = [1, 64], strides = [1, 1]} : vector<8x64xf32> to vector<1x64xf32>
    %132 = vector.broadcast %130 : vector<16x1xf32> to vector<16x64xf32>
    %133 = vector.broadcast %131 : vector<1x64xf32> to vector<16x64xf32>
    %134 = arith.mulf %132, %133 : vector<16x64xf32>
    %135 = arith.addf %129, %134 : vector<16x64xf32>
    %136 = vector.extract_strided_slice %92 {offsets = [0, 2], sizes = [16, 1], strides = [1, 1]} : vector<16x8xf32> to vector<16x1xf32>
    %137 = vector.broadcast %136 : vector<16x1xf32> to vector<16x64xf32>
    %138 = arith.mulf %135, %137 : vector<16x64xf32>
    %cst_61 = arith.constant dense<0.000000e+00> : vector<64xf32>
    %139 = vector.multi_reduction <add>, %138, %cst_61 [0] : vector<16x64xf32> to vector<64xf32>
    %140 = vector.shape_cast %139 : vector<64xf32> to vector<1x64xf32>
    %141 = vector.extract_strided_slice %98 {offsets = [3, 0, 0], sizes = [1, 16, 64], strides = [1, 1, 1]} : vector<8x16x64xf32> to vector<1x16x64xf32>
    %142 = vector.shape_cast %141 : vector<1x16x64xf32> to vector<16x64xf32>
    %143 = arith.mulf %142, %135 : vector<16x64xf32>
    %144 = vector.extract_strided_slice %89 {offsets = [0, 3], sizes = [16, 1], strides = [1, 1]} : vector<16x8xf32> to vector<16x1xf32>
    %145 = vector.extract_strided_slice %86 {offsets = [3, 0], sizes = [1, 64], strides = [1, 1]} : vector<8x64xf32> to vector<1x64xf32>
    %146 = vector.broadcast %144 : vector<16x1xf32> to vector<16x64xf32>
    %147 = vector.broadcast %145 : vector<1x64xf32> to vector<16x64xf32>
    %148 = arith.mulf %146, %147 : vector<16x64xf32>
    %149 = arith.addf %143, %148 : vector<16x64xf32>
    %150 = vector.extract_strided_slice %92 {offsets = [0, 3], sizes = [16, 1], strides = [1, 1]} : vector<16x8xf32> to vector<16x1xf32>
    %151 = vector.broadcast %150 : vector<16x1xf32> to vector<16x64xf32>
    %152 = arith.mulf %149, %151 : vector<16x64xf32>
    %cst_62 = arith.constant dense<0.000000e+00> : vector<64xf32>
    %153 = vector.multi_reduction <add>, %152, %cst_62 [0] : vector<16x64xf32> to vector<64xf32>
    %154 = vector.shape_cast %153 : vector<64xf32> to vector<1x64xf32>
    %155 = vector.extract_strided_slice %98 {offsets = [4, 0, 0], sizes = [1, 16, 64], strides = [1, 1, 1]} : vector<8x16x64xf32> to vector<1x16x64xf32>
    %156 = vector.shape_cast %155 : vector<1x16x64xf32> to vector<16x64xf32>
    %157 = arith.mulf %156, %149 : vector<16x64xf32>
    %158 = vector.extract_strided_slice %89 {offsets = [0, 4], sizes = [16, 1], strides = [1, 1]} : vector<16x8xf32> to vector<16x1xf32>
    %159 = vector.extract_strided_slice %86 {offsets = [4, 0], sizes = [1, 64], strides = [1, 1]} : vector<8x64xf32> to vector<1x64xf32>
    %160 = vector.broadcast %158 : vector<16x1xf32> to vector<16x64xf32>
    %161 = vector.broadcast %159 : vector<1x64xf32> to vector<16x64xf32>
    %162 = arith.mulf %160, %161 : vector<16x64xf32>
    %163 = arith.addf %157, %162 : vector<16x64xf32>
    %164 = vector.extract_strided_slice %92 {offsets = [0, 4], sizes = [16, 1], strides = [1, 1]} : vector<16x8xf32> to vector<16x1xf32>
    %165 = vector.broadcast %164 : vector<16x1xf32> to vector<16x64xf32>
    %166 = arith.mulf %163, %165 : vector<16x64xf32>
    %cst_63 = arith.constant dense<0.000000e+00> : vector<64xf32>
    %167 = vector.multi_reduction <add>, %166, %cst_63 [0] : vector<16x64xf32> to vector<64xf32>
    %168 = vector.shape_cast %167 : vector<64xf32> to vector<1x64xf32>
    %169 = vector.extract_strided_slice %98 {offsets = [5, 0, 0], sizes = [1, 16, 64], strides = [1, 1, 1]} : vector<8x16x64xf32> to vector<1x16x64xf32>
    %170 = vector.shape_cast %169 : vector<1x16x64xf32> to vector<16x64xf32>
    %171 = arith.mulf %170, %163 : vector<16x64xf32>
    %172 = vector.extract_strided_slice %89 {offsets = [0, 5], sizes = [16, 1], strides = [1, 1]} : vector<16x8xf32> to vector<16x1xf32>
    %173 = vector.extract_strided_slice %86 {offsets = [5, 0], sizes = [1, 64], strides = [1, 1]} : vector<8x64xf32> to vector<1x64xf32>
    %174 = vector.broadcast %172 : vector<16x1xf32> to vector<16x64xf32>
    %175 = vector.broadcast %173 : vector<1x64xf32> to vector<16x64xf32>
    %176 = arith.mulf %174, %175 : vector<16x64xf32>
    %177 = arith.addf %171, %176 : vector<16x64xf32>
    %178 = vector.extract_strided_slice %92 {offsets = [0, 5], sizes = [16, 1], strides = [1, 1]} : vector<16x8xf32> to vector<16x1xf32>
    %179 = vector.broadcast %178 : vector<16x1xf32> to vector<16x64xf32>
    %180 = arith.mulf %177, %179 : vector<16x64xf32>
    %cst_64 = arith.constant dense<0.000000e+00> : vector<64xf32>
    %181 = vector.multi_reduction <add>, %180, %cst_64 [0] : vector<16x64xf32> to vector<64xf32>
    %182 = vector.shape_cast %181 : vector<64xf32> to vector<1x64xf32>
    %183 = vector.extract_strided_slice %98 {offsets = [6, 0, 0], sizes = [1, 16, 64], strides = [1, 1, 1]} : vector<8x16x64xf32> to vector<1x16x64xf32>
    %184 = vector.shape_cast %183 : vector<1x16x64xf32> to vector<16x64xf32>
    %185 = arith.mulf %184, %177 : vector<16x64xf32>
    %186 = vector.extract_strided_slice %89 {offsets = [0, 6], sizes = [16, 1], strides = [1, 1]} : vector<16x8xf32> to vector<16x1xf32>
    %187 = vector.extract_strided_slice %86 {offsets = [6, 0], sizes = [1, 64], strides = [1, 1]} : vector<8x64xf32> to vector<1x64xf32>
    %188 = vector.broadcast %186 : vector<16x1xf32> to vector<16x64xf32>
    %189 = vector.broadcast %187 : vector<1x64xf32> to vector<16x64xf32>
    %190 = arith.mulf %188, %189 : vector<16x64xf32>
    %191 = arith.addf %185, %190 : vector<16x64xf32>
    %192 = vector.extract_strided_slice %92 {offsets = [0, 6], sizes = [16, 1], strides = [1, 1]} : vector<16x8xf32> to vector<16x1xf32>
    %193 = vector.broadcast %192 : vector<16x1xf32> to vector<16x64xf32>
    %194 = arith.mulf %191, %193 : vector<16x64xf32>
    %cst_65 = arith.constant dense<0.000000e+00> : vector<64xf32>
    %195 = vector.multi_reduction <add>, %194, %cst_65 [0] : vector<16x64xf32> to vector<64xf32>
    %196 = vector.shape_cast %195 : vector<64xf32> to vector<1x64xf32>
    %197 = vector.extract_strided_slice %98 {offsets = [7, 0, 0], sizes = [1, 16, 64], strides = [1, 1, 1]} : vector<8x16x64xf32> to vector<1x16x64xf32>
    %198 = vector.shape_cast %197 : vector<1x16x64xf32> to vector<16x64xf32>
    %199 = arith.mulf %198, %191 : vector<16x64xf32>
    %200 = vector.extract_strided_slice %89 {offsets = [0, 7], sizes = [16, 1], strides = [1, 1]} : vector<16x8xf32> to vector<16x1xf32>
    %201 = vector.extract_strided_slice %86 {offsets = [7, 0], sizes = [1, 64], strides = [1, 1]} : vector<8x64xf32> to vector<1x64xf32>
    %202 = vector.broadcast %200 : vector<16x1xf32> to vector<16x64xf32>
    %203 = vector.broadcast %201 : vector<1x64xf32> to vector<16x64xf32>
    %204 = arith.mulf %202, %203 : vector<16x64xf32>
    %205 = arith.addf %199, %204 : vector<16x64xf32>
    %206 = vector.extract_strided_slice %92 {offsets = [0, 7], sizes = [16, 1], strides = [1, 1]} : vector<16x8xf32> to vector<16x1xf32>
    %207 = vector.broadcast %206 : vector<16x1xf32> to vector<16x64xf32>
    %208 = arith.mulf %205, %207 : vector<16x64xf32>
    %cst_66 = arith.constant dense<0.000000e+00> : vector<64xf32>
    %209 = vector.multi_reduction <add>, %208, %cst_66 [0] : vector<16x64xf32> to vector<64xf32>
    %210 = vector.shape_cast %209 : vector<64xf32> to vector<1x64xf32>
    %211 = tpu.concatenate %112, %126, %140, %154, %168, %182, %196, %210 in 0 : vector<1x64xf32>, vector<1x64xf32>, vector<1x64xf32>, vector<1x64xf32>, vector<1x64xf32>, vector<1x64xf32>, vector<1x64xf32>, vector<1x64xf32> -> vector<8x64xf32>
    %212 = arith.index_cast %81 : i32 to index
    %c0_67 = arith.constant 0 : index
    %213 = vector.load %arg22[%212, %c0_67] : memref<8x64xf32, #tpu.memory_space<vmem>>, vector<8x64xf32>
    tpu.vector_store %arg22[%212, %c0_67], %211 {strides = array<i32>} : memref<8x64xf32, #tpu.memory_space<vmem>>, vector<8x64xf32>,
    %c1_i32 = arith.constant 1 : i32
    %c0_68 = arith.constant 0 : index
    %c0_69 = arith.constant 0 : index
    %214 = vector.load %arg17[%c0_68, %c0_69] : memref<16x64xf32, #tpu.memory_space<vmem>>, vector<16x64xf32>
    tpu.vector_store %arg17[%c0_68, %c0_69], %205 {strides = array<i32>} : memref<16x64xf32, #tpu.memory_space<vmem>>, vector<16x64xf32>,
    %c0_70 = arith.constant 0 : index
    %c0_71 = arith.constant 0 : index
    %215 = vector.load %arg6[%c0_70, %c0_71] : memref<32x64xf32, #tpu.memory_space<vmem>>, vector<32x64xf32>
    %cst_72 = arith.constant dense<0.000000e+00> : vector<8x64xf32>
    %216 = tpu.matmul %23, %215, %cst_72 {dimension_numbers = #tpu.dot_dimension_numbers<[1], [0], [0], [1], [0, 0, 1, 1], [], []>} : vector<8x32xf32>, vector<32x64xf32>, vector<8x64xf32> -> vector<8x64xf32>
    %c0_73 = arith.constant 0 : index
    %c0_74 = arith.constant 0 : index
    %217 = vector.load %arg22[%c0_73, %c0_74] : memref<8x64xf32, #tpu.memory_space<vmem>>, vector<8x64xf32>
    %c0_75 = arith.constant 0 : index
    %c0_76 = arith.constant 0 : index
    %218 = vector.load %arg20[%c0_75, %c0_76] : memref<8x64xf32, #tpu.memory_space<vmem>>, vector<8x64xf32>
    %c0_77 = arith.constant 0 : index
    %c0_78 = arith.constant 0 : index
    %219 = vector.load %arg13[%c0_77, %c0_78] : memref<1x64xf32, #tpu.memory_space<vmem>>, vector<1x64xf32>
    %220 = vector.broadcast %219 : vector<1x64xf32> to vector<8x64xf32>
    %221 = arith.mulf %218, %220 : vector<8x64xf32>
    %222 = arith.addf %217, %221 : vector<8x64xf32>
    %223 = arith.negf %216 : vector<8x64xf32>
    %224 = math.exp %223 : vector<8x64xf32>
    %cst_79 = arith.constant 1.000000e+00 : f32
    %225 = vector.broadcast %cst_79 : f32 to vector<8x64xf32>
    %226 = arith.addf %225, %224 : vector<8x64xf32>
    %227 = arith.divf %225, %226 : vector<8x64xf32>
    %228 = arith.mulf %216, %227 : vector<8x64xf32>
    %229 = arith.mulf %222, %228 : vector<8x64xf32>
    %c0_80 = arith.constant 0 : index
    %c0_81 = arith.constant 0 : index
    %230 = vector.load %arg14[%c0_80, %c0_81] : memref<64x32xf32, #tpu.memory_space<vmem>>, vector<64x32xf32>
    %cst_82 = arith.constant dense<0.000000e+00> : vector<8x32xf32>
    %231 = tpu.matmul %229, %230, %cst_82 {dimension_numbers = #tpu.dot_dimension_numbers<[1], [0], [0], [1], [0, 0, 1, 1], [], []>} : vector<8x64xf32>, vector<64x32xf32>, vector<8x32xf32> -> vector<8x32xf32>
    %c0_83 = arith.constant 0 : index
    %c0_84 = arith.constant 0 : index
    %c0_85 = arith.constant 0 : index
    %232 = vector.load %arg15[%c0_83, %c0_84, %c0_85] : memref<1x8x32xf32, #tpu.memory_space<vmem>>, vector<1x8x32xf32>
    %233 = vector.shape_cast %232 : vector<1x8x32xf32> to vector<8x32xf32>
    %234 = vector.shape_cast %231 : vector<8x32xf32> to vector<1x8x32xf32>
    tpu.vector_store %arg15[%c0_83, %c0_84, %c0_85], %234 {strides = array<i32>} : memref<1x8x32xf32, #tpu.memory_space<vmem>>, vector<1x8x32xf32>,
    return
  }
  func.func @transform_0(%arg0: i32, %arg1: i32) -> (i32, i32, i32) {
    %c0_i32 = arith.constant 0 : i32
    %c0_i32_0 = arith.constant 0 : i32
    return %arg0, %arg1, %c0_i32 : i32, i32, i32
  }
  func.func @transform_1(%arg0: i32, %arg1: i32) -> (i32, i32, i32) {
    %c0_i32 = arith.constant 0 : i32
    %c0_i32_0 = arith.constant 0 : i32
    return %arg0, %arg1, %c0_i32 : i32, i32, i32
  }
  func.func @transform_2(%arg0: i32, %arg1: i32) -> (i32, i32) {
    %c0_i32 = arith.constant 0 : i32
    %c0_i32_0 = arith.constant 0 : i32
    %c0_i32_1 = arith.constant 0 : i32
    return %c0_i32, %c0_i32_0 : i32, i32
  }
  func.func @transform_3(%arg0: i32, %arg1: i32) -> (i32, i32) {
    %c0_i32 = arith.constant 0 : i32
    %c0_i32_0 = arith.constant 0 : i32
    %c0_i32_1 = arith.constant 0 : i32
    return %c0_i32, %c0_i32_0 : i32, i32
  }
  func.func @transform_4(%arg0: i32, %arg1: i32) -> (i32, i32) {
    %c0_i32 = arith.constant 0 : i32
    %c0_i32_0 = arith.constant 0 : i32
    %c0_i32_1 = arith.constant 0 : i32
    return %c0_i32, %c0_i32_0 : i32, i32
  }
  func.func @transform_5(%arg0: i32, %arg1: i32) -> (i32, i32) {
    %c0_i32 = arith.constant 0 : i32
    %c0_i32_0 = arith.constant 0 : i32
    %c0_i32_1 = arith.constant 0 : i32
    return %c0_i32, %c0_i32_0 : i32, i32
  }
  func.func @transform_6(%arg0: i32, %arg1: i32) -> (i32, i32) {
    %c0_i32 = arith.constant 0 : i32
    %c0_i32_0 = arith.constant 0 : i32
    %c0_i32_1 = arith.constant 0 : i32
    return %c0_i32, %c0_i32_0 : i32, i32
  }
  func.func @transform_7(%arg0: i32, %arg1: i32) -> (i32, i32) {
    %c0_i32 = arith.constant 0 : i32
    %c0_i32_0 = arith.constant 0 : i32
    %c0_i32_1 = arith.constant 0 : i32
    return %c0_i32, %c0_i32_0 : i32, i32
  }
  func.func @transform_8(%arg0: i32, %arg1: i32) -> (i32, i32) {
    %c0_i32 = arith.constant 0 : i32
    %c0_i32_0 = arith.constant 0 : i32
    %c0_i32_1 = arith.constant 0 : i32
    return %c0_i32, %c0_i32_0 : i32, i32
  }
  func.func @transform_9(%arg0: i32, %arg1: i32) -> (i32, i32) {
    %c0_i32 = arith.constant 0 : i32
    %c0_i32_0 = arith.constant 0 : i32
    %c0_i32_1 = arith.constant 0 : i32
    return %c0_i32, %c0_i32_0 : i32, i32
  }
  func.func @transform_10(%arg0: i32, %arg1: i32) -> (i32, i32) {
    %c0_i32 = arith.constant 0 : i32
    %c0_i32_0 = arith.constant 0 : i32
    %c0_i32_1 = arith.constant 0 : i32
    return %c0_i32, %c0_i32_0 : i32, i32
  }
  func.func @transform_11(%arg0: i32, %arg1: i32) -> (i32, i32) {
    %c0_i32 = arith.constant 0 : i32
    %c0_i32_0 = arith.constant 0 : i32
    %c0_i32_1 = arith.constant 0 : i32
    return %c0_i32, %c0_i32_0 : i32, i32
  }
  func.func @transform_12(%arg0: i32, %arg1: i32) -> (i32, i32) {
    %c0_i32 = arith.constant 0 : i32
    %c0_i32_0 = arith.constant 0 : i32
    %c0_i32_1 = arith.constant 0 : i32
    return %c0_i32, %c0_i32_0 : i32, i32
  }
  func.func @transform_13(%arg0: i32, %arg1: i32) -> (i32, i32, i32) {
    %c0_i32 = arith.constant 0 : i32
    %c0_i32_0 = arith.constant 0 : i32
    return %arg0, %arg1, %c0_i32 : i32, i32, i32
  }
  func.func @transform_14(%arg0: i32, %arg1: i32) -> (i32, i32, i32) {
    %c0_i32 = arith.constant 0 : i32
    %c0_i32_0 = arith.constant 0 : i32
    return %arg0, %arg1, %c0_i32 : i32, i32, i32
  }
}

</mosaic_0001>

<bundles_post_ra>
// kernel: tpu_custom_call.1
= control target key start
LH: loop header
LB: loop body
LE: loop exit
PB: predicated region body
PF: predicated region fallthrough
CT: control target
= control target key end

     0   :  { %s4152_s0 = inlined_call_operand.hbm [shape: f32[2,16,32], index: 0, kind: input, shape index: {}]   ;;  %s4153_s1 = inlined_call_operand.hbm [shape: f32[2,16,32], index: 1, kind: input, shape index: {}]   ;;  %s4154_s2 = inlined_call_operand.hbm [shape: f32[1,32], index: 2, kind: input, shape index: {}]   ;;  %s4155_s3 = inlined_call_operand.hbm [shape: f32[32,64], index: 3, kind: input, shape index: {}]   ;;  %s4156_s4 = inlined_call_operand.hbm [shape: f32[32,64], index: 4, kind: input, shape index: {}]   ;;  %s4157_s5 = inlined_call_operand.hbm [shape: f32[4,64], index: 5, kind: input, shape index: {}]   ;;  %s4158_s6 = inlined_call_operand.hbm [shape: f32[1,64], index: 6, kind: input, shape index: {}]   ;;  %s4159_s7 = inlined_call_operand.hbm [shape: f32[64,384], index: 7, kind: input, shape index: {}]   ;;  %s4160_s8 = inlined_call_operand.hbm [shape: f32[128,64], index: 8, kind: input, shape index: {}]   ;;  %s4161_s9 = inlined_call_operand.hbm [shape: f32[1,64], index: 9, kind: input, shape index: {}]   ;;  %s4162_s10 = inlined_call_operand.hbm [shape: f32[16,64], index: 10, kind: input, shape index: {}]   ;;  %s4163_s11 = inlined_call_operand.hbm [shape: f32[1,64], index: 11, kind: input, shape index: {}]   ;;  %s4164_s12 = inlined_call_operand.hbm [shape: f32[64,32], index: 12, kind: input, shape index: {}]   ;;  %s4165_s13 = inlined_call_operand.hbm [shape: f32[2,16,32], index: 13, kind: output, shape index: {0}]   ;;  %s4166_s14 = inlined_call_operand.hbm [shape: f32[2,16,32], index: 14, kind: output, shape index: {1}]  }
   0x1   :  { %4183 = sst [smem:[#allocation46_spill]] %s4152_s0 }
   0x2   :  { %4184 = sst [smem:[#allocation47_spill]] %s4153_s1 }
   0x3   :  { %4185 = sst [smem:[#allocation48_spill]] %s4154_s2 }
   0x4   :  { %4186 = sst [smem:[#allocation49_spill]] %s4155_s3 }
   0x5   :  { %4187 = sst [smem:[#allocation50_spill]] %s4156_s4 }
   0x6   :  { %4188 = sst [smem:[#allocation51_spill]] %s4157_s5 }
   0x7   :  { %4189 = sst [smem:[#allocation52_spill]] %s4158_s6 }
   0x8   :  { %4190 = sst [smem:[#allocation53_spill]] %s4159_s7 }
   0x9   :  { %4191 = sst [smem:[#allocation54_spill]] %s4160_s8 }
   0xa   :  { %4192 = sst [smem:[#allocation55_spill]] %s4161_s9 }
   0xb   :  { %4193 = sst [smem:[#allocation56_spill]] %s4162_s10 }
   0xc   :  { %4194 = sst [smem:[#allocation57_spill]] %s4163_s11 }
   0xd   :  { %4195 = sst [smem:[#allocation58_spill]] %s4165_s13 }
   0xe   :  { %4196 = sst [smem:[#allocation59_spill]] %s4166_s14 }
   0xf   :  { %20 = vsyncpa [#allocation9], 0 }
  0x10   :  { %22 = vsyncpa [#allocation9 + $0x1], 0 }
  0x11   :  { %23 = vsyncpa [#allocation12], 0 }
  0x12   :  { %25 = vsyncpa [#allocation12 + $0x1], 0 }
  0x13   :  { %26 = vsyncpa [#allocation15], 0 }
  0x14   :  { %27 = vsyncpa [#allocation18], 0 }
  0x15   :  { %28 = vsyncpa [#allocation21], 0 }
  0x16   :  { %29 = vsyncpa [#allocation24], 0 }
  0x17   :  { %30 = vsyncpa [#allocation27], 0 }
  0x18   :  { %31 = vsyncpa [#allocation10], 0 }
  0x19   :  { %33 = vsyncpa [#allocation10 + $0x1], 0 }
  0x1a   :  { %34 = vsyncpa [#allocation31], 0 }
  0x1b   :  { %36 = vsyncpa [#allocation31 + $0x1], 0  ;;  %s3336_s29 = smov 0   ;;  %s3338_s30 = smov 0  }
  0x1c   :  { %s3340_s15 = smov 0   ;;  %s3342_s16 = smov 0  }
  0x1d   :  { %s3344_s17 = smov 0   ;;  %s3346_s18 = smov 0  }
  0x1e   :  { %s3348_s19 = smov 0   ;;  %s3350_s20 = smov 0  }
  0x1f LB: > { %4197 = sst [smem:[#allocation42_spill]] %s3211_s16  ;;  %s3377_s21 = sadd.s32 4294967295, %s3227_s20   ;;  %s3227_s20 = sphi %s3350_s20, %s42_s20   ;;  %s3223_s19 = sphi %s3348_s19, %s4255_s19   ;;  %s3219_s18 = sphi %s3346_s18, %s4254_s18   ;;  %s3215_s17 = sphi %s3344_s17, %s4253_s17   ;;  %s3211_s16 = sphi %s3342_s16, %s4252_s16   ;;  %s3207_s15 = sphi %s3340_s15, %s4251_s15   ;;  %s3203_s30 = sphi %s3338_s30, %s4250_s30   ;;  %s3199_s29 = sphi %s3336_s29, %s4249_s29  }
  0x20   : > { %4198 = sst [smem:[#allocation43_spill]] %s3215_s17  ;;  %p2132_p0 = scmp.ge.s32.totalorder %s3227_s20, 1 }
  0x21   : > { %4199 = sst [smem:[#allocation44_spill]] %s3377_s21  ;;  %p4171_p1 = scmp.eq.s32.totalorder %s3377_s21, 0 }
  0x22   : > { %p402_p2 = scmp.lt.s32.totalorder %s3227_s20, 5  ;;  %s3229_s23 = smov [#allocation13]  }
  0x23   : > { %s415_s24 = sshll.u32 %s3229_s23, 4  ;;  %s3230_s25 = smov [#allocation14]   ;;  %s416_s24 = int_to_ptr.vmem [resolvable:$true] %s415_s24 }
  0x24   : > { %p3382_p3 = pnand %p2132_p0, %p402_p2  ;;  %s425_s26 = sshll.u32 %s3230_s25, 4  ;;  %s3394_s26 = int_to_ptr.vmem [resolvable:$true] %s425_s26 }
  0x25   : > { %s3231_s28 = smov [#allocation17]   ;;  %s4203_s2 = sld [smem:[#allocation48_spill]] }
  0x26   : > { %s4200_s22 = scalar_select %p3382_p3, 1, 0 }
  0x27   : > { %p2459_p4 = pneg %p3382_p3  ;;  %s3396_s13 = sshll.u32 %s3231_s28, 4  ;;  %s453_s13 = int_to_ptr.vmem [resolvable:$true] %s3396_s13 }
  0x28   : > { %4201 = sst [smem:[#allocation45_spill]] %s4200_s22 }
  0x29   : > { %p3390_p5 = pnand %p2459_p4, %p4171_p1 }
  0x2b   : > { %s2701_s23 = scalar_lea.hbm %s4203_s2, 16  ;;  %p3406_p7 = pneg %p3390_p5 }
  0x2c   : > { %p2702_p6 = scmp.ne.s32.totalorder %s4203_s2, %s2701_s23  ;;  %p2708_p10 = scmp.lt.u32.totalorder %s2701_s23, %s4203_s2 }
  0x2e   : > { %p2704_p8 = pnand %p3406_p7, %p2702_p6 }
  0x30   : > { %p2705_p9 = pneg %p2704_p8 }
  0x32   : > { %p2710_p11 = pnand %p2708_p10, %p2705_p9 }
  0x34   : > { %2713 = shalt.err (!%p2710_p11)
}
  0x35   : > { %s2714_s14 = scalar_lea.vmem %s416_s24, 16  ;;  %s2721_s16 = scalar_lea.vmem %s416_s24, 32 }
  0x36   : > { %p2715_p12 = scmp.ne.s32.totalorder %s416_s24, %s2714_s14  ;;  %p2722_p2 = scmp.lt.s32.totalorder %s416_s24, %s416_s24 }
  0x37   : > { %p2723_p4 = scmp.lt.s32.totalorder %s2721_s16, %s2714_s14 }
  0x38   : > { %p2717_p13 = pnand %p2715_p12, %p3406_p7 }
  0x39   : > { %p2724_p1 = por %p2723_p4, %p2722_p2 }
  0x3a   : > { %p2718_p0 = pneg %p2717_p13 }
  0x3c   : > { %p2725_p3 = pnand %p2724_p1, %p2718_p0 }
  0x3e   : > { %2728 = shalt.err (!%p2725_p3)
}
  0x3f   : > { %2462 = dma.hbm_to_vmem [thread:$0]  (!%p3390_p5), %s4203_s2, 16, %s416_s24, [#allocation12]  }
  0x40   : > { %s4205_s3 = sld [smem:[#allocation49_spill]] }
  0x46   : > { %s2729_s28 = scalar_lea.hbm %s4205_s3, 512 }
  0x47   : > { %p2730_p6 = scmp.ne.s32.totalorder %s4205_s3, %s2729_s28  ;;  %p2736_p1 = scmp.lt.u32.totalorder %s2729_s28, %s4205_s3 }
  0x49   : > { %p2732_p8 = pnand %p2730_p6, %p3406_p7 }
  0x4b   : > { %p2733_p9 = pneg %p2732_p8 }
  0x4d   : > { %p2738_p3 = pnand %p2736_p1, %p2733_p9 }
  0x4f   : > { %2741 = shalt.err (!%p2738_p3)
}
  0x50   : > { %s2742_s24 = scalar_lea.vmem %s3394_s26, 512  ;;  %p2750_p13 = scmp.lt.s32.totalorder %s3394_s26, %s3394_s26 }
  0x51   : > { %p2743_p10 = scmp.ne.s32.totalorder %s3394_s26, %s2742_s24  ;;  %p2751_p0 = scmp.lt.s32.totalorder %s2742_s24, %s2742_s24 }
  0x53   : > { %p2745_p11 = pnand %p2743_p10, %p3406_p7  ;;  %p2752_p2 = por %p2751_p0, %p2750_p13 }
  0x55   : > { %p2746_p12 = pneg %p2745_p11 }
  0x57   : > { %p2753_p4 = pnand %p2752_p2, %p2746_p12 }
  0x59   : > { %2756 = shalt.err (!%p2753_p4)
}
  0x5a   : > { %s4177_s0 = smov 128   ;;  %s4179_s21 = smov 8  }
  0x5b   : > { %2465 = dma.hbm_to_vmem [thread:$0]  (!%p3390_p5), %s4205_s3, 512, %s3394_s26, [#allocation15], %s4177_s0, %s4177_s0, %s4179_s21  }
  0x5c   : > { %s4206_s5 = sld [smem:[#allocation51_spill]] }
  0x62   : > { %s2757_s28 = scalar_lea.hbm %s4206_s5, 64 }
  0x63   : > { %p2758_p6 = scmp.ne.s32.totalorder %s4206_s5, %s2757_s28  ;;  %p2764_p1 = scmp.lt.u32.totalorder %s2757_s28, %s4206_s5 }
  0x65   : > { %p2760_p8 = pnand %p2758_p6, %p3406_p7 }
  0x67   : > { %p2761_p9 = pneg %p2760_p8 }
  0x69   : > { %p2766_p3 = pnand %p2764_p1, %p2761_p9 }
  0x6b   : > { %2769 = shalt.err (!%p2766_p3)
}
  0x6c   : > { %s2770_s17 = scalar_lea.vmem %s453_s13, 64  ;;  %p2778_p13 = scmp.lt.s32.totalorder %s453_s13, %s453_s13 }
  0x6d   : > { %p2771_p10 = scmp.ne.s32.totalorder %s453_s13, %s2770_s17  ;;  %p2779_p0 = scmp.lt.s32.totalorder %s2770_s17, %s2770_s17 }
  0x6f   : > { %p2773_p11 = pnand %p2771_p10, %p3406_p7  ;;  %p2780_p2 = por %p2779_p0, %p2778_p13 }
  0x71   : > { %p2774_p12 = pneg %p2773_p11 }
  0x73   : > { %p2781_p4 = pnand %p2780_p2, %p2774_p12 }
  0x75   : > { %2784 = shalt.err (!%p2781_p4)
}
  0x76   : > { %2471 = dma.hbm_to_vmem [thread:$0]  (!%p3390_p5), %s4206_s5, 64, %s453_s13, [#allocation18]  }
  0x77   : > { %s3234_s2 = smov [#allocation20]   ;;  %s4207_s7 = sld [smem:[#allocation53_spill]] }
  0x78   : > { %s473_s1 = sshll.u32 %s3234_s2, 4  ;;  %s474_s1 = int_to_ptr.vmem [resolvable:$true] %s473_s1 }
  0x7d   : > { %s2785_s14 = scalar_lea.hbm %s4207_s7, 3072 }
  0x7e   : > { %p2786_p6 = scmp.ne.s32.totalorder %s4207_s7, %s2785_s14  ;;  %p2792_p1 = scmp.lt.u32.totalorder %s2785_s14, %s4207_s7 }
  0x80   : > { %p2788_p8 = pnand %p2786_p6, %p3406_p7 }
  0x82   : > { %p2789_p9 = pneg %p2788_p8 }
  0x84   : > { %p2794_p3 = pnand %p2792_p1, %p2789_p9 }
  0x86   : > { %2797 = shalt.err (!%p2794_p3)
}
  0x87   : > { %s2798_s13 = scalar_lea.vmem %s474_s1, 3072  ;;  %p2806_p13 = scmp.lt.s32.totalorder %s474_s1, %s474_s1 }
  0x88   : > { %p2799_p10 = scmp.ne.s32.totalorder %s474_s1, %s2798_s13  ;;  %p2807_p0 = scmp.lt.s32.totalorder %s2798_s13, %s2798_s13 }
  0x8a   : > { %p2801_p11 = pnand %p2799_p10, %p3406_p7  ;;  %p2808_p2 = por %p2807_p0, %p2806_p13 }
  0x8c   : > { %p2802_p12 = pneg %p2801_p11 }
  0x8e   : > { %p2809_p4 = pnand %p2808_p2, %p2802_p12 }
  0x90   : > { %2812 = shalt.err (!%p2809_p4)
}
  0x91   : > { %s3235_s26 = smov 384   ;;  %s3236_s22 = smov 24  }
  0x92   : > { %2477 = dma.hbm_to_vmem [thread:$0]  (!%p3390_p5), %s4207_s7, 3072, %s474_s1, [#allocation21], %s3235_s26, %s3235_s26, %s3236_s22  }
  0x93   : > { %s3237_s23 = smov [#allocation23]   ;;  %s3238_s14 = smov [#allocation26]  }
  0x94   : > { %s500_s28 = sshll.u32 %s3237_s23, 4  ;;  %s524_s16 = sshll.u32 %s3238_s14, 4  ;;  %s501_s28 = int_to_ptr.vmem [resolvable:$true] %s500_s28  ;;  %s3485_s16 = int_to_ptr.vmem [resolvable:$true] %s524_s16 }
  0x95   : > { %s4208_s9 = sld [smem:[#allocation55_spill]] }
  0x9b   : > { %s2813_s13 = scalar_lea.hbm %s4208_s9, 16 }
  0x9c   : > { %p2814_p6 = scmp.ne.s32.totalorder %s4208_s9, %s2813_s13  ;;  %p2820_p1 = scmp.lt.u32.totalorder %s2813_s13, %s4208_s9 }
  0x9e   : > { %p2816_p8 = pnand %p2814_p6, %p3406_p7 }
  0xa0   : > { %p2817_p9 = pneg %p2816_p8 }
  0xa2   : > { %p2822_p3 = pnand %p2820_p1, %p2817_p9 }
  0xa4   : > { %2825 = shalt.err (!%p2822_p3)
}
  0xa5   : > { %s2826_s26 = scalar_lea.vmem %s501_s28, 16  ;;  %s2833_s22 = scalar_lea.vmem %s501_s28, 32 }
  0xa6   : > { %p2827_p10 = scmp.ne.s32.totalorder %s501_s28, %s2826_s26  ;;  %p2834_p13 = scmp.lt.s32.totalorder %s501_s28, %s501_s28 }
  0xa7   : > { %p2835_p0 = scmp.lt.s32.totalorder %s2833_s22, %s2826_s26 }
  0xa8   : > { %p2829_p11 = pnand %p2827_p10, %p3406_p7 }
  0xa9   : > { %p2836_p2 = por %p2835_p0, %p2834_p13 }
  0xaa   : > { %p2830_p12 = pneg %p2829_p11 }
  0xac   : > { %p2837_p4 = pnand %p2836_p2, %p2830_p12 }
  0xae   : > { %2840 = shalt.err (!%p2837_p4)
}
  0xaf   : > { %2483 = dma.hbm_to_vmem [thread:$0]  (!%p3390_p5), %s4208_s9, 16, %s501_s28, [#allocation24]  }
  0xb0   : > { %s4209_s11 = sld [smem:[#allocation57_spill]] }
  0xb6   : > { %s2841_s14 = scalar_lea.hbm %s4209_s11, 16 }
  0xb7   : > { %p2842_p6 = scmp.ne.s32.totalorder %s4209_s11, %s2841_s14  ;;  %p2848_p1 = scmp.lt.u32.totalorder %s2841_s14, %s4209_s11 }
  0xb9   : > { %p2844_p8 = pnand %p2842_p6, %p3406_p7 }
  0xbb   : > { %p2845_p9 = pneg %p2844_p8 }
  0xbd   : > { %p2850_p3 = pnand %p2848_p1, %p2845_p9 }
  0xbf   : > { %2853 = shalt.err (!%p2850_p3)
}
  0xc0   : > { %s2854_s28 = scalar_lea.vmem %s3485_s16, 16  ;;  %s2861_s1 = scalar_lea.vmem %s3485_s16, 32 }
  0xc1   : > { %p2855_p10 = scmp.ne.s32.totalorder %s3485_s16, %s2854_s28  ;;  %p2862_p13 = scmp.lt.s32.totalorder %s3485_s16, %s3485_s16 }
  0xc2   : > { %p2863_p0 = scmp.lt.s32.totalorder %s2861_s1, %s2854_s28 }
  0xc3   : > { %p2857_p11 = pnand %p2855_p10, %p3406_p7 }
  0xc4   : > { %p2864_p2 = por %p2863_p0, %p2862_p13 }
  0xc5   : > { %p2858_p12 = pneg %p2857_p11 }
  0xc7   : > { %p2865_p4 = pnand %p2864_p2, %p2858_p12 }
  0xc9   : > { %2868 = shalt.err (!%p2865_p4)
}
  0xca   : > { %2489 = dma.hbm_to_vmem [thread:$0]  (!%p3390_p5), %s4209_s11, 16, %s3485_s16, [#allocation27]  }
  0xcb   : > { %s3239_s3 = smov [#allocation16]   ;;  %s3240_s2 = smov [#allocation19]  }
  0xcc   : > { %s438_s21 = sshll.u32 %s3239_s3, 4  ;;  %s463_s23 = sshll.u32 %s3240_s2, 4  ;;  %s439_s21 = int_to_ptr.vmem [resolvable:$true] %s438_s21  ;;  %s3529_s23 = int_to_ptr.vmem [resolvable:$true] %s463_s23 }
  0xcd   : > { %s4210_s4 = sld [smem:[#allocation50_spill]] }
  0xd3   : > { %s2869_s17 = scalar_lea.hbm %s4210_s4, 512 }
  0xd4   : > { %p2870_p6 = scmp.ne.s32.totalorder %s4210_s4, %s2869_s17  ;;  %p2876_p1 = scmp.lt.u32.totalorder %s2869_s17, %s4210_s4 }
  0xd6   : > { %p2872_p8 = pnand %p2870_p6, %p3406_p7 }
  0xd8   : > { %p2873_p9 = pneg %p2872_p8 }
  0xda   : > { %p2878_p3 = pnand %p2876_p1, %p2873_p9 }
  0xdc   : > { %2881 = shalt.err (!%p2878_p3)
}
  0xdd   : > { %s2882_s1 = scalar_lea.vmem %s439_s21, 512  ;;  %p2890_p13 = scmp.lt.s32.totalorder %s439_s21, %s439_s21 }
  0xde   : > { %p2883_p10 = scmp.ne.s32.totalorder %s439_s21, %s2882_s1  ;;  %p2891_p0 = scmp.lt.s32.totalorder %s2882_s1, %s2882_s1 }
  0xe0   : > { %p2885_p11 = pnand %p2883_p10, %p3406_p7  ;;  %p2892_p2 = por %p2891_p0, %p2890_p13 }
  0xe2   : > { %p2886_p12 = pneg %p2885_p11 }
  0xe4   : > { %p2893_p4 = pnand %p2892_p2, %p2886_p12 }
  0xe6   : > { %2896 = shalt.err (!%p2893_p4)
}
  0xe7   : > { %s4211_s26 = smov 8   ;;  %s4212_s22 = smov 128  }
  0xe8   : > { %2468 = dma.hbm_to_vmem [thread:$0]  (!%p3390_p5), %s4210_s4, 512, %s439_s21, [#allocation15], %s4212_s22, %s4212_s22, %s4211_s26  }
  0xe9   : > { %s4213_s6 = sld [smem:[#allocation52_spill]] }
  0xef   : > { %s2897_s17 = scalar_lea.hbm %s4213_s6, 16 }
  0xf0   : > { %p2898_p6 = scmp.ne.s32.totalorder %s4213_s6, %s2897_s17  ;;  %p2904_p1 = scmp.lt.u32.totalorder %s2897_s17, %s4213_s6 }
  0xf2   : > { %p2900_p8 = pnand %p2898_p6, %p3406_p7 }
  0xf4   : > { %p2901_p9 = pneg %p2900_p8 }
  0xf6   : > { %p2906_p3 = pnand %p2904_p1, %p2901_p9 }
  0xf8   : > { %2909 = shalt.err (!%p2906_p3)
}
  0xf9   : > { %s2910_s21 = scalar_lea.vmem %s3529_s23, 16  ;;  %s2917_s1 = scalar_lea.vmem %s3529_s23, 32 }
  0xfa   : > { %p2911_p10 = scmp.ne.s32.totalorder %s3529_s23, %s2910_s21  ;;  %p2918_p13 = scmp.lt.s32.totalorder %s3529_s23, %s3529_s23 }
  0xfb   : > { %p2919_p0 = scmp.lt.s32.totalorder %s2917_s1, %s2910_s21 }
  0xfc   : > { %p2913_p11 = pnand %p2911_p10, %p3406_p7 }
  0xfd   : > { %p2920_p2 = por %p2919_p0, %p2918_p13 }
  0xfe   : > { %p2914_p12 = pneg %p2913_p11 }
 0x100   : > { %p2921_p4 = pnand %p2920_p2, %p2914_p12 }
 0x102   : > { %2924 = shalt.err (!%p2921_p4)
}
 0x103   : > { %2474 = dma.hbm_to_vmem [thread:$0]  (!%p3390_p5), %s4213_s6, 16, %s3529_s23, [#allocation18]  }
 0x104   : > { %s3241_s14 = smov [#allocation22]   ;;  %s3242_s17 = smov [#allocation25]  }
 0x105   : > { %s486_s24 = sshll.u32 %s3241_s14, 4  ;;  %s510_s13 = sshll.u32 %s3242_s17, 4  ;;  %s487_s24 = int_to_ptr.vmem [resolvable:$true] %s486_s24  ;;  %s3576_s13 = int_to_ptr.vmem [resolvable:$true] %s510_s13 }
 0x106   : > { %s4214_s8 = sld [smem:[#allocation54_spill]] }
 0x10c   : > { %s2925_s16 = scalar_lea.hbm %s4214_s8, 2048 }
 0x10d   : > { %p2926_p6 = scmp.ne.s32.totalorder %s4214_s8, %s2925_s16  ;;  %p2932_p1 = scmp.lt.u32.totalorder %s2925_s16, %s4214_s8 }
 0x10f   : > { %p2928_p8 = pnand %p2926_p6, %p3406_p7 }
 0x111   : > { %p2929_p9 = pneg %p2928_p8 }
 0x113   : > { %p2934_p3 = pnand %p2932_p1, %p2929_p9 }
 0x115   : > { %2937 = shalt.err (!%p2934_p3)
}
 0x116   : > { %s2938_s2 = scalar_lea.vmem %s487_s24, 2048  ;;  %p2946_p13 = scmp.lt.s32.totalorder %s487_s24, %s487_s24 }
 0x117   : > { %p2939_p10 = scmp.ne.s32.totalorder %s487_s24, %s2938_s2  ;;  %p2947_p0 = scmp.lt.s32.totalorder %s2938_s2, %s2938_s2 }
 0x119   : > { %p2941_p11 = pnand %p2939_p10, %p3406_p7  ;;  %p2948_p2 = por %p2947_p0, %p2946_p13 }
 0x11b   : > { %p2942_p12 = pneg %p2941_p11 }
 0x11d   : > { %p2949_p4 = pnand %p2948_p2, %p2942_p12 }
 0x11f   : > { %2952 = shalt.err (!%p2949_p4)
}
 0x120   : > { %2480 = dma.hbm_to_vmem [thread:$0]  (!%p3390_p5), %s4214_s8, 2048, %s487_s24, [#allocation21], %s4212_s22, %s4212_s22, %s4211_s26  }
 0x121   : > { %s4215_s10 = sld [smem:[#allocation56_spill]] }
 0x127   : > { %s2953_s16 = scalar_lea.hbm %s4215_s10, 256 }
 0x128   : > { %p2954_p6 = scmp.ne.s32.totalorder %s4215_s10, %s2953_s16  ;;  %p2960_p1 = scmp.lt.u32.totalorder %s2953_s16, %s4215_s10 }
 0x12a   : > { %p2956_p8 = pnand %p2954_p6, %p3406_p7 }
 0x12c   : > { %p2957_p9 = pneg %p2956_p8 }
 0x12e   : > { %p2962_p3 = pnand %p2960_p1, %p2957_p9 }
 0x130   : > { %2965 = shalt.err (!%p2962_p3)
}
 0x131   : > { %s2966_s24 = scalar_lea.vmem %s3576_s13, 256  ;;  %p2974_p13 = scmp.lt.s32.totalorder %s3576_s13, %s3576_s13 }
 0x132   : > { %p2967_p10 = scmp.ne.s32.totalorder %s3576_s13, %s2966_s24  ;;  %p2975_p0 = scmp.lt.s32.totalorder %s2966_s24, %s2966_s24 }
 0x134   : > { %p2969_p11 = pnand %p2967_p10, %p3406_p7  ;;  %p2976_p2 = por %p2975_p0, %p2974_p13 }
 0x136   : > { %p2970_p12 = pneg %p2969_p11 }
 0x138   : > { %p2977_p4 = pnand %p2976_p2, %p2970_p12 }
 0x13a   : > { %2980 = shalt.err (!%p2977_p4)
}
 0x13b   : > { %2486 = dma.hbm_to_vmem [thread:$0]  (!%p3390_p5), %s4215_s10, 256, %s3576_s13, [#allocation24], %s4212_s22, %s4212_s22, %s4211_s26  }
 0x13c   : > { %s3243_s17 = smov [#allocation28]   ;;  %s2981_s21 = scalar_lea.hbm %s4164_s12, 1024 }
 0x13d   : > { %s534_s0 = sshll.u32 %s3243_s17, 4  ;;  %p2982_p6 = scmp.ne.s32.totalorder %s4164_s12, %s2981_s21  ;;  %s535_s0 = int_to_ptr.vmem [resolvable:$true] %s534_s0 }
 0x13e   : > { %p2988_p1 = scmp.lt.u32.totalorder %s2981_s21, %s4164_s12 }
 0x13f   : > { %p2984_p8 = pnand %p2982_p6, %p3406_p7 }
 0x141   : > { %p2985_p9 = pneg %p2984_p8 }
 0x143   : > { %p2990_p3 = pnand %p2988_p1, %p2985_p9 }
 0x145   : > { %2993 = shalt.err (!%p2990_p3)
}
 0x146   : > { %s2994_s13 = scalar_lea.vmem %s535_s0, 1024  ;;  %p3002_p13 = scmp.lt.s32.totalorder %s535_s0, %s535_s0 }
 0x147   : > { %p2995_p10 = scmp.ne.s32.totalorder %s535_s0, %s2994_s13  ;;  %p3003_p0 = scmp.lt.s32.totalorder %s2994_s13, %s2994_s13 }
 0x149   : > { %p2997_p11 = pnand %p2995_p10, %p3406_p7  ;;  %p3004_p2 = por %p3003_p0, %p3002_p13 }
 0x14b   : > { %p2998_p12 = pneg %p2997_p11 }
 0x14d   : > { %p3005_p4 = pnand %p3004_p2, %p2998_p12 }
 0x14f   : > { %3008 = shalt.err (!%p3005_p4)
}
 0x150   : > { %s4216_s25 = sld [smem:[#allocation44_spill]]  ;;  %s2131_s27 = sadd.s32 4294967294, %s3227_s20  }
 0x151   : > { %2492 = dma.hbm_to_vmem [thread:$0]  (!%p3390_p5), %s4164_s12, 1024, %s535_s0, [#allocation27], %s4212_s22, %s4212_s22, %s4211_s26  }
 0x152   : > { %s51_s17 = sadd.s32 1, %s3219_s18  ;;  %s54_s28 = sadd.s32 1, %s3223_s19 }
 0x153   : > { %p52_p7 = scmp.ge.s32.totalorder %s51_s17, 2  ;;  %s63_s16 = sadd.s32 1, %s3207_s15 }
 0x154   : > { %p70_p6 = scmp.ne.s32.totalorder %s3207_s15, %s3203_s30  ;;  %p71_p8 = scmp.eq.s32.totalorder %s3227_s20, 0 }
 0x155   : > { %s4257_s17 = smov (%p52_p7, %s51_s17), 0  ;;  %s4259_s28 = smov (!%p52_p7, %s54_s28), %s3223_s19 }
 0x156   : > { %s59_s21 = ssub.s32 %s3219_s18, %s4257_s17  ;;  %p3658_p9 = por %p71_p8, %p70_p6 }
 0x157   : > { %p56_p5 = scmp.ge.s32.totalorder %s4259_s28, 2  ;;  %p76_p1 = scmp.ne.s32.totalorder %s3203_s30, %s3199_s29 }
 0x158   : > { %p361_p3 = scmp.eq.s32.totalorder %s4216_s25, 3  ;;  %p367_p10 = scmp.eq.s32.totalorder %s2131_s27, 3 }
 0x159   : > { %s4261_s28 = smov (%p56_p5, %s4259_s28), 0  ;;  %p4218_p11 = scmp.eq.s32.totalorder %s4216_s25, 0 }
 0x15a   : > { %p3673_p13 = por %p361_p3, %p70_p6  ;;  %s58_s0 = ssub.s32 %s3223_s19, %s4261_s28 }
 0x15b   : > { %p3669_p12 = por %p4218_p11, %p76_p1  ;;  %p3679_p0 = por %p367_p10, %p76_p1 }
 0x15c   : > { %s4220_s22 = scalar_select %p3673_p13, 1, 0 }
 0x15d   : > { %s4219_s26 = scalar_select %p3669_p12, 1, 0 }
 0x15e   : > { %s4221_s3 = scalar_select %p3679_p0, 1, 0 }
 0x15f   : > { %s60_s23 = sor.u32 %s59_s21, %s58_s0  ;;  %p2518_p2 = scmp.lt.s32.totalorder %s3227_s20, 4 }
 0x160   : > { %p61_p4 = scmp.eq.s32.totalorder %s60_s23, 0  ;;  %s548_s24 = sand.u32 1, %s3207_s15  }
 0x161   : > { %s3685_s13 = sshll.u32 %s548_s24, 3  ;;  %s2146_s14 = sshll.u32 %s3223_s19, 1 }
 0x162   : > { %s3688_s2 = scalar_select %p61_p4, %s3207_s15, %s63_s16  }
 0x163   : > { %s557_s25 = sadd.s32 %s3219_s18, %s2146_s14  ;;  %s552_s27 = scalar_lea.vmem [#allocation8], %s3685_s13 }
 0x164   : > { %s561_s4 = sshll.u32 %s552_s27, 4  ;;  %s2147_s5 = sshll.u32 %s557_s25, 7  ;;  %s3693_s4 = int_to_ptr.vmem [resolvable:$true] %s561_s4 }
 0x165   : > { %s4222_s8 = sld [smem:[#allocation46_spill]]  ;;  %p3702_p7 = pnand %p2518_p2, %p3658_p9 }
 0x166   : > { %s4224_s23 = sld [smem:[#allocation47_spill]]  ;;  %s568_s25 = sand.u32 1, %s3227_s20  }
 0x167   : > { %s549_s6 = scalar_lea.sflag [#allocation9], %s548_s24  ;;  %p3011_p8 = pneg %p3702_p7 }
 0x16b   : > { %s3698_s9 = scalar_lea.hbm %s4222_s8, %s2147_s5  ;;  %s3014_s10 = scalar_lea.hbm %s4222_s8, 512 }
 0x16c   : > { %s3709_s14 = scalar_lea.hbm %s4224_s23, %s2147_s5  ;;  %s3009_s7 = scalar_lea.hbm %s3698_s9, 128 }
 0x16d   : > { %p3010_p6 = scmp.ne.s32.totalorder %s3698_s9, %s3009_s7  ;;  %p3015_p1 = scmp.lt.u32.totalorder %s3698_s9, %s4222_s8 }
 0x16e   : > { %p3016_p3 = scmp.lt.u32.totalorder %s3014_s10, %s3009_s7  ;;  %p3018_p11 = scmp.lt.u32.totalorder %s3009_s7, %s3698_s9 }
 0x16f   : > { %p3012_p5 = pnand %p3011_p8, %p3010_p6 }
 0x170   : > { %p3017_p10 = por %p3016_p3, %p3015_p1 }
 0x171   : > { %p3013_p9 = pneg %p3012_p5 }
 0x172   : > { %p3019_p2 = por %p3018_p11, %p3017_p10 }
 0x174   : > { %p3020_p4 = pnand %p3019_p2, %p3013_p9 }
 0x176   : > { %3023 = shalt.err (!%p3020_p4)
}
 0x177   : > { %s3024_s5 = scalar_lea.vmem %s3693_s4, 128  ;;  %s3244_s24 = smov [#allocation8]  }
 0x178   : > { %p3025_p6 = scmp.ne.s32.totalorder %s3693_s4, %s3024_s5  ;;  %s3029_s0 = sshll.u32 %s3244_s24, 4  ;;  %s3030_s0 = int_to_ptr.vmem [resolvable:$false] %s3029_s0 }
 0x179   : > { %s3031_s11 = scalar_lea.vmem %s3030_s0, 256  ;;  %p3032_p13 = scmp.lt.s32.totalorder %s3693_s4, %s3030_s0 }
 0x17a   : > { %p3027_p5 = pnand %p3025_p6, %p3011_p8  ;;  %p3033_p1 = scmp.lt.s32.totalorder %s3031_s11, %s3024_s5 }
 0x17c   : > { %p3028_p0 = pneg %p3027_p5  ;;  %p3034_p3 = por %p3033_p1, %p3032_p13 }
 0x17e   : > { %p3035_p10 = pnand %p3034_p3, %p3028_p0 }
 0x180   : > { %3038 = shalt.err (!%p3035_p10)
}
 0x181   : > { %2496 = dma.hbm_to_vmem [thread:$0]  (!%p3702_p7), %s3698_s9, 128, %s3693_s4, %s549_s6  }
 0x182   : > { %s572_s10 = scalar_lea.vmem [#allocation11], %s3685_s13  ;;  %s569_s1 = scalar_lea.sflag [#allocation12], %s568_s25 }
 0x183   : > { %s581_s7 = sshll.u32 %s572_s10, 4  ;;  %s3039_s27 = scalar_lea.hbm %s3709_s14, 128  ;;  %s582_s7 = int_to_ptr.vmem [resolvable:$true] %s581_s7 }
 0x184   : > { %p3040_p13 = scmp.ne.s32.totalorder %s3709_s14, %s3039_s27  ;;  %s3044_s24 = scalar_lea.hbm %s4224_s23, 512 }
 0x185   : > { %p3045_p11 = scmp.lt.u32.totalorder %s3709_s14, %s4224_s23  ;;  %p3046_p2 = scmp.lt.u32.totalorder %s3044_s24, %s3039_s27 }
 0x186   : > { %p3042_p0 = pnand %p3040_p13, %p3011_p8  ;;  %p3048_p6 = scmp.lt.u32.totalorder %s3039_s27, %s3709_s14 }
 0x187   : > { %p3047_p4 = por %p3046_p2, %p3045_p11 }
 0x188   : > { %p3043_p9 = pneg %p3042_p0 }
 0x189   : > { %p3049_p5 = por %p3048_p6, %p3047_p4 }
 0x18b   : > { %p3050_p1 = pnand %p3049_p5, %p3043_p9 }
 0x18d   : > { %3053 = shalt.err (!%p3050_p1)
}
 0x18e   : > { %s3054_s4 = scalar_lea.vmem %s582_s7, 128  ;;  %s3245_s9 = smov [#allocation11]  }
 0x18f   : > { %p3055_p3 = scmp.ne.s32.totalorder %s582_s7, %s3054_s4  ;;  %s3059_s13 = sshll.u32 %s3245_s9, 4  ;;  %s3060_s13 = int_to_ptr.vmem [resolvable:$false] %s3059_s13 }
 0x190   : > { %s3061_s25 = scalar_lea.vmem %s3060_s13, 256  ;;  %p3062_p0 = scmp.lt.s32.totalorder %s582_s7, %s3060_s13 }
 0x191   : > { %p3057_p10 = pnand %p3055_p3, %p3011_p8  ;;  %p3063_p12 = scmp.lt.s32.totalorder %s3061_s25, %s3054_s4 }
 0x193   : > { %p3058_p13 = pneg %p3057_p10  ;;  %p3064_p2 = por %p3063_p12, %p3062_p0 }
 0x195   : > { %p3065_p11 = pnand %p3064_p2, %p3058_p13 }
 0x197   : > { %3068 = shalt.err (!%p3065_p11)
}
 0x198   : > { %2499 = dma.hbm_to_vmem [thread:$0]  (!%p3702_p7), %s3709_s14, 128, %s582_s7, %s569_s1  }
 0x199   : > { %s4225_s6 = sld [smem:[#allocation45_spill]] }
 0x19f   : > { %p4226_p9 = scmp.ne.s32.totalorder %s4225_s6, 0 }
 0x1a0   : > { %s3762_s10 = sand.u32 (!%p4226_p9), 1, %s3203_s30   ;;  %p4227_p12 = scmp.ne.s32.totalorder (!%p4226_p9), %s4219_s26, 0 }
 0x1a1   : > { %590 = sbr.rel (%p4226_p9) target bundleno = 1738 (0x6ca), region = 72  ;;  %s3765_s27 = sshll.u32 (!%p4226_p9), %s3762_s10, 3 }
 0x1a2   : > { %s593_s21 = scalar_lea.sflag (!%p4226_p9), [#allocation9], %s3762_s10  ;;  %s596_s5 = scalar_lea.vmem (!%p4226_p9), [#allocation8], %s3765_s27 }
 0x1a8   : > { %3158 = dma.done.wait (%p4227_p12), %s593_s21, 128  }
 0x1a9   : > { %3160 = vsyncadd (%p4227_p12), %s593_s21, 4294967168  ;;  %s4228_s16 = sld [smem:[#allocation44_spill]]  ;;  %s605_s1 = scalar_lea.vmem [#allocation11], %s3765_s27 }
 0x1af   : > { %s601_s14 = sand.u32 1, %s4228_s16  }
 0x1b0   : > { %s602_s7 = scalar_lea.sflag [#allocation12], %s601_s14 }
 0x1b1   : > { %3162 = dma.done.wait (%p4227_p12), %s602_s7, 128  }
 0x1b2   : > { %3164 = vsyncadd (%p4227_p12), %s602_s7, 4294967168  ;;  %p4229_p7 = scmp.eq.s32.totalorder %s4228_s16, 0 }
 0x1b4   : > { %3166 = dma.done.wait (%p4229_p7), [#allocation12], 16   ;;  %p4230_p8 = pmov %p4229_p7 }
 0x1b5   : > { %p4231_p4 = pmov %p4229_p7 }
 0x1b6   : > { %3168 = vsyncadd (%p4230_p8), [#allocation12], 4294967280 }
 0x1b7   : > { %3170 = dma.done.wait (%p4231_p4), [#allocation15], 1024   ;;  %p4232_p6 = pmov %p4231_p4 }
 0x1b8   : > { %p4233_p5 = pmov %p4231_p4 }
 0x1b9   : > { %3172 = vsyncadd (%p4232_p6), [#allocation15], 4294966272 }
 0x1ba   : > { %3174 = dma.done.wait (%p4233_p5), [#allocation18], 80   ;;  %p4234_p1 = pmov %p4231_p4 }
 0x1bc   : > { %3176 = vsyncadd (%p4234_p1), [#allocation18], 4294967216  ;;  %p4235_p3 = pmov %p4234_p1 }
 0x1bd   : > { %p4236_p10 = pmov %p4234_p1 }
 0x1be   : > { %3178 = dma.done.wait (%p4235_p3), [#allocation21], 5120  }
 0x1bf   : > { %3180 = vsyncadd (%p4236_p10), [#allocation21], 4294962176  ;;  %p4237_p13 = pmov %p4234_p1 }
 0x1c0   : > { %p4238_p0 = pmov %p4234_p1 }
 0x1c1   : > { %3182 = dma.done.wait (%p4237_p13), [#allocation24], 272  }
 0x1c2   : > { %3184 = vsyncadd (%p4238_p0), [#allocation24], 4294967024  ;;  %p4239_p2 = pmov %p4238_p0 }
 0x1c3   : > { %p4240_p11 = pmov %p4238_p0 }
 0x1c4   : > { %3186 = dma.done.wait (%p4239_p2), [#allocation27], 1040  }
 0x1c5   : > { %3188 = vsyncadd (%p4240_p11), [#allocation27], 4294966256  ;;  %s696_s26 = scalar_lea.vmem [#allocation29], %s3765_s27  ;;  %s703_s24 = scalar_lea.vmem [#allocation30], %s3765_s27 }
 0x1c6   : > { %s4241_s0 = sld [smem:[#allocation42_spill]] }
 0x1cc   : > { %p2167_p9 = scmp.ne.s32.totalorder %s4241_s0, 0 }
 0x1cd   : > { %vm708_vm0 = vcmask (!%p2167_p9), 523264   ;;  %v3246_v0 = vmov (!%p2167_p9), 0.0  }
 0x1ce   : > { %707 = sbr.rel (%p2167_p9) target bundleno = 469 (0x1d5), region = 128  ;;  %709 = vst.msk [vmem:[#allocation2] sm:$0xff] (!%p2167_p9), %vm708_vm0, %v3246_v0  ;;  %710 = vst.msk [vmem:[#allocation2 + $0x8] sm:$0xff] (!%p2167_p9), %vm708_vm0, %v3246_v0 }
 0x1cf   : > { %711 = vst.msk [vmem:[#allocation3] sm:$0xff] (!%p2167_p9), %vm708_vm0, %v3246_v0 }
 0x1d5 PF: > { %v712_v1 = vld [vmem:[%s596_s5] sm:$0xff]  ;;  %v713_v2 = vld [vmem:[%s605_s1] sm:$0xff]  ;;  %vm715_vm1 = vcmask 261120   ;;  %v3247_v9 = vmov 0.0|0.0   ;;  %vm3248_vm2 = vmmov 0   ;;  %v3249_v12 = vmov 0.0  }
 0x1d6   : > { %v714_v3 = vadd.f32 %v713_v2, %v712_v1  ;;  %v734_v6 = vld [vmem:[#allocation14] sm:$0xff]  ;;  %v735_v7 = vld [vmem:[#allocation14 + $0x8] sm:$0xff]  ;;  %v736_v8 = vld [vmem:[#allocation14 + $0x10] sm:$0xff]  ;;  %2331 = vmatprep.subr.bf16.mxu0 %v3247_v9  ;;  %2244 = vmatprep.mubr.msk.f32.mxu0 %vm3248_vm2, %v3249_v12  ;;  %vm811_vm3 = vcmask 523264   ;;  %vm1654_vm6 = vcmask 1040384   ;;  %vm1656_vm7 = vcmask 1041408  }
 0x1d7   : > { %v2332_v10 = vpack.c.bf16 %v735_v7, %v734_v6  ;;  %v737_v11 = vld [vmem:[#allocation14 + $0x18] sm:$0xff]  ;;  %953 = vmatprep.mubr.f32.mxu1 %v3249_v12  ;;  %v863_v21 = vld [vmem:[#allocation20 + $0x8] sm:$0xff]  ;;  %v866_v22 = vld [vmem:[#allocation20 + $0x20] sm:$0xff]  ;;  %vm1658_vm8 = vcmask 1042432   ;;  %vm1660_vm9 = vcmask 1043456   ;;  %vm1662_vm10 = vcmask 1044480  }
 0x1d8   : > { %v717_v4 = vmul.f32 %v714_v3, %v714_v3  ;;  %716 = vst.msk [vmem:[%s703_s24] sm:$0xff] %vm715_vm1, %v714_v3  ;;  %v2335_v13 = vpack.c.bf16 %v737_v11, %v736_v8  ;;  %v2168_v18 = vld [vmem:[#allocation13] ss:$0 sm:$0xff]  ;;  %v864_v23 = vld [vmem:[#allocation20 + $0x10] sm:$0xff]  ;;  %v2337_v24 = vpack.c.bf16 %v866_v22, %v863_v21  ;;  %v867_v25 = vld [vmem:[#allocation20 + $0x28] sm:$0xff]  ;;  %vm1664_vm11 = vcmask 1045504  }
 0x1d9   : > { %2333 = vmatpush3.bf16.msra.mxu0 %v2332_v10  ;;  %v862_v26 = vld [vmem:[#allocation20] sm:$0xff]  ;;  %v865_v27 = vld [vmem:[#allocation20 + $0x18] sm:$0xff]  ;;  %v2354_v28 = vpack.c.bf16 %v867_v25, %v864_v23  ;;  %v872_v31 = vld [vmem:[#allocation20 + $0x50] sm:$0xff]  ;;  %s4242_s11 = sld [smem:[#allocation43_spill]]  ;;  %s4243_s4 = sld [smem:[#allocation42_spill]]  ;;  %vm1666_vm12 = vcmask 1046528  }
 0x1da   : > { %v718_v5 = vsel %vm715_vm1, %v717_v4, 0.0  ;;  %2334 = vmatprep.subr.bf16.mxu0 %v3247_v9  ;;  %v2339_v29 = vpack.c.bf16 %v865_v27, %v862_v26  ;;  %v869_v30 = vld [vmem:[#allocation20 + $0x38] sm:$0xff]  ;;  %v870_v32 = vld [vmem:[#allocation20 + $0x40] sm:$0xff]  ;;  %2338 = vmatprep.subr.bf16.mxu1 %v2337_v24  ;;  %v868_v35 = vld [vmem:[#allocation20 + $0x30] sm:$0xff]  ;;  %s4244_s5 = sld [smem:[#allocation59_spill]]  ;;  %s1882_s14 = sshll.u32 %s703_s24, 4  ;;  %s1883_s14 = int_to_ptr.vmem [resolvable:$true] %s1882_s14 }
 0x1db   : > { %719 = vadd.xlane.f32.xlu0 %v718_v5  ;;  %v2341_v33 = vpack.c.bf16 %v872_v31, %v869_v30  ;;  %v873_v34 = vld [vmem:[#allocation20 + $0x58] sm:$0xff]  ;;  %v871_v36 = vld [vmem:[#allocation20 + $0x48] sm:$0xff]  ;;  %v878_v40 = vld [vmem:[#allocation20 + $0x80] sm:$0xff]  ;;  %s1852_s7 = scalar_lea.sflag [#allocation31], %s3762_s10  ;;  %s3069_s1 = scalar_lea.vmem %s1883_s14, 128 }
 0x1dc   : > { %2340 = vmatpush1.bf16.msra.mxu1 %v2339_v29  ;;  %v2357_v37 = vpack.c.bf16 %v873_v34, %v870_v32  ;;  %v2343_v38 = vpack.c.bf16 %v871_v36, %v868_v35  ;;  %v875_v39 = vld [vmem:[#allocation20 + $0x68] sm:$0xff]  ;;  %v876_v41 = vld [vmem:[#allocation20 + $0x70] sm:$0xff]  ;;  %v874_v44 = vld [vmem:[#allocation20 + $0x60] sm:$0xff]  ;;  %p3070_p12 = scmp.ne.s32.totalorder %s1883_s14, %s3069_s1  ;;  %p4245_p7 = scmp.ne.s32.totalorder %s4220_s22, 0 }
 0x1dd   : > { %2336 = vmatpush3.bf16.msra.mxu0 %v2335_v13  ;;  %2342 = vmatprep.subr.bf16.mxu1 %v2341_v33  ;;  %v2345_v42 = vpack.c.bf16 %v878_v40, %v875_v39  ;;  %v879_v43 = vld [vmem:[#allocation20 + $0x88] sm:$0xff]  ;;  %v877_v45 = vld [vmem:[#allocation20 + $0x78] sm:$0xff]  ;;  %v884_v47 = vld [vmem:[#allocation20 + $0xb0] sm:$0xff]  ;;  %s3259_s0 = smov [#allocation30]  }
 0x1de   : > { %2353 = vmatprep.subr.bf16.mxu0 %v3247_v9  ;;  %v881_v46 = vld [vmem:[#allocation20 + $0x98] sm:$0xff]  ;;  %v2360_v48 = vpack.c.bf16 %v879_v43, %v876_v41  ;;  %v2347_v49 = vpack.c.bf16 %v877_v45, %v874_v44  ;;  %v882_v50 = vld [vmem:[#allocation20 + $0xa0] sm:$0xff]  ;;  %v880_v53 = vld [vmem:[#allocation20 + $0x90] sm:$0xff]  ;;  %p3071_p8 = pnand %p3070_p12, %p4245_p7 }
 0x1df   : > { %v2349_v51 = vpack.c.bf16 %v884_v47, %v881_v46  ;;  %v885_v52 = vld [vmem:[#allocation20 + $0xb8] sm:$0xff]  ;;  %v883_v54 = vld [vmem:[#allocation20 + $0xa8] sm:$0xff]  ;;  %v1036_v32 = vld [vmem:[#allocation22 + $0x20] sm:$0xff]  ;;  %s2185_s9 = sshll.u32 %s4242_s11, 1  ;;  %s3073_s11 = sshll.u32 %s3259_s0, 4  ;;  %s3074_s11 = int_to_ptr.vmem [resolvable:$false] %s3073_s11 }
 0x1e0   : > { %2344 = vmatpush1.bf16.msra.mxu1 %v2343_v38  ;;  %v2363_v55 = vpack.c.bf16 %v885_v52, %v882_v50  ;;  %v2351_v56 = vpack.c.bf16 %v883_v54, %v880_v53  ;;  %v2171_v59 = vld [vmem:[#allocation17] ss:$0 sm:$0xff]  ;;  %v2170_v60 = vld [vmem:[#allocation19] ss:$0 sm:$0xff]  ;;  %v2172_v61 = vld [vmem:[#allocation17 + $0x1] ss:$0 sm:$0xff]  ;;  %s4058_s13 = sadd.s32 %s4243_s4, %s2185_s9  ;;  %p3072_p4 = pneg %p3071_p8 }
 0x1e1   : > { %2346 = vmatprep.subr.bf16.mxu1 %v2345_v42  ;;  %v2174_v6 = vld [vmem:[#allocation17 + $0x3] ss:$0 sm:$0xff]  ;;  %v1033_v21 = vld [vmem:[#allocation22 + $0x8] sm:$0xff]  ;;  %v1674_v26 = vld [vmem:[#allocation16 + $0x18] sm:$0xff]  ;;  %v3250_v54 = vmov 0   ;;  %s2186_s25 = sshll.u32 %s4058_s13, 7  ;;  %p3076_p6 = scmp.lt.s32.totalorder %s1883_s14, %s3074_s11 }
 0x1e2   : > { %v1673_v25 = vld [vmem:[#allocation16 + $0x10] sm:$0xff]  ;;  %v1035_v29 = vld [vmem:[#allocation22 + $0x18] sm:$0xff]  ;;  %v1040_v38 = vld [vmem:[#allocation22 + $0x40] sm:$0xff]  ;;  %s4066_s16 = scalar_lea.hbm %s4244_s5, %s2186_s25  ;;  %s3075_s4 = scalar_lea.vmem %s3074_s11, 256 }
 0x1e3   : > { %v2393_v30 = vpack.c.bf16 %v1674_v26, %v1673_v25  ;;  %v1037_v33 = vld [vmem:[#allocation22 + $0x28] sm:$0xff]  ;;  %v1038_v35 = vld [vmem:[#allocation22 + $0x30] sm:$0xff]  ;;  %v1039_v36 = vld [vmem:[#allocation22 + $0x38] sm:$0xff]  ;;  %p3077_p5 = scmp.lt.s32.totalorder %s3075_s4, %s3069_s1 }
 0x1e4   : > { %2348 = vmatpush1.bf16.msra.mxu1 %v2347_v49  ;;  %v2372_v34 = vpack.c.bf16 %v1037_v33, %v1036_v32  ;;  %v1041_v39 = vld [vmem:[#allocation22 + $0x48] sm:$0xff]  ;;  %v1042_v41 = vld [vmem:[#allocation22 + $0x50] sm:$0xff]  ;;  %v1043_v42 = vld [vmem:[#allocation22 + $0x58] sm:$0xff] }
 0x1e5   : > { %2350 = vmatprep.subr.bf16.mxu1 %v2349_v51  ;;  %v2378_v40 = vpack.c.bf16 %v1041_v39, %v1040_v38  ;;  %v2381_v43 = vpack.c.bf16 %v1043_v42, %v1042_v41  ;;  %v1045_v44 = vld [vmem:[#allocation22 + $0x68] sm:$0xff]  ;;  %v1046_v45 = vld [vmem:[#allocation22 + $0x70] sm:$0xff]  ;;  %v1047_v46 = vld [vmem:[#allocation22 + $0x78] sm:$0xff]  ;;  %p3078_p1 = por %p3077_p5, %p3076_p6 }
 0x1e6   : > { %v2387_v47 = vpack.c.bf16 %v1047_v46, %v1046_v45  ;;  %v3877_v33 = vld [vmem:[#allocation25] sm:$0xff]  ;;  %v1764_v45 = vld [vmem:[#allocation28] sm:$0xff] }
 0x1e7   : > { %v1765_v46 = vld [vmem:[#allocation28 + $0x8] sm:$0xff]  ;;  %p3079_p3 = pnand %p3078_p1, %p3072_p4 }
 0x1e8   : > { %2352 = vmatpush1.bf16.msra.mxu1 %v2351_v56 }
 0x1e9   : > { %2365 = vmatprep.subr.bf16.mxu1 %v3247_v9 }
 0x268   : > { %v720_v14 = vpop.xlane.xlu0 %719 }
 0x269   : > { %v722_v15 = vmul.f32 0.03125, %v720_v14 }
 0x26b   : > { %v723_v16 = vadd.f32 1e-05, %v722_v15 }
 0x26d   : > { %2655 = vrsqrt.f32 %v723_v16 }
 0x277   : > { %v2656_v17 = vpop.eup %2655 }
 0x278   : > { %v725_v19 = vmul.f32 %v2656_v17, %v714_v3  ;;  %v2173_v3 = vld [vmem:[#allocation17 + $0x2] ss:$0 sm:$0xff] }
 0x279   : > { %v1671_v17 = vld [vmem:[#allocation16] sm:$0xff] }
 0x27a   : > { %v3816_v20 = vmul.f32 %v2168_v18, %v725_v19  ;;  %v1672_v18 = vld [vmem:[#allocation16 + $0x8] sm:$0xff] }
 0x27b   : > { %v1032_v19 = vld [vmem:[#allocation22] sm:$0xff]  ;;  %v2390_v23 = vpack.c.bf16 %v1672_v18, %v1671_v17  ;;  %v1221_v18 = vlaneseq }
 0x27c   : > { %2245 = vmatmul.mubr.msk.f32.vlgmr.msra.gmra.mrb[0].mxu0 %vm715_vm1, %v3816_v20  ;;  %v2366_v27 = vpack.c.bf16 %v1033_v21, %v1032_v19  ;;  %v3258_v19 = vmov 1966171168  }
 0x27d   : > { %2263 = vmatprep.mubr.msk.f32.mxu0 %vm3248_vm2, %v3249_v12  ;;  %2355 = vmatpush3.bf16.msra.mxu0 %v2354_v28  ;;  %v1034_v28 = vld [vmem:[#allocation22 + $0x10] sm:$0xff]  ;;  %v1219_v21 = vunpack.c.l.s4 %v3258_v19 }
 0x27e   : > { %2356 = vmatprep.subr.bf16.mxu0 %v3247_v9  ;;  %v2369_v31 = vpack.c.bf16 %v1035_v29, %v1034_v28 }
 0x27f   : > { %v1220_v25 = vunpack.c.0.s8 %v1219_v21 }
 0x281   : > { %2358 = vmatpush3.bf16.msra.mxu0 %v2357_v37  ;;  %v2375_v37 = vpack.c.bf16 %v1039_v36, %v1038_v35 }
 0x282   : > { %2359 = vmatprep.subr.bf16.mxu0 %v3247_v9 }
 0x285   : > { %2361 = vmatpush3.bf16.msra.mxu0 %v2360_v48 }
 0x286   : > { %2362 = vmatprep.subr.bf16.mxu0 %v3247_v9 }
 0x289   : > { %2364 = vmatpush3.bf16.msra.mxu0 %v2363_v55  ;;  %v3251_v55 = vmov 1  }
 0x28a   : > { %2389 = vmatprep.subr.bf16.mxu0 %v3247_v9 }
 0x34f   : > { %v807_v57 = vpop.f32.mrb[0].mxu0 }
 0x350   : > { %812 = vst.msk [vmem:[#allocation3 + $0x8] sm:$0xff] %vm811_vm3, %v807_v57  ;;  %v2246_v58 = vpop.f32.mrb[1].mxu0  ;;  %v3252_v57 = vmov 6  }
 0x351   : > { %v3253_v58 = vmov 2  }
 0x357   : > { %v821_v62 = vld [vmem:[#allocation3 + $0x5] sm:$0xff] }
 0x358   : > { %v829_v63 = vld [vmem:[#allocation3 + $0x6] sm:$0xff]  ;;  %v827_v1 = vmul.f32 %v2171_v59, %v821_v62  ;;  %v3256_v62 = vmov 4  }
 0x359   : > { %v837_v0 = vld [vmem:[#allocation3 + $0x7] sm:$0xff]  ;;  %v835_v5 = vmul.f32 %v2172_v61, %v829_v63  ;;  %v3255_v61 = vmov 7  }
 0x35a   : > { %v845_v2 = vld [vmem:[#allocation3 + $0x8] sm:$0xff]  ;;  %v828_v4 = vadd.f32 %v2170_v60, %v827_v1  ;;  %v843_v8 = vmul.f32 %v2173_v3, %v837_v0  ;;  %v3254_v60 = vmov 3   ;;  %v3257_v0 = vmov 5  }
 0x35b   : > { %853 = vst.msk [vmem:[#allocation3] sm:$0xff] %vm811_vm3, %v845_v2  ;;  %v851_v11 = vmul.f32 %v2174_v6, %v845_v2  ;;  %v2178_v2 = vld [vmem:[#allocation23] ss:$0 sm:$0xff] }
 0x35c   : > { %v836_v7 = vadd.f32 %v835_v5, %v828_v4 }
 0x35e   : > { %v844_v10 = vadd.f32 %v843_v8, %v836_v7 }
 0x360   : > { %v852_v13 = vadd.f32 %v851_v11, %v844_v10 }
 0x362   : > { %v2175_v14 = vmul.f32 -1.442695, %v852_v13 }
 0x364   : > { %2657 = vpow2.f32 %v2175_v14 }
 0x36e   : > { %v2658_v15 = vpop.eup %2657 }
 0x36f   : > { %v857_v16 = vadd.f32 1.0, %v2658_v15 }
 0x371   : > { %2659 = vrcp.f32 %v857_v16 }
 0x37b   : > { %v2660_v22 = vpop.eup %2659 }
 0x37c   : > { %v860_v24 = vmul.f32 %v2660_v22, %v852_v13 }
 0x37e   : > { %861 = vst.msk [vmem:[#allocation5] sm:$0xff] %vm811_vm3, %v860_v24  ;;  %2176 = vmatmul.mubr.msk.f32.vlgmr.msra.gmra.mrb[0].mxu1 %vm811_vm3, %v860_v24  ;;  %2264 = vmatmul.mubr.msk.f32.vlgmr.msra.gmra.mrb[2].mxu0 %vm811_vm3, %v860_v24  ;;  %v3868_v24 = vshrl.u32 %v1221_v18, 7 }
 0x37f   : > { %2391 = vmatpush3.bf16.msra.mxu0 %v2390_v23  ;;  %2309 = vmatprep.mubr.msk.f32.mxu0 %vm3248_vm2, %v3249_v12 }
 0x380   : > { %2392 = vmatprep.subr.bf16.mxu0 %v3247_v9  ;;  %2367 = vmatpush3.bf16.msra.mxu1 %v2366_v27  ;;  %v1223_v26 = vsub.s32 %v1220_v25, %v3868_v24 }
 0x381   : > { %2368 = vmatprep.subr.bf16.mxu1 %v3247_v9  ;;  %2298 = vmatprep.mubr.msk.f32.mxu1 %vm3248_vm2, %v3249_v12 }
 0x383   : > { %2394 = vmatpush3.bf16.msra.mxu0 %v2393_v30 }
 0x384   : > { %2370 = vmatpush3.bf16.msra.mxu1 %v2369_v31  ;;  %2395 = vmatprep.subr.bf16.mxu0 %v3247_v9  ;;  %v3875_v31 = vsub.s32 0, %v3868_v24 }
 0x385   : > { %2371 = vmatprep.subr.bf16.mxu1 %v3247_v9 }
 0x386   : > { %2310 = vmatmul.mubr.msk.f32.vlgmr.msra.gmra.mrb[4].mxu0 %vm715_vm1, %v3816_v20  ;;  %v1044_v20 = vld [vmem:[#allocation22 + $0x60] sm:$0xff] }
 0x387   : > { %2328 = vmatprep.mubr.msk.f32.mxu0 %vm3248_vm2, %v3249_v12  ;;  %v2384_v12 = vpack.c.bf16 %v1045_v44, %v1044_v20 }
 0x388   : > { %2373 = vmatpush3.bf16.msra.mxu1 %v2372_v34 }
 0x389   : > { %2374 = vmatprep.subr.bf16.mxu1 %v3247_v9 }
 0x38c   : > { %2376 = vmatpush3.bf16.msra.mxu1 %v2375_v37 }
 0x38d   : > { %2377 = vmatprep.subr.bf16.mxu1 %v3247_v9 }
 0x390   : > { %2379 = vmatpush3.bf16.msra.mxu1 %v2378_v40 }
 0x391   : > { %2380 = vmatprep.subr.bf16.mxu1 %v3247_v9 }
 0x394   : > { %2382 = vmatpush3.bf16.msra.mxu1 %v2381_v43 }
 0x395   : > { %2383 = vmatprep.subr.bf16.mxu1 %v3247_v9 }
 0x398   : > { %2385 = vmatpush3.bf16.msra.mxu1 %v2384_v12 }
 0x399   : > { %2386 = vmatprep.subr.bf16.mxu1 %v3247_v9 }
 0x39c   : > { %2388 = vmatpush3.bf16.msra.mxu1 %v2387_v47 }
 0x451   : > { %v955_v48 = vpop.f32.mrb[0].mxu1  ;;  %v1026_v49 = vpop.f32.mrb[2].mxu0 }
 0x452   : > { %v957_v50 = vpop.f32.mrb[1].mxu1  ;;  %2299 = vmatmul.mubr.f32.vlgmr.msra.gmra.mrb[2].mxu1 %v955_v48  ;;  %1184 = vxpose.xlu1.b32.start.end [1/1] (short) (narrow) %v1026_v49, 16  ;;  %v2265_v51 = vpop.f32.mrb[3].mxu0 }
 0x453   : > { %1151 = vxpose.xlu0.b32.start.end [1/1] (short) (narrow) %v957_v50, 16  ;;  %v1766_v50 = vld [vmem:[#allocation28 + $0x10] sm:$0xff]  ;;  %v1767_v51 = vld [vmem:[#allocation28 + $0x18] sm:$0xff] }
 0x459   : > { %v3849_v52 = vpop.f32.mrb[4].mxu0 }
 0x45a   : > { %v2311_v53 = vpop.f32.mrb[5].mxu0 }
 0x470   : > { %2623 = vset.pattern.permute.xlu1 %v3250_v54 }
 0x47c   : > { %2624 = vset.pattern.permute.xlu0 %v3251_v55 }
 0x4d2   : > { %v3851_v56 = vpop.trf.xlu1 }
 0x4d3   : > { %1414 = vperm.xlu0 %2624, %v3851_v56   ;;  %1376 = vperm.xlu1 %2623, %v3851_v56   ;;  %v1167_v59 = vpop.trf.xlu0 }
 0x4d6   : > { %v1201_v63 = vpop.trf.xlu1 }
 0x4d7   : > { %2629 = vset.pattern.permute.xlu0 %v3252_v57  ;;  %2625 = vset.pattern.permute.xlu1 %v3253_v58  ;;  %v1168_v1 = vpop.trf.xlu0 }
 0x4d8   : > { %1599 = vperm.xlu0 %2629, %v3851_v56   ;;  %1451 = vperm.xlu1 %2625, %v3851_v56  }
 0x4dc   : > { %2632 = vset.pattern.permute.xlu0 %v3253_v58  ;;  %2626 = vset.pattern.permute.xlu1 %v3254_v60 }
 0x4dd   : > { %1435 = vperm.xlu0 %2632, %v1167_v59   ;;  %1488 = vperm.xlu1 %2626, %v3851_v56  }
 0x4e1   : > { %2637 = vset.pattern.permute.xlu0 %v3255_v61  ;;  %2627 = vset.pattern.permute.xlu1 %v3256_v62 }
 0x4e2   : > { %1620 = vperm.xlu0 %2637, %v1167_v59   ;;  %1525 = vperm.xlu1 %2627, %v3851_v56  }
 0x4e6   : > { %2628 = vset.pattern.permute.xlu1 %v3257_v0  ;;  %2640 = vset.pattern.permute.xlu0 %v3253_v58 }
 0x4e7   : > { %1562 = vperm.xlu1 %2628, %v3851_v56   ;;  %1455 = vperm.xlu0 %2640, %v1201_v63  }
 0x4eb   : > { %2630 = vset.pattern.permute.xlu1 %v3250_v54  ;;  %2642 = vset.pattern.permute.xlu0 %v3256_v62 }
 0x4ec   : > { %1358 = vperm.xlu1 %2630, %v1167_v59   ;;  %1529 = vperm.xlu0 %2642, %v1201_v63  }
 0x4f0   : > { %2631 = vset.pattern.permute.xlu1 %v3251_v55  ;;  %2653 = vset.pattern.permute.xlu0 %v3255_v61 }
 0x4f1   : > { %1398 = vperm.xlu1 %2631, %v1167_v59   ;;  %1640 = vperm.xlu0 %2653, %v1201_v63  }
 0x4f5   : > { %2633 = vset.pattern.permute.xlu1 %v3254_v60 }
 0x4f6   : > { %1472 = vperm.xlu1 %2633, %v1167_v59  }
 0x4fa   : > { %2634 = vset.pattern.permute.xlu1 %v3256_v62 }
 0x4fb   : > { %1509 = vperm.xlu1 %2634, %v1167_v59  }
 0x4ff   : > { %2635 = vset.pattern.permute.xlu1 %v3257_v0 }
 0x500   : > { %1546 = vperm.xlu1 %2635, %v1167_v59  }
 0x504   : > { %2636 = vset.pattern.permute.xlu1 %v3252_v57 }
 0x505   : > { %1583 = vperm.xlu1 %2636, %v1167_v59  }
 0x509   : > { %2638 = vset.pattern.permute.xlu1 %v3250_v54 }
 0x50a   : > { %1381 = vperm.xlu1 %2638, %v1201_v63  }
 0x50e   : > { %2639 = vset.pattern.permute.xlu1 %v3251_v55 }
 0x50f   : > { %1418 = vperm.xlu1 %2639, %v1201_v63  }
 0x513   : > { %2641 = vset.pattern.permute.xlu1 %v3254_v60 }
 0x514   : > { %1492 = vperm.xlu1 %2641, %v1201_v63  }
 0x518   : > { %2643 = vset.pattern.permute.xlu1 %v3257_v0 }
 0x519   : > { %1566 = vperm.xlu1 %2643, %v1201_v63  }
 0x51d   : > { %2644 = vset.pattern.permute.xlu1 %v3252_v57 }
 0x51e   : > { %1603 = vperm.xlu1 %2644, %v1201_v63  }
 0x522   : > { %2645 = vset.pattern.permute.xlu1 %v3250_v54 }
 0x523   : > { %1363 = vperm.xlu1 %2645, %v1168_v1  }
 0x525   : > { %v1121_v3 = vpop.f32.mrb[2].mxu1 }
 0x526   : > { %v1122_v4 = vadd.f32 %v2178_v2, %v1121_v3  ;;  %v2300_v5 = vpop.f32.mrb[3].mxu1 }
 0x527   : > { %2646 = vset.pattern.permute.xlu1 %v3251_v55 }
 0x528   : > { %v1126_v6 = vmin.f32 %v1122_v4, 20.0  ;;  %1402 = vperm.xlu1 %2646, %v1168_v1   ;;  %vm1125_vm5 = vcmp.gt.f32.partialorder %v1122_v4, 20.0 }
 0x52a   : > { %v1127_v7 = vmul.f32 1.442695, %v1126_v6  ;;  %v1142_v6 = vld [vmem:[#allocation2] sm:$0xff] }
 0x52c   : > { %2661 = vpow2.f32 %v1127_v7  ;;  %2647 = vset.pattern.permute.xlu1 %v3253_v58  ;;  %v3903_v58 = vld [vmem:[#allocation5] sm:$0xff] }
 0x52d   : > { %1439 = vperm.xlu1 %2647, %v1168_v1  }
 0x531   : > { %2648 = vset.pattern.permute.xlu1 %v3254_v60  ;;  %v1768_v60 = vld [vmem:[#allocation28 + $0x20] sm:$0xff] }
 0x532   : > { %1476 = vperm.xlu1 %2648, %v1168_v1  }
 0x536   : > { %v2662_v8 = vpop.eup %2661  ;;  %2649 = vset.pattern.permute.xlu1 %v3256_v62 }
 0x537   : > { %v1129_v10 = vadd.f32 1.0, %v2662_v8  ;;  %1513 = vperm.xlu1 %2649, %v1168_v1   ;;  %v1132_v11 = vmul.f32 -0.5, %v2662_v8  ;;  %v1135_v14 = vand.u32 2147483647, %v2662_v8 }
 0x539   : > { %2663 = vlog2.f32 %v1129_v10  ;;  %v1133_v13 = vadd.f32 1.0, %v1132_v11  ;;  %vm1136_vm4 = vcmp.lt.f32.partialorder %v1135_v14, 0.0004427343  ;;  %v1770_v10 = vld [vmem:[#allocation28 + $0x30] sm:$0xff]  ;;  %v1771_v11 = vld [vmem:[#allocation28 + $0x38] sm:$0xff] }
 0x53b   : > { %2650 = vset.pattern.permute.xlu1 %v3257_v0  ;;  %v1134_v17 = vmul.f32 %v2662_v8, %v1133_v13 }
 0x53c   : > { %1550 = vperm.xlu1 %2650, %v1168_v1  }
 0x540   : > { %2651 = vset.pattern.permute.xlu1 %v3252_v57  ;;  %v2399_v57 = vpack.c.bf16 %v1767_v51, %v1766_v50 }
 0x541   : > { %1587 = vperm.xlu1 %2651, %v1168_v1  }
 0x543   : > { %v2664_v15 = vpop.eup %2663 }
 0x544   : > { %v1131_v16 = vmul.f32 0.6931472, %v2664_v15 }
 0x545   : > { %2652 = vset.pattern.permute.xlu1 %v3255_v61  ;;  %v1769_v61 = vld [vmem:[#allocation28 + $0x28] sm:$0xff] }
 0x546   : > { %v1137_v22 = vsel %vm1136_vm4, %v1134_v17, %v1131_v16  ;;  %1624 = vperm.xlu1 %2652, %v1168_v1   ;;  %v1407_v17 = vsub.s32 1, %v3868_v24 }
 0x547   : > { %v1138_v23 = vsel %vm1125_vm5, %v1122_v4, %v1137_v22  ;;  %v2402_v4 = vpack.c.bf16 %v1769_v61, %v1768_v60  ;;  %v2405_v22 = vpack.c.bf16 %v1771_v11, %v1770_v10  ;;  %v1518_v60 = vsub.s32 4, %v3868_v24 }
 0x548   : > { %1139 = vst.msk [vmem:[#allocation4] sm:$0xff] %vm811_vm3, %v1138_v23 }
 0x54a   : > { %1636 = vperm.xlu1 %2652, %v3851_v56   ;;  %v2396_v56 = vpack.c.bf16 %v1765_v46, %v1764_v45 }
 0x54c   : > { %2397 = vmatpush3.bf16.msra.mxu0 %v2396_v56 }
 0x54d   : > { %2398 = vmatprep.subr.bf16.mxu0 %v3247_v9 }
 0x54f   : > { %v1144_v27 = vld [vmem:[#allocation4] sm:$0xff] }
 0x550   : > { %v1224_v28 = vrot.slane %v1144_v27, %v1223_v26  ;;  %v1217_v39 = vcombine.high %v1144_v27, %v1144_v27  ;;  %v3910_v63 = vmul.f32 %v3903_v58, %v1144_v27  ;;  %2400 = vmatpush3.bf16.msra.mxu0 %v2399_v57 }
 0x551   : > { %2401 = vmatprep.subr.bf16.mxu0 %v3247_v9 }
 0x552   : > { %v3872_v29 = vpop.permute.xlu1 %1376  ;;  %v1240_v30 = vrot.slane %v1224_v28, %v1223_v26  ;;  %v1232_v32 = vcombine.high %v1224_v28, %v1224_v28  ;;  %v1231_v20 = vrot.slane %v1217_v39, %v1223_v26  ;;  %v1415_v62 = vpop.permute.xlu0 %1414  ;;  %v3921_v13 = vrot.slane %v3910_v63, %v3875_v31 }
 0x554   : > { %v3880_v34 = vrot.slane %v1240_v30, %v3875_v31  ;;  %v1254_v35 = vrot.slane %v1232_v32, %v1223_v26  ;;  %v1262_v40 = vcombine.high %v1240_v30, %v1240_v30  ;;  %v1247_v49 = vrot.slane %v1231_v20, %v1223_v26  ;;  %2403 = vmatpush3.bf16.msra.mxu0 %v2402_v4 }
 0x555   : > { %v1233_v55 = vcombine.high %v1231_v20, %v1231_v20  ;;  %2404 = vmatprep.subr.bf16.mxu0 %v3247_v9  ;;  %v1444_v32 = vsub.s32 2, %v3868_v24  ;;  %v1555_v4 = vsub.s32 5, %v3868_v24 }
 0x556   : > { %v1306_v37 = vmul.f32 %v3880_v34, %v3877_v33  ;;  %v3887_v38 = vrot.slane %v1254_v35, %v3875_v31  ;;  %v3894_v44 = vrot.slane %v1262_v40, %v3875_v31  ;;  %v1264_v12 = vcombine.high %v1254_v35, %v1254_v35 }
 0x557   : > { %v3882_v36 = vpop.permute.xlu1 %1451  ;;  %v3906_v59 = vrot.slane %v1247_v49, %v3875_v31  ;;  %v1261_v3 = vrot.slane %v1233_v55, %v1223_v26  ;;  %v1263_v8 = vcombine.high %v1247_v49, %v1247_v49  ;;  %v3927_v18 = vpop.permute.xlu0 %1599  ;;  %v3938_v35 = vrot.slane %v3910_v63, %v1407_v17 }
 0x558   : > { %v1322_v41 = vmul.f32 1.442695, %v1306_v37  ;;  %v1308_v43 = vmul.f32 %v3887_v38, %v3877_v33  ;;  %v1310_v53 = vmul.f32 %v3894_v44, %v3877_v33  ;;  %v3901_v54 = vrot.slane %v1264_v12, %v3875_v31  ;;  %2406 = vmatpush3.bf16.msra.mxu0 %v2405_v22 }
 0x559   : > { %v1314_v7 = vmul.f32 %v3906_v59, %v3877_v33  ;;  %v3924_v15 = vrot.slane %v1261_v3, %v3875_v31  ;;  %v3931_v25 = vrot.slane %v1263_v8, %v3875_v31  ;;  %v1265_v28 = vcombine.high %v1261_v3, %v1261_v3 }
 0x55a   : > { %2665 = vpow2.f32 %v1322_v41  ;;  %v1326_v48 = vmul.f32 1.442695, %v1308_v43  ;;  %v1330_v1 = vmul.f32 1.442695, %v1310_v53  ;;  %v1312_v2 = vmul.f32 %v3901_v54, %v3877_v33 }
 0x55b   : > { %v1338_v23 = vmul.f32 1.442695, %v1314_v7  ;;  %v1316_v27 = vmul.f32 %v3924_v15, %v3877_v33  ;;  %v1318_v20 = vmul.f32 %v3931_v25, %v3877_v33  ;;  %v3947_v12 = vrot.slane %v1265_v28, %v3875_v31 }
 0x55c   : > { %v3889_v42 = vpop.permute.xlu1 %1488  ;;  %2667 = vpow2.f32 %v1326_v48  ;;  %v1334_v14 = vmul.f32 1.442695, %v1312_v2  ;;  %v1436_v41 = vpop.permute.xlu0 %1435  ;;  %v3950_v45 = vrot.slane %v3910_v63, %v1444_v32  ;;  %v3975_v11 = vrot.slane %v3910_v63, %v1555_v4 }
 0x55d   : > { %2669 = vpow2.f32 %v1330_v1  ;;  %v1342_v43 = vmul.f32 1.442695, %v1316_v27  ;;  %v1346_v55 = vmul.f32 1.442695, %v1318_v20  ;;  %v1320_v56 = vmul.f32 %v3947_v12, %v3877_v33 }
 0x55e   : > { %2671 = vpow2.f32 %v1334_v14  ;;  %v1446_v49 = vmul.f32 %v3950_v45, %v1436_v41  ;;  %v3968_v33 = vrot.slane %v3910_v63, %v1518_v60  ;;  %v1592_v17 = vsub.s32 6, %v3868_v24 }
 0x55f   : > { %2673 = vpow2.f32 %v1338_v23 }
 0x560   : > { %2675 = vpow2.f32 %v1342_v43  ;;  %v3984_v27 = vrot.slane %v3910_v63, %v1592_v17 }
 0x561   : > { %v3896_v47 = vpop.permute.xlu1 %1525  ;;  %2677 = vpow2.f32 %v1346_v55 }
 0x564   : > { %v2666_v5 = vpop.eup %2665 }
 0x565   : > { %v1354_v19 = vmul.f32 %v2666_v5, %v1142_v6  ;;  %v1350_v5 = vmul.f32 1.442695, %v1320_v56 }
 0x566   : > { %v3912_v0 = vpop.permute.xlu1 %1562  ;;  %v2668_v30 = vpop.eup %2667 }
 0x567   : > { %v2670_v48 = vpop.eup %2669  ;;  %2679 = vpow2.f32 %v1350_v5 }
 0x568   : > { %v2672_v61 = vpop.eup %2671 }
 0x569   : > { %v2674_v7 = vpop.eup %2673 }
 0x56b   : > { %v1359_v16 = vpop.permute.xlu1 %1358 }
 0x56c   : > { %v1370_v21 = vmul.f32 %v3921_v13, %v1359_v16 }
 0x56e   : > { %v1372_v26 = vadd.f32 %v1370_v21, %v1354_v19  ;;  %v2676_v19 = vpop.eup %2675 }
 0x56f   : > { %v2678_v28 = vpop.eup %2677 }
 0x570   : > { %v3941_v37 = vmul.f32 %v3872_v29, %v1372_v26  ;;  %v1395_v39 = vmul.f32 %v2668_v30, %v1372_v26  ;;  %v1399_v40 = vpop.permute.xlu1 %1398  ;;  %v1481_v29 = vsub.s32 3, %v3868_v24 }
 0x571   : > { %v1409_v9 = vmul.f32 %v3938_v35, %v1399_v40  ;;  %v2680_v43 = vpop.eup %2679 }
 0x572   : > { %v3959_v57 = vrot.slane %v3910_v63, %v1481_v29 }
 0x573   : > { %v1411_v46 = vadd.f32 %v1409_v9, %v1395_v39  ;;  %v1621_v9 = vpop.permute.xlu0 %1620 }
 0x575   : > { %v3954_v50 = vmul.f32 %v1415_v62, %v1411_v46  ;;  %v1432_v51 = vmul.f32 %v2670_v48, %v1411_v46  ;;  %v1473_v53 = vpop.permute.xlu1 %1472  ;;  %v1141_v48 = vld [vmem:[#allocation25 + $0x8] sm:$0xff] }
 0x576   : > { %v1483_v62 = vmul.f32 %v3959_v57, %v1473_v53  ;;  %v1309_v55 = vmul.f32 %v3887_v38, %v1141_v48 }
 0x577   : > { %v1448_v31 = vadd.f32 %v1446_v49, %v1432_v51  ;;  %v1307_v51 = vmul.f32 %v3880_v34, %v1141_v48 }
 0x579   : > { %v3963_v1 = vmul.f32 %v3882_v36, %v1448_v31  ;;  %v1469_v2 = vmul.f32 %v2672_v61, %v1448_v31  ;;  %v1311_v31 = vmul.f32 %v3894_v44, %v1141_v48 }
 0x57a   : > { %v1510_v3 = vpop.permute.xlu1 %1509 }
 0x57b   : > { %v1485_v6 = vadd.f32 %v1483_v62, %v1469_v2  ;;  %v1520_v36 = vmul.f32 %v3968_v33, %v1510_v3  ;;  %v1332_v61 = vmul.f32 1.442695, %v1311_v31  ;;  %v1313_v2 = vmul.f32 %v3901_v54, %v1141_v48  ;;  %v1143_v3 = vld [vmem:[#allocation2 + $0x8] sm:$0xff] }
 0x57c   : > { %v1317_v54 = vmul.f32 %v3924_v15, %v1141_v48  ;;  %v1423_v15 = vsel %vm811_vm3, %v3954_v50, 0.0 }
 0x57d   : > { %v3971_v8 = vmul.f32 %v3889_v42, %v1485_v6  ;;  %v1506_v10 = vmul.f32 %v2674_v7, %v1485_v6  ;;  %v1629_v42 = vsub.s32 7, %v3868_v24  ;;  %v1336_v4 = vmul.f32 1.442695, %v1313_v2 }
 0x57e   : > { %v1315_v6 = vmul.f32 %v3906_v59, %v1141_v48  ;;  %v1319_v59 = vmul.f32 %v3931_v25, %v1141_v48 }
 0x57f   : > { %v1522_v14 = vadd.f32 %v1520_v36, %v1506_v10  ;;  %v1547_v16 = vpop.permute.xlu1 %1546  ;;  %v3991_v41 = vrot.slane %v3910_v63, %v1629_v42  ;;  %v1324_v63 = vmul.f32 1.442695, %v1307_v51 }
 0x580   : > { %v1557_v21 = vmul.f32 %v3975_v11, %v1547_v16  ;;  %v1340_v16 = vmul.f32 1.442695, %v1315_v6  ;;  %v1348_v25 = vmul.f32 1.442695, %v1319_v59 }
 0x581   : > { %v3980_v22 = vmul.f32 %v3896_v47, %v1522_v14  ;;  %v1543_v23 = vmul.f32 %v2676_v19, %v1522_v14  ;;  %v1631_v24 = vmul.f32 %v3991_v41, %v1621_v9  ;;  %2681 = vpow2.f32 %v1324_v63 }
 0x582   : > { %v1386_v19 = vsel %vm811_vm3, %v3941_v37, 0.0 }
 0x583   : > { %v1559_v26 = vadd.f32 %v1557_v21, %v1543_v23 }
 0x584   : > { %v1584_v30 = vpop.permute.xlu1 %1583 }
 0x585   : > { %v3987_v32 = vmul.f32 %v3912_v0, %v1559_v26  ;;  %v1580_v39 = vmul.f32 %v2678_v28, %v1559_v26  ;;  %v1594_v40 = vmul.f32 %v3984_v27, %v1584_v30 }
 0x587   : > { %v1596_v47 = vadd.f32 %v1594_v40, %v1580_v39  ;;  %v1344_v40 = vmul.f32 1.442695, %v1317_v54 }
 0x589   : > { %v3995_v20 = vmul.f32 %v3927_v18, %v1596_v47  ;;  %v1382_v46 = vpop.permute.xlu1 %1381  ;;  %v1617_v29 = vmul.f32 %v2680_v43, %v1596_v47  ;;  %v1328_v18 = vmul.f32 1.442695, %v1309_v55 }
 0x58b   : > { %v3997_v49 = vadd.f32 %v1631_v24, %v1617_v29  ;;  %2683 = vpow2.f32 %v1328_v18  ;;  %v2682_v62 = vpop.eup %2681  ;;  %v1321_v18 = vmul.f32 %v3947_v12, %v1141_v48 }
 0x58c   : > { %2685 = vpow2.f32 %v1332_v61  ;;  %v1355_v5 = vmul.f32 %v2682_v62, %v1143_v3  ;;  %v1460_v61 = vsel %vm811_vm3, %v3963_v1, 0.0  ;;  %v1497_v1 = vsel %vm811_vm3, %v3971_v8, 0.0 }
 0x58d   : > { %1669 = vst.msk [vmem:[#allocation2] sm:$0xff] %vm811_vm3, %v3997_v49  ;;  %2687 = vpow2.f32 %v1336_v4 }
 0x58e   : > { %v1419_v0 = vpop.permute.xlu1 %1418  ;;  %2689 = vpow2.f32 %v1340_v16 }
 0x58f   : > { %2691 = vpow2.f32 %v1344_v40 }
 0x590   : > { %2693 = vpow2.f32 %v1348_v25 }
 0x593   : > { %v4002_v53 = vpop.permute.xlu1 %1492 }
 0x595   : > { %v2684_v10 = vpop.eup %2683 }
 0x596   : > { %v2686_v42 = vpop.eup %2685 }
 0x597   : > { %v2688_v24 = vpop.eup %2687 }
 0x598   : > { %v4005_v56 = vpop.permute.xlu1 %1566 }
 0x59d   : > { %v4008_v60 = vpop.permute.xlu1 %1603 }
 0x5a2   : > { %v1364_v34 = vpop.permute.xlu1 %1363 }
 0x5a3   : > { %v1371_v38 = vmul.f32 %v3921_v13, %v1364_v34  ;;  %v2690_v34 = vpop.eup %2689 }
 0x5a4   : > { %v2692_v54 = vpop.eup %2691 }
 0x5a5   : > { %v1373_v7 = vadd.f32 %v1371_v38, %v1355_v5  ;;  %v1352_v5 = vmul.f32 1.442695, %v1321_v18 }
 0x5a7   : > { %v1385_v44 = vmul.f32 %v1382_v46, %v1373_v7  ;;  %v1396_v36 = vmul.f32 %v2684_v10, %v1373_v7  ;;  %v1403_v14 = vpop.permute.xlu1 %1402  ;;  %v1456_v46 = vpop.permute.xlu0 %1455  ;;  %2695 = vpow2.f32 %v1352_v5  ;;  %v1608_v5 = vsel %vm811_vm3, %v3995_v20, 0.0 }
 0x5a8   : > { %v1410_v17 = vmul.f32 %v3938_v35, %v1403_v14 }
 0x5a9   : > { %v1387_v21 = vsel %vm811_vm3, %v1385_v44, 0.0 }
 0x5aa   : > { %v1388_v23 = vadd.f32 %v1387_v21, %v1386_v19  ;;  %v1412_v13 = vadd.f32 %v1410_v17, %v1396_v36 }
 0x5ab   : > { %v1530_v19 = vpop.permute.xlu0 %1529 }
 0x5ac   : > { %v1389_v26 = vrot.slane %v1388_v23, 4  ;;  %v1422_v28 = vmul.f32 %v1419_v0, %v1412_v13  ;;  %v1433_v30 = vmul.f32 %v2686_v42, %v1412_v13  ;;  %v1440_v39 = vpop.permute.xlu1 %1439 }
 0x5ad   : > { %v1447_v35 = vmul.f32 %v3950_v45, %v1440_v39 }
 0x5ae   : > { %v1390_v9 = vadd.f32 %v1389_v26, %v1388_v23  ;;  %v1424_v37 = vsel %vm811_vm3, %v1422_v28, 0.0  ;;  %v1534_v28 = vsel %vm811_vm3, %v3980_v22, 0.0 }
 0x5af   : > { %v1425_v47 = vadd.f32 %v1424_v37, %v1423_v15  ;;  %v1449_v43 = vadd.f32 %v1447_v35, %v1433_v30  ;;  %v2694_v37 = vpop.eup %2693 }
 0x5b0   : > { %v1391_v29 = vrot.slane %v1390_v9, 2 }
 0x5b1   : > { %v1426_v51 = vrot.slane %v1425_v47, 4  ;;  %v1459_v0 = vmul.f32 %v1456_v46, %v1449_v43  ;;  %v1470_v63 = vmul.f32 %v2688_v24, %v1449_v43  ;;  %v1477_v55 = vpop.permute.xlu1 %1476 }
 0x5b2   : > { %v1392_v45 = vadd.f32 %v1391_v29, %v1390_v9  ;;  %v1484_v31 = vmul.f32 %v3959_v57, %v1477_v55 }
 0x5b3   : > { %v1427_v50 = vadd.f32 %v1426_v51, %v1425_v47  ;;  %v1461_v2 = vsel %vm811_vm3, %v1459_v0, 0.0  ;;  %v1571_v0 = vsel %vm811_vm3, %v3987_v32, 0.0 }
 0x5b4   : > { %v1462_v62 = vadd.f32 %v1461_v2, %v1460_v61  ;;  %v1486_v3 = vadd.f32 %v1484_v31, %v1470_v63  ;;  %v1393_v38 = vrot.slane %v1392_v45, 1  ;;  %v2696_v61 = vpop.eup %2695 }
 0x5b5   : > { %v1428_v4 = vrot.slane %v1427_v50, 2 }
 0x5b6   : > { %v1463_v6 = vrot.slane %v1462_v62, 4  ;;  %v1496_v7 = vmul.f32 %v4002_v53, %v1486_v3  ;;  %v1507_v12 = vmul.f32 %v2690_v34, %v1486_v3  ;;  %v1514_v48 = vpop.permute.xlu1 %1513  ;;  %v1394_v21 = vadd.f32 %v1393_v38, %v1392_v45 }
 0x5b7   : > { %v1429_v10 = vadd.f32 %v1428_v4, %v1427_v50  ;;  %v1521_v57 = vmul.f32 %v3968_v33, %v1514_v48 }
 0x5b8   : > { %v1464_v44 = vadd.f32 %v1463_v6, %v1462_v62  ;;  %v1498_v36 = vsel %vm811_vm3, %v1496_v7, 0.0 }
 0x5b9   : > { %v1430_v14 = vrot.slane %v1429_v10, 1  ;;  %v1499_v16 = vadd.f32 %v1498_v36, %v1497_v1  ;;  %v1523_v17 = vadd.f32 %v1521_v57, %v1507_v12  ;;  %v1641_v57 = vpop.permute.xlu0 %1640 }
 0x5ba   : > { %v1465_v23 = vrot.slane %v1464_v44, 2 }
 0x5bb   : > { %v1431_v53 = vadd.f32 %v1430_v14, %v1429_v10  ;;  %v1500_v13 = vrot.slane %v1499_v16, 4  ;;  %v1533_v42 = vmul.f32 %v1530_v19, %v1523_v17  ;;  %v1544_v59 = vmul.f32 %v2692_v54, %v1523_v17  ;;  %v1551_v33 = vpop.permute.xlu1 %1550 }
 0x5bc   : > { %v1466_v26 = vadd.f32 %v1465_v23, %v1464_v44  ;;  %v1558_v8 = vmul.f32 %v3975_v11, %v1551_v33  ;;  %v2181_v11 = vmul.f32 -1.442695, %v3849_v52 }
 0x5bd   : > { %v1655_v30 = vsel %vm1654_vm6, %v1394_v21, %v1431_v53  ;;  %v1501_v39 = vadd.f32 %v1500_v13, %v1499_v16  ;;  %v1535_v40 = vsel %vm811_vm3, %v1533_v42, 0.0 }
 0x5be   : > { %v1467_v35 = vrot.slane %v1466_v26, 1  ;;  %v1536_v15 = vadd.f32 %v1535_v40, %v1534_v28  ;;  %v1560_v9 = vadd.f32 %v1558_v8, %v1544_v59  ;;  %2697 = vpow2.f32 %v2181_v11 }
 0x5bf   : > { %v1502_v47 = vrot.slane %v1501_v39, 2 }
 0x5c0   : > { %v1468_v43 = vadd.f32 %v1467_v35, %v1466_v26  ;;  %v1537_v24 = vrot.slane %v1536_v15, 4  ;;  %v1570_v46 = vmul.f32 %v4005_v56, %v1560_v9  ;;  %v1581_v29 = vmul.f32 %v2694_v37, %v1560_v9  ;;  %v1588_v25 = vpop.permute.xlu1 %1587 }
 0x5c1   : > { %v1503_v51 = vadd.f32 %v1502_v47, %v1501_v39  ;;  %v1595_v22 = vmul.f32 %v3984_v27, %v1588_v25  ;;  %v2180_v47 = vld [vmem:[#allocation26] ss:$0 sm:$0xff] }
 0x5c2   : > { %v1657_v63 = vsel %vm1656_vm7, %v1655_v30, %v1468_v43  ;;  %v1538_v55 = vadd.f32 %v1537_v24, %v1536_v15  ;;  %v1572_v18 = vsel %vm811_vm3, %v1570_v46, 0.0  ;;  %v1754_v24 = vmul.f32 %v2180_v47, %v3903_v58 }
 0x5c3   : > { %v1504_v45 = vrot.slane %v1503_v51, 1  ;;  %v1573_v31 = vadd.f32 %v1572_v18, %v1571_v0  ;;  %v1597_v50 = vadd.f32 %v1595_v22, %v1581_v29 }
 0x5c4   : > { %v1539_v56 = vrot.slane %v1538_v55, 2 }
 0x5c5   : > { %v1505_v2 = vadd.f32 %v1504_v45, %v1503_v51  ;;  %v1574_v62 = vrot.slane %v1573_v31, 4  ;;  %v1607_v3 = vmul.f32 %v4008_v60, %v1597_v50  ;;  %v1618_v34 = vmul.f32 %v2696_v61, %v1597_v50  ;;  %v1625_v4 = vpop.permute.xlu1 %1624 }
 0x5c6   : > { %v1540_v27 = vadd.f32 %v1539_v56, %v1538_v55  ;;  %v1632_v32 = vmul.f32 %v3991_v41, %v1625_v4 }
 0x5c7   : > { %v1659_v38 = vsel %vm1658_vm8, %v1657_v63, %v1505_v2  ;;  %v1575_v6 = vadd.f32 %v1574_v62, %v1573_v31  ;;  %v1609_v7 = vsel %vm811_vm3, %v1607_v3, 0.0 }
 0x5c8   : > { %v1541_v12 = vrot.slane %v1540_v27, 1  ;;  %v1610_v48 = vadd.f32 %v1609_v7, %v1608_v5  ;;  %v1634_v10 = vadd.f32 %v1632_v32, %v1618_v34  ;;  %v2698_v59 = vpop.eup %2697 }
 0x5c9   : > { %v1576_v1 = vrot.slane %v1575_v6, 2  ;;  %v1637_v60 = vpop.permute.xlu1 %1636  ;;  %v1759_v30 = vadd.f32 1.0, %v2698_v59 }
 0x5ca   : > { %v1542_v44 = vadd.f32 %v1541_v12, %v1540_v27  ;;  %v1611_v36 = vrot.slane %v1610_v48, 4  ;;  %v1644_v14 = vmul.f32 %v1641_v57, %v1634_v10  ;;  %1670 = vst.msk [vmem:[#allocation2 + $0x8] sm:$0xff] %vm811_vm3, %v1634_v10  ;;  %v1643_v41 = vmul.f32 %v1637_v60, %v3997_v49 }
 0x5cb   : > { %v1577_v16 = vadd.f32 %v1576_v1, %v1575_v6  ;;  %2699 = vrcp.f32 %v1759_v30 }
 0x5cc   : > { %v1661_v20 = vsel %vm1660_vm9, %v1659_v38, %v1542_v44  ;;  %v1612_v17 = vadd.f32 %v1611_v36, %v1610_v48  ;;  %v1646_v54 = vsel %vm811_vm3, %v1644_v14, 0.0  ;;  %v1645_v19 = vsel %vm811_vm3, %v1643_v41, 0.0 }
 0x5cd   : > { %v1578_v21 = vrot.slane %v1577_v16, 1  ;;  %v1647_v23 = vadd.f32 %v1646_v54, %v1645_v19 }
 0x5ce   : > { %v1613_v53 = vrot.slane %v1612_v17, 2 }
 0x5cf   : > { %v1579_v13 = vadd.f32 %v1578_v21, %v1577_v16  ;;  %v1648_v42 = vrot.slane %v1647_v23, 4 }
 0x5d0   : > { %v1614_v33 = vadd.f32 %v1613_v53, %v1612_v17 }
 0x5d1   : > { %v1663_v26 = vsel %vm1662_vm10, %v1661_v20, %v1579_v13  ;;  %v1649_v8 = vadd.f32 %v1648_v42, %v1647_v23 }
 0x5d2   : > { %v1615_v28 = vrot.slane %v1614_v33, 1 }
 0x5d3   : > { %v1650_v49 = vrot.slane %v1649_v8, 2 }
 0x5d4   : > { %v1616_v39 = vadd.f32 %v1615_v28, %v1614_v33 }
 0x5d5   : > { %v1651_v40 = vadd.f32 %v1650_v49, %v1649_v8  ;;  %v2700_v43 = vpop.eup %2699 }
 0x5d6   : > { %v1665_v35 = vsel %vm1664_vm11, %v1663_v26, %v1616_v39  ;;  %v1762_v29 = vmul.f32 %v2700_v43, %v3849_v52 }
 0x5d7   : > { %v1652_v15 = vrot.slane %v1651_v40, 1 }
 0x5d9   : > { %v1653_v9 = vadd.f32 %v1652_v15, %v1651_v40 }
 0x5db   : > { %v1667_v37 = vsel %vm1666_vm12, %v1665_v35, %v1653_v9 }
 0x5dc   : > { %1668 = vst.msk [vmem:[#allocation7] sm:$0xff] %vm811_vm3, %v1667_v37 }
 0x5e3   : > { %v1745_v46 = vld [vmem:[#allocation7] sm:$0xff] }
 0x5e4   : > { %v1755_v25 = vadd.f32 %v1754_v24, %v1745_v46 }
 0x5e6   : > { %v1763_v11 = vmul.f32 %v1762_v29, %v1755_v25 }
 0x5e8   : > { %2329 = vmatmul.mubr.msk.f32.vlgmr.msra.gmra.mrb[6].mxu0 %vm811_vm3, %v1763_v11 }
 0x5e9   : > { %3082 = shalt.err (!%p3079_p3)
}
 0x5ea   : > { %s3083_s24 = scalar_lea.hbm %s4066_s16, 128  ;;  %s3087_s21 = scalar_lea.hbm %s4244_s5, 512 }
 0x5eb   : > { %p3084_p10 = scmp.ne.s32.totalorder %s4066_s16, %s3083_s24  ;;  %p3088_p2 = scmp.lt.u32.totalorder %s4066_s16, %s4244_s5 }
 0x5ec   : > { %p3089_p11 = scmp.lt.u32.totalorder %s3087_s21, %s3083_s24  ;;  %p3091_p12 = scmp.lt.u32.totalorder %s3083_s24, %s4066_s16 }
 0x5ed   : > { %p3085_p13 = pnand %p3084_p10, %p4245_p7 }
 0x5ee   : > { %p3090_p9 = por %p3089_p11, %p3088_p2 }
 0x5ef   : > { %p3086_p0 = pneg %p3085_p13 }
 0x5f0   : > { %p3092_p8 = por %p3091_p12, %p3090_p9 }
 0x5f2   : > { %p3093_p4 = pnand %p3092_p8, %p3086_p0 }
 0x5f4   : > { %3096 = shalt.err (!%p3093_p4)
}
 0x5f5   : > { %2456 = dma.vmem_to_hbm [thread:$0]  (%p4245_p7), %s1883_s14, 128, %s4066_s16, %s1852_s7  }
 0x5f6   : > { %s1867_s1 = sshll.u32 %s696_s26, 4  ;;  %s4246_s6 = sld [smem:[#allocation58_spill]]  ;;  %s4097_s1 = int_to_ptr.vmem [resolvable:$true] %s1867_s1 }
 0x5f7   : > { %s1847_s24 = scalar_lea.sflag [#allocation10], %s3762_s10  ;;  %s3097_s16 = scalar_lea.vmem %s4097_s1, 128 }
 0x5f8   : > { %p3098_p6 = scmp.ne.s32.totalorder %s4097_s1, %s3097_s16  ;;  %s3260_s13 = smov [#allocation29]  }
 0x5f9   : > { %s3101_s14 = sshll.u32 %s3260_s13, 4  ;;  %s3102_s14 = int_to_ptr.vmem [resolvable:$false] %s3101_s14 }
 0x5fa   : > { %p3099_p5 = pnand %p3098_p6, %p4245_p7  ;;  %p3104_p3 = scmp.lt.s32.totalorder %s4097_s1, %s3102_s14 }
 0x5fc   : > { %s4095_s21 = scalar_lea.hbm %s4246_s6, %s2186_s25  ;;  %p3100_p1 = pneg %p3099_p5 }
 0x5fd   : > { %s3103_s25 = scalar_lea.vmem %s3102_s14, 256 }
 0x5fe   : > { %p3105_p10 = scmp.lt.s32.totalorder %s3103_s25, %s3097_s16 }
 0x600   : > { %p3106_p13 = por %p3105_p10, %p3104_p3 }
 0x602   : > { %p3107_p0 = pnand %p3106_p13, %p3100_p1 }
 0x6bb   : > { %v1841_v52 = vpop.f32.mrb[6].mxu0 }
 0x6bc   : > { %1845 = vst.msk [vmem:[%s696_s26] sm:$0xff] %vm715_vm1, %v1841_v52  ;;  %v2330_v58 = vpop.f32.mrb[7].mxu0 }
 0x6bd   : > { %3110 = shalt.err (!%p3107_p0)
}
 0x6be   : > { %s3111_s10 = scalar_lea.hbm %s4095_s21, 128  ;;  %s3115_s7 = scalar_lea.hbm %s4246_s6, 512 }
 0x6bf   : > { %p3112_p2 = scmp.ne.s32.totalorder %s4095_s21, %s3111_s10  ;;  %p3116_p12 = scmp.lt.u32.totalorder %s4095_s21, %s4246_s6 }
 0x6c0   : > { %p3117_p8 = scmp.lt.u32.totalorder %s3115_s7, %s3111_s10  ;;  %p3119_p6 = scmp.lt.u32.totalorder %s3111_s10, %s4095_s21 }
 0x6c1   : > { %p3113_p11 = pnand %p3112_p2, %p4245_p7 }
 0x6c2   : > { %p3118_p4 = por %p3117_p8, %p3116_p12 }
 0x6c3   : > { %p3114_p9 = pneg %p3113_p11 }
 0x6c4   : > { %p3120_p5 = por %p3119_p6, %p3118_p4 }
 0x6c6   : > { %p3121_p1 = pnand %p3120_p5, %p3114_p9 }
 0x6c8   : > { %3124 = shalt.err (!%p3121_p1)
}
 0x6c9   : > { %2455 = dma.vmem_to_hbm [thread:$0]  (%p4245_p7), %s4097_s1, 128, %s4095_s21, %s1847_s24  }
 0x6ca PF: > { %p2530_p3 = scmp.ge.s32.totalorder %s3227_s20, 2  ;;  %s1894_s4 = sand.u32 1, %s3199_s29  }
 0x6cb   : > { %p4247_p10 = scmp.ne.s32.totalorder %s4221_s3, 0  ;;  %s1895_s9 = scalar_lea.sflag [#allocation10], %s1894_s4 }
 0x6cd   : > { %p2501_p13 = pnand %p2530_p3, %p4247_p10 }
 0x6cf   : > { %3190 = dma.done.wait (!%p2501_p13), %s1895_s9, 128  }
 0x6d0   : > { %3192 = vsyncadd (!%p2501_p13), %s1895_s9, 4294967168  ;;  %s1904_s16 = scalar_lea.sflag [#allocation31], %s1894_s4 }
 0x6d1   : > { %3194 = dma.done.wait (!%p2501_p13), %s1904_s16, 128  }
 0x6d2   : > { %3196 = vsyncadd (!%p2501_p13), %s1904_s16, 4294967168  ;;  %s42_s20 = sadd.s32 1, %s3227_s20   ;;  %s4248_s22 = smov %s4257_s17 }
 0x6d3   : > { %p39_p0 = scmp.ge.s32.totalorder %s42_s20, 6   ;;  %s4249_s29 = smov %s3203_s30 }
 0x6d4   : > { %s4250_s30 = smov %s3207_s15  ;;  %s4251_s15 = smov %s3688_s2 }
 0x6d5   : > { %s4252_s16 = smov %s3219_s18  ;;  %s4253_s17 = smov %s3223_s19 }
 0x6d6   : > { %s4254_s18 = smov %s4248_s22  ;;  %s4255_s19 = smov %s4261_s28 }
 0x6d7   :  { %41 = sbr.rel (!%p39_p0) target bundleno = 31 (0x1f), region = 196 }
 0x6de   :  { %1909 = vsyncpa [#allocation9], 1 }
 0x6df   :  { %1911 = vsyncpa [#allocation9 + $0x1], 1 }
 0x6e0   :  { %1912 = vsyncpa [#allocation12], 1 }
 0x6e1   :  { %1914 = vsyncpa [#allocation12 + $0x1], 1 }
 0x6e2   :  { %1915 = vsyncpa [#allocation15], 1 }
 0x6e3   :  { %1916 = vsyncpa [#allocation18], 1 }
 0x6e4   :  { %1917 = vsyncpa [#allocation21], 1 }
 0x6e5   :  { %1918 = vsyncpa [#allocation24], 1 }
 0x6e6   :  { %1919 = vsyncpa [#allocation27], 1 }
 0x6e7   :  { %1920 = vsyncpa [#allocation10], 1 }
 0x6e8   :  { %1922 = vsyncpa [#allocation10 + $0x1], 1 }
 0x6e9   :  { %1923 = vsyncpa [#allocation31], 1 }
 0x6ea   :  { %1925 = vsyncpa [#allocation31 + $0x1], 1 }

// kernel: tpu_custom_call.1
= control target key start
LH: loop header
LB: loop body
LE: loop exit
PB: predicated region body
PF: predicated region fallthrough
CT: control target
= control target key end

     0   :  { %s4152_s0 = inlined_call_operand.hbm [shape: f32[2,16,32], index: 0, kind: input, shape index: {}]   ;;  %s4153_s1 = inlined_call_operand.hbm [shape: f32[2,16,32], index: 1, kind: input, shape index: {}]   ;;  %s4154_s2 = inlined_call_operand.hbm [shape: f32[1,32], index: 2, kind: input, shape index: {}]   ;;  %s4155_s3 = inlined_call_operand.hbm [shape: f32[32,64], index: 3, kind: input, shape index: {}]   ;;  %s4156_s4 = inlined_call_operand.hbm [shape: f32[32,64], index: 4, kind: input, shape index: {}]   ;;  %s4157_s5 = inlined_call_operand.hbm [shape: f32[4,64], index: 5, kind: input, shape index: {}]   ;;  %s4158_s6 = inlined_call_operand.hbm [shape: f32[1,64], index: 6, kind: input, shape index: {}]   ;;  %s4159_s7 = inlined_call_operand.hbm [shape: f32[64,384], index: 7, kind: input, shape index: {}]   ;;  %s4160_s8 = inlined_call_operand.hbm [shape: f32[128,64], index: 8, kind: input, shape index: {}]   ;;  %s4161_s9 = inlined_call_operand.hbm [shape: f32[1,64], index: 9, kind: input, shape index: {}]   ;;  %s4162_s10 = inlined_call_operand.hbm [shape: f32[16,64], index: 10, kind: input, shape index: {}]   ;;  %s4163_s11 = inlined_call_operand.hbm [shape: f32[1,64], index: 11, kind: input, shape index: {}]   ;;  %s4164_s12 = inlined_call_operand.hbm [shape: f32[64,32], index: 12, kind: input, shape index: {}]   ;;  %s4165_s13 = inlined_call_operand.hbm [shape: f32[2,16,32], index: 13, kind: output, shape index: {0}]   ;;  %s4166_s14 = inlined_call_operand.hbm [shape: f32[2,16,32], index: 14, kind: output, shape index: {1}]  }
   0x1   :  { %4183 = sst [smem:[#allocation46_spill]] %s4152_s0 }
   0x2   :  { %4184 = sst [smem:[#allocation47_spill]] %s4153_s1 }
   0x3   :  { %4185 = sst [smem:[#allocation48_spill]] %s4154_s2 }
   0x4   :  { %4186 = sst [smem:[#allocation49_spill]] %s4155_s3 }
   0x5   :  { %4187 = sst [smem:[#allocation50_spill]] %s4156_s4 }
   0x6   :  { %4188 = sst [smem:[#allocation51_spill]] %s4157_s5 }
   0x7   :  { %4189 = sst [smem:[#allocation52_spill]] %s4158_s6 }
   0x8   :  { %4190 = sst [smem:[#allocation53_spill]] %s4159_s7 }
   0x9   :  { %4191 = sst [smem:[#allocation54_spill]] %s4160_s8 }
   0xa   :  { %4192 = sst [smem:[#allocation55_spill]] %s4161_s9 }
   0xb   :  { %4193 = sst [smem:[#allocation56_spill]] %s4162_s10 }
   0xc   :  { %4194 = sst [smem:[#allocation57_spill]] %s4163_s11 }
   0xd   :  { %4195 = sst [smem:[#allocation58_spill]] %s4165_s13 }
   0xe   :  { %4196 = sst [smem:[#allocation59_spill]] %s4166_s14 }
   0xf   :  { %20 = vsyncpa [#allocation9], 0 }
  0x10   :  { %22 = vsyncpa [#allocation9 + $0x1], 0 }
  0x11   :  { %23 = vsyncpa [#allocation12], 0 }
  0x12   :  { %25 = vsyncpa [#allocation12 + $0x1], 0 }
  0x13   :  { %26 = vsyncpa [#allocation15], 0 }
  0x14   :  { %27 = vsyncpa [#allocation18], 0 }
  0x15   :  { %28 = vsyncpa [#allocation21], 0 }
  0x16   :  { %29 = vsyncpa [#allocation24], 0 }
  0x17   :  { %30 = vsyncpa [#allocation27], 0 }
  0x18   :  { %31 = vsyncpa [#allocation10], 0 }
  0x19   :  { %33 = vsyncpa [#allocation10 + $0x1], 0 }
  0x1a   :  { %34 = vsyncpa [#allocation31], 0 }
  0x1b   :  { %36 = vsyncpa [#allocation31 + $0x1], 0  ;;  %s3336_s29 = smov 0   ;;  %s3338_s30 = smov 0  }
  0x1c   :  { %s3340_s15 = smov 0   ;;  %s3342_s16 = smov 0  }
  0x1d   :  { %s3344_s17 = smov 0   ;;  %s3346_s18 = smov 0  }
  0x1e   :  { %s3348_s19 = smov 0   ;;  %s3350_s20 = smov 0  }
  0x1f LB: > { %4197 = sst [smem:[#allocation42_spill]] %s3211_s16  ;;  %s3377_s21 = sadd.s32 4294967295, %s3227_s20   ;;  %s3227_s20 = sphi %s3350_s20, %s42_s20   ;;  %s3223_s19 = sphi %s3348_s19, %s4255_s19   ;;  %s3219_s18 = sphi %s3346_s18, %s4254_s18   ;;  %s3215_s17 = sphi %s3344_s17, %s4253_s17   ;;  %s3211_s16 = sphi %s3342_s16, %s4252_s16   ;;  %s3207_s15 = sphi %s3340_s15, %s4251_s15   ;;  %s3203_s30 = sphi %s3338_s30, %s4250_s30   ;;  %s3199_s29 = sphi %s3336_s29, %s4249_s29  }
  0x20   : > { %4198 = sst [smem:[#allocation43_spill]] %s3215_s17  ;;  %p2132_p0 = scmp.ge.s32.totalorder %s3227_s20, 1 }
  0x21   : > { %4199 = sst [smem:[#allocation44_spill]] %s3377_s21  ;;  %p4171_p1 = scmp.eq.s32.totalorder %s3377_s21, 0 }
  0x22   : > { %p402_p2 = scmp.lt.s32.totalorder %s3227_s20, 5  ;;  %s3229_s23 = smov [#allocation13]  }
  0x23   : > { %s415_s24 = sshll.u32 %s3229_s23, 4  ;;  %s3230_s25 = smov [#allocation14]   ;;  %s416_s24 = int_to_ptr.vmem [resolvable:$true] %s415_s24 }
  0x24   : > { %p3382_p3 = pnand %p2132_p0, %p402_p2  ;;  %s425_s26 = sshll.u32 %s3230_s25, 4  ;;  %s3394_s26 = int_to_ptr.vmem [resolvable:$true] %s425_s26 }
  0x25   : > { %s3231_s28 = smov [#allocation17]   ;;  %s4203_s2 = sld [smem:[#allocation48_spill]] }
  0x26   : > { %s4200_s22 = scalar_select %p3382_p3, 1, 0 }
  0x27   : > { %p2459_p4 = pneg %p3382_p3  ;;  %s3396_s13 = sshll.u32 %s3231_s28, 4  ;;  %s453_s13 = int_to_ptr.vmem [resolvable:$true] %s3396_s13 }
  0x28   : > { %4201 = sst [smem:[#allocation45_spill]] %s4200_s22 }
  0x29   : > { %p3390_p5 = pnand %p2459_p4, %p4171_p1 }
  0x2b   : > { %s2701_s23 = scalar_lea.hbm %s4203_s2, 16  ;;  %p3406_p7 = pneg %p3390_p5 }
  0x2c   : > { %p2702_p6 = scmp.ne.s32.totalorder %s4203_s2, %s2701_s23  ;;  %p2708_p10 = scmp.lt.u32.totalorder %s2701_s23, %s4203_s2 }
  0x2e   : > { %p2704_p8 = pnand %p3406_p7, %p2702_p6 }
  0x30   : > { %p2705_p9 = pneg %p2704_p8 }
  0x32   : > { %p2710_p11 = pnand %p2708_p10, %p2705_p9 }
  0x34   : > { %2713 = shalt.err (!%p2710_p11)
}
  0x35   : > { %s2714_s14 = scalar_lea.vmem %s416_s24, 16  ;;  %s2721_s16 = scalar_lea.vmem %s416_s24, 32 }
  0x36   : > { %p2715_p12 = scmp.ne.s32.totalorder %s416_s24, %s2714_s14  ;;  %p2722_p2 = scmp.lt.s32.totalorder %s416_s24, %s416_s24 }
  0x37   : > { %p2723_p4 = scmp.lt.s32.totalorder %s2721_s16, %s2714_s14 }
  0x38   : > { %p2717_p13 = pnand %p2715_p12, %p3406_p7 }
  0x39   : > { %p2724_p1 = por %p2723_p4, %p2722_p2 }
  0x3a   : > { %p2718_p0 = pneg %p2717_p13 }
  0x3c   : > { %p2725_p3 = pnand %p2724_p1, %p2718_p0 }
  0x3e   : > { %2728 = shalt.err (!%p2725_p3)
}
  0x3f   : > { %2462 = dma.hbm_to_vmem [thread:$0]  (!%p3390_p5), %s4203_s2, 16, %s416_s24, [#allocation12]  }
  0x40   : > { %s4205_s3 = sld [smem:[#allocation49_spill]] }
  0x46   : > { %s2729_s28 = scalar_lea.hbm %s4205_s3, 512 }
  0x47   : > { %p2730_p6 = scmp.ne.s32.totalorder %s4205_s3, %s2729_s28  ;;  %p2736_p1 = scmp.lt.u32.totalorder %s2729_s28, %s4205_s3 }
  0x49   : > { %p2732_p8 = pnand %p2730_p6, %p3406_p7 }
  0x4b   : > { %p2733_p9 = pneg %p2732_p8 }
  0x4d   : > { %p2738_p3 = pnand %p2736_p1, %p2733_p9 }
  0x4f   : > { %2741 = shalt.err (!%p2738_p3)
}
  0x50   : > { %s2742_s24 = scalar_lea.vmem %s3394_s26, 512  ;;  %p2750_p13 = scmp.lt.s32.totalorder %s3394_s26, %s3394_s26 }
  0x51   : > { %p2743_p10 = scmp.ne.s32.totalorder %s3394_s26, %s2742_s24  ;;  %p2751_p0 = scmp.lt.s32.totalorder %s2742_s24, %s2742_s24 }
  0x53   : > { %p2745_p11 = pnand %p2743_p10, %p3406_p7  ;;  %p2752_p2 = por %p2751_p0, %p2750_p13 }
  0x55   : > { %p2746_p12 = pneg %p2745_p11 }
  0x57   : > { %p2753_p4 = pnand %p2752_p2, %p2746_p12 }
  0x59   : > { %2756 = shalt.err (!%p2753_p4)
}
  0x5a   : > { %s4177_s0 = smov 128   ;;  %s4179_s21 = smov 8  }
  0x5b   : > { %2465 = dma.hbm_to_vmem [thread:$0]  (!%p3390_p5), %s4205_s3, 512, %s3394_s26, [#allocation15], %s4177_s0, %s4177_s0, %s4179_s21  }
  0x5c   : > { %s4206_s5 = sld [smem:[#allocation51_spill]] }
  0x62   : > { %s2757_s28 = scalar_lea.hbm %s4206_s5, 64 }
  0x63   : > { %p2758_p6 = scmp.ne.s32.totalorder %s4206_s5, %s2757_s28  ;;  %p2764_p1 = scmp.lt.u32.totalorder %s2757_s28, %s4206_s5 }
  0x65   : > { %p2760_p8 = pnand %p2758_p6, %p3406_p7 }
  0x67   : > { %p2761_p9 = pneg %p2760_p8 }
  0x69   : > { %p2766_p3 = pnand %p2764_p1, %p2761_p9 }
  0x6b   : > { %2769 = shalt.err (!%p2766_p3)
}
  0x6c   : > { %s2770_s17 = scalar_lea.vmem %s453_s13, 64  ;;  %p2778_p13 = scmp.lt.s32.totalorder %s453_s13, %s453_s13 }
  0x6d   : > { %p2771_p10 = scmp.ne.s32.totalorder %s453_s13, %s2770_s17  ;;  %p2779_p0 = scmp.lt.s32.totalorder %s2770_s17, %s2770_s17 }
  0x6f   : > { %p2773_p11 = pnand %p2771_p10, %p3406_p7  ;;  %p2780_p2 = por %p2779_p0, %p2778_p13 }
  0x71   : > { %p2774_p12 = pneg %p2773_p11 }
  0x73   : > { %p2781_p4 = pnand %p2780_p2, %p2774_p12 }
  0x75   : > { %2784 = shalt.err (!%p2781_p4)
}
  0x76   : > { %2471 = dma.hbm_to_vmem [thread:$0]  (!%p3390_p5), %s4206_s5, 64, %s453_s13, [#allocation18]  }
  0x77   : > { %s3234_s2 = smov [#allocation20]   ;;  %s4207_s7 = sld [smem:[#allocation53_spill]] }
  0x78   : > { %s473_s1 = sshll.u32 %s3234_s2, 4  ;;  %s474_s1 = int_to_ptr.vmem [resolvable:$true] %s473_s1 }
  0x7d   : > { %s2785_s14 = scalar_lea.hbm %s4207_s7, 3072 }
  0x7e   : > { %p2786_p6 = scmp.ne.s32.totalorder %s4207_s7, %s2785_s14  ;;  %p2792_p1 = scmp.lt.u32.totalorder %s2785_s14, %s4207_s7 }
  0x80   : > { %p2788_p8 = pnand %p2786_p6, %p3406_p7 }
  0x82   : > { %p2789_p9 = pneg %p2788_p8 }
  0x84   : > { %p2794_p3 = pnand %p2792_p1, %p2789_p9 }
  0x86   : > { %2797 = shalt.err (!%p2794_p3)
}
  0x87   : > { %s2798_s13 = scalar_lea.vmem %s474_s1, 3072  ;;  %p2806_p13 = scmp.lt.s32.totalorder %s474_s1, %s474_s1 }
  0x88   : > { %p2799_p10 = scmp.ne.s32.totalorder %s474_s1, %s2798_s13  ;;  %p2807_p0 = scmp.lt.s32.totalorder %s2798_s13, %s2798_s13 }
  0x8a   : > { %p2801_p11 = pnand %p2799_p10, %p3406_p7  ;;  %p2808_p2 = por %p2807_p0, %p2806_p13 }
  0x8c   : > { %p2802_p12 = pneg %p2801_p11 }
  0x8e   : > { %p2809_p4 = pnand %p2808_p2, %p2802_p12 }
  0x90   : > { %2812 = shalt.err (!%p2809_p4)
}
  0x91   : > { %s3235_s26 = smov 384   ;;  %s3236_s22 = smov 24  }
  0x92   : > { %2477 = dma.hbm_to_vmem [thread:$0]  (!%p3390_p5), %s4207_s7, 3072, %s474_s1, [#allocation21], %s3235_s26, %s3235_s26, %s3236_s22  }
  0x93   : > { %s3237_s23 = smov [#allocation23]   ;;  %s3238_s14 = smov [#allocation26]  }
  0x94   : > { %s500_s28 = sshll.u32 %s3237_s23, 4  ;;  %s524_s16 = sshll.u32 %s3238_s14, 4  ;;  %s501_s28 = int_to_ptr.vmem [resolvable:$true] %s500_s28  ;;  %s3485_s16 = int_to_ptr.vmem [resolvable:$true] %s524_s16 }
  0x95   : > { %s4208_s9 = sld [smem:[#allocation55_spill]] }
  0x9b   : > { %s2813_s13 = scalar_lea.hbm %s4208_s9, 16 }
  0x9c   : > { %p2814_p6 = scmp.ne.s32.totalorder %s4208_s9, %s2813_s13  ;;  %p2820_p1 = scmp.lt.u32.totalorder %s2813_s13, %s4208_s9 }
  0x9e   : > { %p2816_p8 = pnand %p2814_p6, %p3406_p7 }
  0xa0   : > { %p2817_p9 = pneg %p2816_p8 }
  0xa2   : > { %p2822_p3 = pnand %p2820_p1, %p2817_p9 }
  0xa4   : > { %2825 = shalt.err (!%p2822_p3)
}
  0xa5   : > { %s2826_s26 = scalar_lea.vmem %s501_s28, 16  ;;  %s2833_s22 = scalar_lea.vmem %s501_s28, 32 }
  0xa6   : > { %p2827_p10 = scmp.ne.s32.totalorder %s501_s28, %s2826_s26  ;;  %p2834_p13 = scmp.lt.s32.totalorder %s501_s28, %s501_s28 }
  0xa7   : > { %p2835_p0 = scmp.lt.s32.totalorder %s2833_s22, %s2826_s26 }
  0xa8   : > { %p2829_p11 = pnand %p2827_p10, %p3406_p7 }
  0xa9   : > { %p2836_p2 = por %p2835_p0, %p2834_p13 }
  0xaa   : > { %p2830_p12 = pneg %p2829_p11 }
  0xac   : > { %p2837_p4 = pnand %p2836_p2, %p2830_p12 }
  0xae   : > { %2840 = shalt.err (!%p2837_p4)
}
  0xaf   : > { %2483 = dma.hbm_to_vmem [thread:$0]  (!%p3390_p5), %s4208_s9, 16, %s501_s28, [#allocation24]  }
  0xb0   : > { %s4209_s11 = sld [smem:[#allocation57_spill]] }
  0xb6   : > { %s2841_s14 = scalar_lea.hbm %s4209_s11, 16 }
  0xb7   : > { %p2842_p6 = scmp.ne.s32.totalorder %s4209_s11, %s2841_s14  ;;  %p2848_p1 = scmp.lt.u32.totalorder %s2841_s14, %s4209_s11 }
  0xb9   : > { %p2844_p8 = pnand %p2842_p6, %p3406_p7 }
  0xbb   : > { %p2845_p9 = pneg %p2844_p8 }
  0xbd   : > { %p2850_p3 = pnand %p2848_p1, %p2845_p9 }
  0xbf   : > { %2853 = shalt.err (!%p2850_p3)
}
  0xc0   : > { %s2854_s28 = scalar_lea.vmem %s3485_s16, 16  ;;  %s2861_s1 = scalar_lea.vmem %s3485_s16, 32 }
  0xc1   : > { %p2855_p10 = scmp.ne.s32.totalorder %s3485_s16, %s2854_s28  ;;  %p2862_p13 = scmp.lt.s32.totalorder %s3485_s16, %s3485_s16 }
  0xc2   : > { %p2863_p0 = scmp.lt.s32.totalorder %s2861_s1, %s2854_s28 }
  0xc3   : > { %p2857_p11 = pnand %p2855_p10, %p3406_p7 }
  0xc4   : > { %p2864_p2 = por %p2863_p0, %p2862_p13 }
  0xc5   : > { %p2858_p12 = pneg %p2857_p11 }
  0xc7   : > { %p2865_p4 = pnand %p2864_p2, %p2858_p12 }
  0xc9   : > { %2868 = shalt.err (!%p2865_p4)
}
  0xca   : > { %2489 = dma.hbm_to_vmem [thread:$0]  (!%p3390_p5), %s4209_s11, 16, %s3485_s16, [#allocation27]  }
  0xcb   : > { %s3239_s3 = smov [#allocation16]   ;;  %s3240_s2 = smov [#allocation19]  }
  0xcc   : > { %s438_s21 = sshll.u32 %s3239_s3, 4  ;;  %s463_s23 = sshll.u32 %s3240_s2, 4  ;;  %s439_s21 = int_to_ptr.vmem [resolvable:$true] %s438_s21  ;;  %s3529_s23 = int_to_ptr.vmem [resolvable:$true] %s463_s23 }
  0xcd   : > { %s4210_s4 = sld [smem:[#allocation50_spill]] }
  0xd3   : > { %s2869_s17 = scalar_lea.hbm %s4210_s4, 512 }
  0xd4   : > { %p2870_p6 = scmp.ne.s32.totalorder %s4210_s4, %s2869_s17  ;;  %p2876_p1 = scmp.lt.u32.totalorder %s2869_s17, %s4210_s4 }
  0xd6   : > { %p2872_p8 = pnand %p2870_p6, %p3406_p7 }
  0xd8   : > { %p2873_p9 = pneg %p2872_p8 }
  0xda   : > { %p2878_p3 = pnand %p2876_p1, %p2873_p9 }
  0xdc   : > { %2881 = shalt.err (!%p2878_p3)
}
  0xdd   : > { %s2882_s1 = scalar_lea.vmem %s439_s21, 512  ;;  %p2890_p13 = scmp.lt.s32.totalorder %s439_s21, %s439_s21 }
  0xde   : > { %p2883_p10 = scmp.ne.s32.totalorder %s439_s21, %s2882_s1  ;;  %p2891_p0 = scmp.lt.s32.totalorder %s2882_s1, %s2882_s1 }
  0xe0   : > { %p2885_p11 = pnand %p2883_p10, %p3406_p7  ;;  %p2892_p2 = por %p2891_p0, %p2890_p13 }
  0xe2   : > { %p2886_p12 = pneg %p2885_p11 }
  0xe4   : > { %p2893_p4 = pnand %p2892_p2, %p2886_p12 }
  0xe6   : > { %2896 = shalt.err (!%p2893_p4)
}
  0xe7   : > { %s4211_s26 = smov 8   ;;  %s4212_s22 = smov 128  }
  0xe8   : > { %2468 = dma.hbm_to_vmem [thread:$0]  (!%p3390_p5), %s4210_s4, 512, %s439_s21, [#allocation15], %s4212_s22, %s4212_s22, %s4211_s26  }
  0xe9   : > { %s4213_s6 = sld [smem:[#allocation52_spill]] }
  0xef   : > { %s2897_s17 = scalar_lea.hbm %s4213_s6, 16 }
  0xf0   : > { %p2898_p6 = scmp.ne.s32.totalorder %s4213_s6, %s2897_s17  ;;  %p2904_p1 = scmp.lt.u32.totalorder %s2897_s17, %s4213_s6 }
  0xf2   : > { %p2900_p8 = pnand %p2898_p6, %p3406_p7 }
  0xf4   : > { %p2901_p9 = pneg %p2900_p8 }
  0xf6   : > { %p2906_p3 = pnand %p2904_p1, %p2901_p9 }
  0xf8   : > { %2909 = shalt.err (!%p2906_p3)
}
  0xf9   : > { %s2910_s21 = scalar_lea.vmem %s3529_s23, 16  ;;  %s2917_s1 = scalar_lea.vmem %s3529_s23, 32 }
  0xfa   : > { %p2911_p10 = scmp.ne.s32.totalorder %s3529_s23, %s2910_s21  ;;  %p2918_p13 = scmp.lt.s32.totalorder %s3529_s23, %s3529_s23 }
  0xfb   : > { %p2919_p0 = scmp.lt.s32.totalorder %s2917_s1, %s2910_s21 }
  0xfc   : > { %p2913_p11 = pnand %p2911_p10, %p3406_p7 }
  0xfd   : > { %p2920_p2 = por %p2919_p0, %p2918_p13 }
  0xfe   : > { %p2914_p12 = pneg %p2913_p11 }
 0x100   : > { %p2921_p4 = pnand %p2920_p2, %p2914_p12 }
 0x102   : > { %2924 = shalt.err (!%p2921_p4)
}
 0x103   : > { %2474 = dma.hbm_to_vmem [thread:$0]  (!%p3390_p5), %s4213_s6, 16, %s3529_s23, [#allocation18]  }
 0x104   : > { %s3241_s14 = smov [#allocation22]   ;;  %s3242_s17 = smov [#allocation25]  }
 0x105   : > { %s486_s24 = sshll.u32 %s3241_s14, 4  ;;  %s510_s13 = sshll.u32 %s3242_s17, 4  ;;  %s487_s24 = int_to_ptr.vmem [resolvable:$true] %s486_s24  ;;  %s3576_s13 = int_to_ptr.vmem [resolvable:$true] %s510_s13 }
 0x106   : > { %s4214_s8 = sld [smem:[#allocation54_spill]] }
 0x10c   : > { %s2925_s16 = scalar_lea.hbm %s4214_s8, 2048 }
 0x10d   : > { %p2926_p6 = scmp.ne.s32.totalorder %s4214_s8, %s2925_s16  ;;  %p2932_p1 = scmp.lt.u32.totalorder %s2925_s16, %s4214_s8 }
 0x10f   : > { %p2928_p8 = pnand %p2926_p6, %p3406_p7 }
 0x111   : > { %p2929_p9 = pneg %p2928_p8 }
 0x113   : > { %p2934_p3 = pnand %p2932_p1, %p2929_p9 }
 0x115   : > { %2937 = shalt.err (!%p2934_p3)
}
 0x116   : > { %s2938_s2 = scalar_lea.vmem %s487_s24, 2048  ;;  %p2946_p13 = scmp.lt.s32.totalorder %s487_s24, %s487_s24 }
 0x117   : > { %p2939_p10 = scmp.ne.s32.totalorder %s487_s24, %s2938_s2  ;;  %p2947_p0 = scmp.lt.s32.totalorder %s2938_s2, %s2938_s2 }
 0x119   : > { %p2941_p11 = pnand %p2939_p10, %p3406_p7  ;;  %p2948_p2 = por %p2947_p0, %p2946_p13 }
 0x11b   : > { %p2942_p12 = pneg %p2941_p11 }
 0x11d   : > { %p2949_p4 = pnand %p2948_p2, %p2942_p12 }
 0x11f   : > { %2952 = shalt.err (!%p2949_p4)
}
 0x120   : > { %2480 = dma.hbm_to_vmem [thread:$0]  (!%p3390_p5), %s4214_s8, 2048, %s487_s24, [#allocation21], %s4212_s22, %s4212_s22, %s4211_s26  }
 0x121   : > { %s4215_s10 = sld [smem:[#allocation56_spill]] }
 0x127   : > { %s2953_s16 = scalar_lea.hbm %s4215_s10, 256 }
 0x128   : > { %p2954_p6 = scmp.ne.s32.totalorder %s4215_s10, %s2953_s16  ;;  %p2960_p1 = scmp.lt.u32.totalorder %s2953_s16, %s4215_s10 }
 0x12a   : > { %p2956_p8 = pnand %p2954_p6, %p3406_p7 }
 0x12c   : > { %p2957_p9 = pneg %p2956_p8 }
 0x12e   : > { %p2962_p3 = pnand %p2960_p1, %p2957_p9 }
 0x130   : > { %2965 = shalt.err (!%p2962_p3)
}
 0x131   : > { %s2966_s24 = scalar_lea.vmem %s3576_s13, 256  ;;  %p2974_p13 = scmp.lt.s32.totalorder %s3576_s13, %s3576_s13 }
 0x132   : > { %p2967_p10 = scmp.ne.s32.totalorder %s3576_s13, %s2966_s24  ;;  %p2975_p0 = scmp.lt.s32.totalorder %s2966_s24, %s2966_s24 }
 0x134   : > { %p2969_p11 = pnand %p2967_p10, %p3406_p7  ;;  %p2976_p2 = por %p2975_p0, %p2974_p13 }
 0x136   : > { %p2970_p12 = pneg %p2969_p11 }
 0x138   : > { %p2977_p4 = pnand %p2976_p2, %p2970_p12 }
 0x13a   : > { %2980 = shalt.err (!%p2977_p4)
}
 0x13b   : > { %2486 = dma.hbm_to_vmem [thread:$0]  (!%p3390_p5), %s4215_s10, 256, %s3576_s13, [#allocation24], %s4212_s22, %s4212_s22, %s4211_s26  }
 0x13c   : > { %s3243_s17 = smov [#allocation28]   ;;  %s2981_s21 = scalar_lea.hbm %s4164_s12, 1024 }
 0x13d   : > { %s534_s0 = sshll.u32 %s3243_s17, 4  ;;  %p2982_p6 = scmp.ne.s32.totalorder %s4164_s12, %s2981_s21  ;;  %s535_s0 = int_to_ptr.vmem [resolvable:$true] %s534_s0 }
 0x13e   : > { %p2988_p1 = scmp.lt.u32.totalorder %s2981_s21, %s4164_s12 }
 0x13f   : > { %p2984_p8 = pnand %p2982_p6, %p3406_p7 }
 0x141   : > { %p2985_p9 = pneg %p2984_p8 }
 0x143   : > { %p2990_p3 = pnand %p2988_p1, %p2985_p9 }
 0x145   : > { %2993 = shalt.err (!%p2990_p3)
}
 0x146   : > { %s2994_s13 = scalar_lea.vmem %s535_s0, 1024  ;;  %p3002_p13 = scmp.lt.s32.totalorder %s535_s0, %s535_s0 }
 0x147   : > { %p2995_p10 = scmp.ne.s32.totalorder %s535_s0, %s2994_s13  ;;  %p3003_p0 = scmp.lt.s32.totalorder %s2994_s13, %s2994_s13 }
 0x149   : > { %p2997_p11 = pnand %p2995_p10, %p3406_p7  ;;  %p3004_p2 = por %p3003_p0, %p3002_p13 }
 0x14b   : > { %p2998_p12 = pneg %p2997_p11 }
 0x14d   : > { %p3005_p4 = pnand %p3004_p2, %p2998_p12 }
 0x14f   : > { %3008 = shalt.err (!%p3005_p4)
}
 0x150   : > { %s4216_s25 = sld [smem:[#allocation44_spill]]  ;;  %s2131_s27 = sadd.s32 4294967294, %s3227_s20  }
 0x151   : > { %2492 = dma.hbm_to_vmem [thread:$0]  (!%p3390_p5), %s4164_s12, 1024, %s535_s0, [#allocation27], %s4212_s22, %s4212_s22, %s4211_s26  }
 0x152   : > { %s51_s17 = sadd.s32 1, %s3219_s18  ;;  %s54_s28 = sadd.s32 1, %s3223_s19 }
 0x153   : > { %p52_p7 = scmp.ge.s32.totalorder %s51_s17, 2  ;;  %s63_s16 = sadd.s32 1, %s3207_s15 }
 0x154   : > { %p70_p6 = scmp.ne.s32.totalorder %s3207_s15, %s3203_s30  ;;  %p71_p8 = scmp.eq.s32.totalorder %s3227_s20, 0 }
 0x155   : > { %s4257_s17 = smov (%p52_p7, %s51_s17), 0  ;;  %s4259_s28 = smov (!%p52_p7, %s54_s28), %s3223_s19 }
 0x156   : > { %s59_s21 = ssub.s32 %s3219_s18, %s4257_s17  ;;  %p3658_p9 = por %p71_p8, %p70_p6 }
 0x157   : > { %p56_p5 = scmp.ge.s32.totalorder %s4259_s28, 2  ;;  %p76_p1 = scmp.ne.s32.totalorder %s3203_s30, %s3199_s29 }
 0x158   : > { %p361_p3 = scmp.eq.s32.totalorder %s4216_s25, 3  ;;  %p367_p10 = scmp.eq.s32.totalorder %s2131_s27, 3 }
 0x159   : > { %s4261_s28 = smov (%p56_p5, %s4259_s28), 0  ;;  %p4218_p11 = scmp.eq.s32.totalorder %s4216_s25, 0 }
 0x15a   : > { %p3673_p13 = por %p361_p3, %p70_p6  ;;  %s58_s0 = ssub.s32 %s3223_s19, %s4261_s28 }
 0x15b   : > { %p3669_p12 = por %p4218_p11, %p76_p1  ;;  %p3679_p0 = por %p367_p10, %p76_p1 }
 0x15c   : > { %s4220_s22 = scalar_select %p3673_p13, 1, 0 }
 0x15d   : > { %s4219_s26 = scalar_select %p3669_p12, 1, 0 }
 0x15e   : > { %s4221_s3 = scalar_select %p3679_p0, 1, 0 }
 0x15f   : > { %s60_s23 = sor.u32 %s59_s21, %s58_s0  ;;  %p2518_p2 = scmp.lt.s32.totalorder %s3227_s20, 4 }
 0x160   : > { %p61_p4 = scmp.eq.s32.totalorder %s60_s23, 0  ;;  %s548_s24 = sand.u32 1, %s3207_s15  }
 0x161   : > { %s3685_s13 = sshll.u32 %s548_s24, 3  ;;  %s2146_s14 = sshll.u32 %s3223_s19, 1 }
 0x162   : > { %s3688_s2 = scalar_select %p61_p4, %s3207_s15, %s63_s16  }
 0x163   : > { %s557_s25 = sadd.s32 %s3219_s18, %s2146_s14  ;;  %s552_s27 = scalar_lea.vmem [#allocation8], %s3685_s13 }
 0x164   : > { %s561_s4 = sshll.u32 %s552_s27, 4  ;;  %s2147_s5 = sshll.u32 %s557_s25, 7  ;;  %s3693_s4 = int_to_ptr.vmem [resolvable:$true] %s561_s4 }
 0x165   : > { %s4222_s8 = sld [smem:[#allocation46_spill]]  ;;  %p3702_p7 = pnand %p2518_p2, %p3658_p9 }
 0x166   : > { %s4224_s23 = sld [smem:[#allocation47_spill]]  ;;  %s568_s25 = sand.u32 1, %s3227_s20  }
 0x167   : > { %s549_s6 = scalar_lea.sflag [#allocation9], %s548_s24  ;;  %p3011_p8 = pneg %p3702_p7 }
 0x16b   : > { %s3698_s9 = scalar_lea.hbm %s4222_s8, %s2147_s5  ;;  %s3014_s10 = scalar_lea.hbm %s4222_s8, 512 }
 0x16c   : > { %s3709_s14 = scalar_lea.hbm %s4224_s23, %s2147_s5  ;;  %s3009_s7 = scalar_lea.hbm %s3698_s9, 128 }
 0x16d   : > { %p3010_p6 = scmp.ne.s32.totalorder %s3698_s9, %s3009_s7  ;;  %p3015_p1 = scmp.lt.u32.totalorder %s3698_s9, %s4222_s8 }
 0x16e   : > { %p3016_p3 = scmp.lt.u32.totalorder %s3014_s10, %s3009_s7  ;;  %p3018_p11 = scmp.lt.u32.totalorder %s3009_s7, %s3698_s9 }
 0x16f   : > { %p3012_p5 = pnand %p3011_p8, %p3010_p6 }
 0x170   : > { %p3017_p10 = por %p3016_p3, %p3015_p1 }
 0x171   : > { %p3013_p9 = pneg %p3012_p5 }
 0x172   : > { %p3019_p2 = por %p3018_p11, %p3017_p10 }
 0x174   : > { %p3020_p4 = pnand %p3019_p2, %p3013_p9 }
 0x176   : > { %3023 = shalt.err (!%p3020_p4)
}
 0x177   : > { %s3024_s5 = scalar_lea.vmem %s3693_s4, 128  ;;  %s3244_s24 = smov [#allocation8]  }
 0x178   : > { %p3025_p6 = scmp.ne.s32.totalorder %s3693_s4, %s3024_s5  ;;  %s3029_s0 = sshll.u32 %s3244_s24, 4  ;;  %s3030_s0 = int_to_ptr.vmem [resolvable:$false] %s3029_s0 }
 0x179   : > { %s3031_s11 = scalar_lea.vmem %s3030_s0, 256  ;;  %p3032_p13 = scmp.lt.s32.totalorder %s3693_s4, %s3030_s0 }
 0x17a   : > { %p3027_p5 = pnand %p3025_p6, %p3011_p8  ;;  %p3033_p1 = scmp.lt.s32.totalorder %s3031_s11, %s3024_s5 }
 0x17c   : > { %p3028_p0 = pneg %p3027_p5  ;;  %p3034_p3 = por %p3033_p1, %p3032_p13 }
 0x17e   : > { %p3035_p10 = pnand %p3034_p3, %p3028_p0 }
 0x180   : > { %3038 = shalt.err (!%p3035_p10)
}
 0x181   : > { %2496 = dma.hbm_to_vmem [thread:$0]  (!%p3702_p7), %s3698_s9, 128, %s3693_s4, %s549_s6  }
 0x182   : > { %s572_s10 = scalar_lea.vmem [#allocation11], %s3685_s13  ;;  %s569_s1 = scalar_lea.sflag [#allocation12], %s568_s25 }
 0x183   : > { %s581_s7 = sshll.u32 %s572_s10, 4  ;;  %s3039_s27 = scalar_lea.hbm %s3709_s14, 128  ;;  %s582_s7 = int_to_ptr.vmem [resolvable:$true] %s581_s7 }
 0x184   : > { %p3040_p13 = scmp.ne.s32.totalorder %s3709_s14, %s3039_s27  ;;  %s3044_s24 = scalar_lea.hbm %s4224_s23, 512 }
 0x185   : > { %p3045_p11 = scmp.lt.u32.totalorder %s3709_s14, %s4224_s23  ;;  %p3046_p2 = scmp.lt.u32.totalorder %s3044_s24, %s3039_s27 }
 0x186   : > { %p3042_p0 = pnand %p3040_p13, %p3011_p8  ;;  %p3048_p6 = scmp.lt.u32.totalorder %s3039_s27, %s3709_s14 }
 0x187   : > { %p3047_p4 = por %p3046_p2, %p3045_p11 }
 0x188   : > { %p3043_p9 = pneg %p3042_p0 }
 0x189   : > { %p3049_p5 = por %p3048_p6, %p3047_p4 }
 0x18b   : > { %p3050_p1 = pnand %p3049_p5, %p3043_p9 }
 0x18d   : > { %3053 = shalt.err (!%p3050_p1)
}
 0x18e   : > { %s3054_s4 = scalar_lea.vmem %s582_s7, 128  ;;  %s3245_s9 = smov [#allocation11]  }
 0x18f   : > { %p3055_p3 = scmp.ne.s32.totalorder %s582_s7, %s3054_s4  ;;  %s3059_s13 = sshll.u32 %s3245_s9, 4  ;;  %s3060_s13 = int_to_ptr.vmem [resolvable:$false] %s3059_s13 }
 0x190   : > { %s3061_s25 = scalar_lea.vmem %s3060_s13, 256  ;;  %p3062_p0 = scmp.lt.s32.totalorder %s582_s7, %s3060_s13 }
 0x191   : > { %p3057_p10 = pnand %p3055_p3, %p3011_p8  ;;  %p3063_p12 = scmp.lt.s32.totalorder %s3061_s25, %s3054_s4 }
 0x193   : > { %p3058_p13 = pneg %p3057_p10  ;;  %p3064_p2 = por %p3063_p12, %p3062_p0 }
 0x195   : > { %p3065_p11 = pnand %p3064_p2, %p3058_p13 }
 0x197   : > { %3068 = shalt.err (!%p3065_p11)
}
 0x198   : > { %2499 = dma.hbm_to_vmem [thread:$0]  (!%p3702_p7), %s3709_s14, 128, %s582_s7, %s569_s1  }
 0x199   : > { %s4225_s6 = sld [smem:[#allocation45_spill]] }
 0x19f   : > { %p4226_p9 = scmp.ne.s32.totalorder %s4225_s6, 0 }
 0x1a0   : > { %s3762_s10 = sand.u32 (!%p4226_p9), 1, %s3203_s30   ;;  %p4227_p12 = scmp.ne.s32.totalorder (!%p4226_p9), %s4219_s26, 0 }
 0x1a1   : > { %590 = sbr.rel (%p4226_p9) target bundleno = 1738 (0x6ca), region = 72  ;;  %s3765_s27 = sshll.u32 (!%p4226_p9), %s3762_s10, 3 }
 0x1a2   : > { %s593_s21 = scalar_lea.sflag (!%p4226_p9), [#allocation9], %s3762_s10  ;;  %s596_s5 = scalar_lea.vmem (!%p4226_p9), [#allocation8], %s3765_s27 }
 0x1a8   : > { %3158 = dma.done.wait (%p4227_p12), %s593_s21, 128  }
 0x1a9   : > { %3160 = vsyncadd (%p4227_p12), %s593_s21, 4294967168  ;;  %s4228_s16 = sld [smem:[#allocation44_spill]]  ;;  %s605_s1 = scalar_lea.vmem [#allocation11], %s3765_s27 }
 0x1af   : > { %s601_s14 = sand.u32 1, %s4228_s16  }
 0x1b0   : > { %s602_s7 = scalar_lea.sflag [#allocation12], %s601_s14 }
 0x1b1   : > { %3162 = dma.done.wait (%p4227_p12), %s602_s7, 128  }
 0x1b2   : > { %3164 = vsyncadd (%p4227_p12), %s602_s7, 4294967168  ;;  %p4229_p7 = scmp.eq.s32.totalorder %s4228_s16, 0 }
 0x1b4   : > { %3166 = dma.done.wait (%p4229_p7), [#allocation12], 16   ;;  %p4230_p8 = pmov %p4229_p7 }
 0x1b5   : > { %p4231_p4 = pmov %p4229_p7 }
 0x1b6   : > { %3168 = vsyncadd (%p4230_p8), [#allocation12], 4294967280 }
 0x1b7   : > { %3170 = dma.done.wait (%p4231_p4), [#allocation15], 1024   ;;  %p4232_p6 = pmov %p4231_p4 }
 0x1b8   : > { %p4233_p5 = pmov %p4231_p4 }
 0x1b9   : > { %3172 = vsyncadd (%p4232_p6), [#allocation15], 4294966272 }
 0x1ba   : > { %3174 = dma.done.wait (%p4233_p5), [#allocation18], 80   ;;  %p4234_p1 = pmov %p4231_p4 }
 0x1bc   : > { %3176 = vsyncadd (%p4234_p1), [#allocation18], 4294967216  ;;  %p4235_p3 = pmov %p4234_p1 }
 0x1bd   : > { %p4236_p10 = pmov %p4234_p1 }
 0x1be   : > { %3178 = dma.done.wait (%p4235_p3), [#allocation21], 5120  }
 0x1bf   : > { %3180 = vsyncadd (%p4236_p10), [#allocation21], 4294962176  ;;  %p4237_p13 = pmov %p4234_p1 }
 0x1c0   : > { %p4238_p0 = pmov %p4234_p1 }
 0x1c1   : > { %3182 = dma.done.wait (%p4237_p13), [#allocation24], 272  }
 0x1c2   : > { %3184 = vsyncadd (%p4238_p0), [#allocation24], 4294967024  ;;  %p4239_p2 = pmov %p4238_p0 }
 0x1c3   : > { %p4240_p11 = pmov %p4238_p0 }
 0x1c4   : > { %3186 = dma.done.wait (%p4239_p2), [#allocation27], 1040  }
 0x1c5   : > { %3188 = vsyncadd (%p4240_p11), [#allocation27], 4294966256  ;;  %s696_s26 = scalar_lea.vmem [#allocation29], %s3765_s27  ;;  %s703_s24 = scalar_lea.vmem [#allocation30], %s3765_s27 }
 0x1c6   : > { %s4241_s0 = sld [smem:[#allocation42_spill]] }
 0x1cc   : > { %p2167_p9 = scmp.ne.s32.totalorder %s4241_s0, 0 }
 0x1cd   : > { %vm708_vm0 = vcmask (!%p2167_p9), 523264   ;;  %v3246_v0 = vmov (!%p2167_p9), 0.0  }
 0x1ce   : > { %707 = sbr.rel (%p2167_p9) target bundleno = 469 (0x1d5), region = 128  ;;  %709 = vst.msk [vmem:[#allocation2] sm:$0xff] (!%p2167_p9), %vm708_vm0, %v3246_v0  ;;  %710 = vst.msk [vmem:[#allocation2 + $0x8] sm:$0xff] (!%p2167_p9), %vm708_vm0, %v3246_v0 }
 0x1cf   : > { %711 = vst.msk [vmem:[#allocation3] sm:$0xff] (!%p2167_p9), %vm708_vm0, %v3246_v0 }
 0x1d5 PF: > { %v712_v1 = vld [vmem:[%s596_s5] sm:$0xff]  ;;  %v713_v2 = vld [vmem:[%s605_s1] sm:$0xff]  ;;  %vm715_vm1 = vcmask 261120   ;;  %v3247_v9 = vmov 0.0|0.0   ;;  %vm3248_vm2 = vmmov 0   ;;  %v3249_v12 = vmov 0.0  }
 0x1d6   : > { %v714_v3 = vadd.f32 %v713_v2, %v712_v1  ;;  %v734_v6 = vld [vmem:[#allocation14] sm:$0xff]  ;;  %v735_v7 = vld [vmem:[#allocation14 + $0x8] sm:$0xff]  ;;  %v736_v8 = vld [vmem:[#allocation14 + $0x10] sm:$0xff]  ;;  %2331 = vmatprep.subr.bf16.mxu0 %v3247_v9  ;;  %2244 = vmatprep.mubr.msk.f32.mxu0 %vm3248_vm2, %v3249_v12  ;;  %vm811_vm3 = vcmask 523264   ;;  %vm1654_vm6 = vcmask 1040384   ;;  %vm1656_vm7 = vcmask 1041408  }
 0x1d7   : > { %v2332_v10 = vpack.c.bf16 %v735_v7, %v734_v6  ;;  %v737_v11 = vld [vmem:[#allocation14 + $0x18] sm:$0xff]  ;;  %953 = vmatprep.mubr.f32.mxu1 %v3249_v12  ;;  %v863_v21 = vld [vmem:[#allocation20 + $0x8] sm:$0xff]  ;;  %v866_v22 = vld [vmem:[#allocation20 + $0x20] sm:$0xff]  ;;  %vm1658_vm8 = vcmask 1042432   ;;  %vm1660_vm9 = vcmask 1043456   ;;  %vm1662_vm10 = vcmask 1044480  }
 0x1d8   : > { %v717_v4 = vmul.f32 %v714_v3, %v714_v3  ;;  %716 = vst.msk [vmem:[%s703_s24] sm:$0xff] %vm715_vm1, %v714_v3  ;;  %v2335_v13 = vpack.c.bf16 %v737_v11, %v736_v8  ;;  %v2168_v18 = vld [vmem:[#allocation13] ss:$0 sm:$0xff]  ;;  %v864_v23 = vld [vmem:[#allocation20 + $0x10] sm:$0xff]  ;;  %v2337_v24 = vpack.c.bf16 %v866_v22, %v863_v21  ;;  %v867_v25 = vld [vmem:[#allocation20 + $0x28] sm:$0xff]  ;;  %vm1664_vm11 = vcmask 1045504  }
 0x1d9   : > { %2333 = vmatpush3.bf16.msra.mxu0 %v2332_v10  ;;  %v862_v26 = vld [vmem:[#allocation20] sm:$0xff]  ;;  %v865_v27 = vld [vmem:[#allocation20 + $0x18] sm:$0xff]  ;;  %v2354_v28 = vpack.c.bf16 %v867_v25, %v864_v23  ;;  %v872_v31 = vld [vmem:[#allocation20 + $0x50] sm:$0xff]  ;;  %s4242_s11 = sld [smem:[#allocation43_spill]]  ;;  %s4243_s4 = sld [smem:[#allocation42_spill]]  ;;  %vm1666_vm12 = vcmask 1046528  }
 0x1da   : > { %v718_v5 = vsel %vm715_vm1, %v717_v4, 0.0  ;;  %2334 = vmatprep.subr.bf16.mxu0 %v3247_v9  ;;  %v2339_v29 = vpack.c.bf16 %v865_v27, %v862_v26  ;;  %v869_v30 = vld [vmem:[#allocation20 + $0x38] sm:$0xff]  ;;  %v870_v32 = vld [vmem:[#allocation20 + $0x40] sm:$0xff]  ;;  %2338 = vmatprep.subr.bf16.mxu1 %v2337_v24  ;;  %v868_v35 = vld [vmem:[#allocation20 + $0x30] sm:$0xff]  ;;  %s4244_s5 = sld [smem:[#allocation59_spill]]  ;;  %s1882_s14 = sshll.u32 %s703_s24, 4  ;;  %s1883_s14 = int_to_ptr.vmem [resolvable:$true] %s1882_s14 }
 0x1db   : > { %719 = vadd.xlane.f32.xlu0 %v718_v5  ;;  %v2341_v33 = vpack.c.bf16 %v872_v31, %v869_v30  ;;  %v873_v34 = vld [vmem:[#allocation20 + $0x58] sm:$0xff]  ;;  %v871_v36 = vld [vmem:[#allocation20 + $0x48] sm:$0xff]  ;;  %v878_v40 = vld [vmem:[#allocation20 + $0x80] sm:$0xff]  ;;  %s1852_s7 = scalar_lea.sflag [#allocation31], %s3762_s10  ;;  %s3069_s1 = scalar_lea.vmem %s1883_s14, 128 }
 0x1dc   : > { %2340 = vmatpush1.bf16.msra.mxu1 %v2339_v29  ;;  %v2357_v37 = vpack.c.bf16 %v873_v34, %v870_v32  ;;  %v2343_v38 = vpack.c.bf16 %v871_v36, %v868_v35  ;;  %v875_v39 = vld [vmem:[#allocation20 + $0x68] sm:$0xff]  ;;  %v876_v41 = vld [vmem:[#allocation20 + $0x70] sm:$0xff]  ;;  %v874_v44 = vld [vmem:[#allocation20 + $0x60] sm:$0xff]  ;;  %p3070_p12 = scmp.ne.s32.totalorder %s1883_s14, %s3069_s1  ;;  %p4245_p7 = scmp.ne.s32.totalorder %s4220_s22, 0 }
 0x1dd   : > { %2336 = vmatpush3.bf16.msra.mxu0 %v2335_v13  ;;  %2342 = vmatprep.subr.bf16.mxu1 %v2341_v33  ;;  %v2345_v42 = vpack.c.bf16 %v878_v40, %v875_v39  ;;  %v879_v43 = vld [vmem:[#allocation20 + $0x88] sm:$0xff]  ;;  %v877_v45 = vld [vmem:[#allocation20 + $0x78] sm:$0xff]  ;;  %v884_v47 = vld [vmem:[#allocation20 + $0xb0] sm:$0xff]  ;;  %s3259_s0 = smov [#allocation30]  }
 0x1de   : > { %2353 = vmatprep.subr.bf16.mxu0 %v3247_v9  ;;  %v881_v46 = vld [vmem:[#allocation20 + $0x98] sm:$0xff]  ;;  %v2360_v48 = vpack.c.bf16 %v879_v43, %v876_v41  ;;  %v2347_v49 = vpack.c.bf16 %v877_v45, %v874_v44  ;;  %v882_v50 = vld [vmem:[#allocation20 + $0xa0] sm:$0xff]  ;;  %v880_v53 = vld [vmem:[#allocation20 + $0x90] sm:$0xff]  ;;  %p3071_p8 = pnand %p3070_p12, %p4245_p7 }
 0x1df   : > { %v2349_v51 = vpack.c.bf16 %v884_v47, %v881_v46  ;;  %v885_v52 = vld [vmem:[#allocation20 + $0xb8] sm:$0xff]  ;;  %v883_v54 = vld [vmem:[#allocation20 + $0xa8] sm:$0xff]  ;;  %v1036_v32 = vld [vmem:[#allocation22 + $0x20] sm:$0xff]  ;;  %s2185_s9 = sshll.u32 %s4242_s11, 1  ;;  %s3073_s11 = sshll.u32 %s3259_s0, 4  ;;  %s3074_s11 = int_to_ptr.vmem [resolvable:$false] %s3073_s11 }
 0x1e0   : > { %2344 = vmatpush1.bf16.msra.mxu1 %v2343_v38  ;;  %v2363_v55 = vpack.c.bf16 %v885_v52, %v882_v50  ;;  %v2351_v56 = vpack.c.bf16 %v883_v54, %v880_v53  ;;  %v2171_v59 = vld [vmem:[#allocation17] ss:$0 sm:$0xff]  ;;  %v2170_v60 = vld [vmem:[#allocation19] ss:$0 sm:$0xff]  ;;  %v2172_v61 = vld [vmem:[#allocation17 + $0x1] ss:$0 sm:$0xff]  ;;  %s4058_s13 = sadd.s32 %s4243_s4, %s2185_s9  ;;  %p3072_p4 = pneg %p3071_p8 }
 0x1e1   : > { %2346 = vmatprep.subr.bf16.mxu1 %v2345_v42  ;;  %v2174_v6 = vld [vmem:[#allocation17 + $0x3] ss:$0 sm:$0xff]  ;;  %v1033_v21 = vld [vmem:[#allocation22 + $0x8] sm:$0xff]  ;;  %v1674_v26 = vld [vmem:[#allocation16 + $0x18] sm:$0xff]  ;;  %v3250_v54 = vmov 0   ;;  %s2186_s25 = sshll.u32 %s4058_s13, 7  ;;  %p3076_p6 = scmp.lt.s32.totalorder %s1883_s14, %s3074_s11 }
 0x1e2   : > { %v1673_v25 = vld [vmem:[#allocation16 + $0x10] sm:$0xff]  ;;  %v1035_v29 = vld [vmem:[#allocation22 + $0x18] sm:$0xff]  ;;  %v1040_v38 = vld [vmem:[#allocation22 + $0x40] sm:$0xff]  ;;  %s4066_s16 = scalar_lea.hbm %s4244_s5, %s2186_s25  ;;  %s3075_s4 = scalar_lea.vmem %s3074_s11, 256 }
 0x1e3   : > { %v2393_v30 = vpack.c.bf16 %v1674_v26, %v1673_v25  ;;  %v1037_v33 = vld [vmem:[#allocation22 + $0x28] sm:$0xff]  ;;  %v1038_v35 = vld [vmem:[#allocation22 + $0x30] sm:$0xff]  ;;  %v1039_v36 = vld [vmem:[#allocation22 + $0x38] sm:$0xff]  ;;  %p3077_p5 = scmp.lt.s32.totalorder %s3075_s4, %s3069_s1 }
 0x1e4   : > { %2348 = vmatpush1.bf16.msra.mxu1 %v2347_v49  ;;  %v2372_v34 = vpack.c.bf16 %v1037_v33, %v1036_v32  ;;  %v1041_v39 = vld [vmem:[#allocation22 + $0x48] sm:$0xff]  ;;  %v1042_v41 = vld [vmem:[#allocation22 + $0x50] sm:$0xff]  ;;  %v1043_v42 = vld [vmem:[#allocation22 + $0x58] sm:$0xff] }
 0x1e5   : > { %2350 = vmatprep.subr.bf16.mxu1 %v2349_v51  ;;  %v2378_v40 = vpack.c.bf16 %v1041_v39, %v1040_v38  ;;  %v2381_v43 = vpack.c.bf16 %v1043_v42, %v1042_v41  ;;  %v1045_v44 = vld [vmem:[#allocation22 + $0x68] sm:$0xff]  ;;  %v1046_v45 = vld [vmem:[#allocation22 + $0x70] sm:$0xff]  ;;  %v1047_v46 = vld [vmem:[#allocation22 + $0x78] sm:$0xff]  ;;  %p3078_p1 = por %p3077_p5, %p3076_p6 }
 0x1e6   : > { %v2387_v47 = vpack.c.bf16 %v1047_v46, %v1046_v45  ;;  %v3877_v33 = vld [vmem:[#allocation25] sm:$0xff]  ;;  %v1764_v45 = vld [vmem:[#allocation28] sm:$0xff] }
 0x1e7   : > { %v1765_v46 = vld [vmem:[#allocation28 + $0x8] sm:$0xff]  ;;  %p3079_p3 = pnand %p3078_p1, %p3072_p4 }
 0x1e8   : > { %2352 = vmatpush1.bf16.msra.mxu1 %v2351_v56 }
 0x1e9   : > { %2365 = vmatprep.subr.bf16.mxu1 %v3247_v9 }
 0x268   : > { %v720_v14 = vpop.xlane.xlu0 %719 }
 0x269   : > { %v722_v15 = vmul.f32 0.03125, %v720_v14 }
 0x26b   : > { %v723_v16 = vadd.f32 1e-05, %v722_v15 }
 0x26d   : > { %2655 = vrsqrt.f32 %v723_v16 }
 0x277   : > { %v2656_v17 = vpop.eup %2655 }
 0x278   : > { %v725_v19 = vmul.f32 %v2656_v17, %v714_v3  ;;  %v2173_v3 = vld [vmem:[#allocation17 + $0x2] ss:$0 sm:$0xff] }
 0x279   : > { %v1671_v17 = vld [vmem:[#allocation16] sm:$0xff] }
 0x27a   : > { %v3816_v20 = vmul.f32 %v2168_v18, %v725_v19  ;;  %v1672_v18 = vld [vmem:[#allocation16 + $0x8] sm:$0xff] }
 0x27b   : > { %v1032_v19 = vld [vmem:[#allocation22] sm:$0xff]  ;;  %v2390_v23 = vpack.c.bf16 %v1672_v18, %v1671_v17  ;;  %v1221_v18 = vlaneseq }
 0x27c   : > { %2245 = vmatmul.mubr.msk.f32.vlgmr.msra.gmra.mrb[0].mxu0 %vm715_vm1, %v3816_v20  ;;  %v2366_v27 = vpack.c.bf16 %v1033_v21, %v1032_v19  ;;  %v3258_v19 = vmov 1966171168  }
 0x27d   : > { %2263 = vmatprep.mubr.msk.f32.mxu0 %vm3248_vm2, %v3249_v12  ;;  %2355 = vmatpush3.bf16.msra.mxu0 %v2354_v28  ;;  %v1034_v28 = vld [vmem:[#allocation22 + $0x10] sm:$0xff]  ;;  %v1219_v21 = vunpack.c.l.s4 %v3258_v19 }
 0x27e   : > { %2356 = vmatprep.subr.bf16.mxu0 %v3247_v9  ;;  %v2369_v31 = vpack.c.bf16 %v1035_v29, %v1034_v28 }
 0x27f   : > { %v1220_v25 = vunpack.c.0.s8 %v1219_v21 }
 0x281   : > { %2358 = vmatpush3.bf16.msra.mxu0 %v2357_v37  ;;  %v2375_v37 = vpack.c.bf16 %v1039_v36, %v1038_v35 }
 0x282   : > { %2359 = vmatprep.subr.bf16.mxu0 %v3247_v9 }
 0x285   : > { %2361 = vmatpush3.bf16.msra.mxu0 %v2360_v48 }
 0x286   : > { %2362 = vmatprep.subr.bf16.mxu0 %v3247_v9 }
 0x289   : > { %2364 = vmatpush3.bf16.msra.mxu0 %v2363_v55  ;;  %v3251_v55 = vmov 1  }
 0x28a   : > { %2389 = vmatprep.subr.bf16.mxu0 %v3247_v9 }
 0x34f   : > { %v807_v57 = vpop.f32.mrb[0].mxu0 }
 0x350   : > { %812 = vst.msk [vmem:[#allocation3 + $0x8] sm:$0xff] %vm811_vm3, %v807_v57  ;;  %v2246_v58 = vpop.f32.mrb[1].mxu0  ;;  %v3252_v57 = vmov 6  }
 0x351   : > { %v3253_v58 = vmov 2  }
 0x357   : > { %v821_v62 = vld [vmem:[#allocation3 + $0x5] sm:$0xff] }
 0x358   : > { %v829_v63 = vld [vmem:[#allocation3 + $0x6] sm:$0xff]  ;;  %v827_v1 = vmul.f32 %v2171_v59, %v821_v62  ;;  %v3256_v62 = vmov 4  }
 0x359   : > { %v837_v0 = vld [vmem:[#allocation3 + $0x7] sm:$0xff]  ;;  %v835_v5 = vmul.f32 %v2172_v61, %v829_v63  ;;  %v3255_v61 = vmov 7  }
 0x35a   : > { %v845_v2 = vld [vmem:[#allocation3 + $0x8] sm:$0xff]  ;;  %v828_v4 = vadd.f32 %v2170_v60, %v827_v1  ;;  %v843_v8 = vmul.f32 %v2173_v3, %v837_v0  ;;  %v3254_v60 = vmov 3   ;;  %v3257_v0 = vmov 5  }
 0x35b   : > { %853 = vst.msk [vmem:[#allocation3] sm:$0xff] %vm811_vm3, %v845_v2  ;;  %v851_v11 = vmul.f32 %v2174_v6, %v845_v2  ;;  %v2178_v2 = vld [vmem:[#allocation23] ss:$0 sm:$0xff] }
 0x35c   : > { %v836_v7 = vadd.f32 %v835_v5, %v828_v4 }
 0x35e   : > { %v844_v10 = vadd.f32 %v843_v8, %v836_v7 }
 0x360   : > { %v852_v13 = vadd.f32 %v851_v11, %v844_v10 }
 0x362   : > { %v2175_v14 = vmul.f32 -1.442695, %v852_v13 }
 0x364   : > { %2657 = vpow2.f32 %v2175_v14 }
 0x36e   : > { %v2658_v15 = vpop.eup %2657 }
 0x36f   : > { %v857_v16 = vadd.f32 1.0, %v2658_v15 }
 0x371   : > { %2659 = vrcp.f32 %v857_v16 }
 0x37b   : > { %v2660_v22 = vpop.eup %2659 }
 0x37c   : > { %v860_v24 = vmul.f32 %v2660_v22, %v852_v13 }
 0x37e   : > { %861 = vst.msk [vmem:[#allocation5] sm:$0xff] %vm811_vm3, %v860_v24  ;;  %2176 = vmatmul.mubr.msk.f32.vlgmr.msra.gmra.mrb[0].mxu1 %vm811_vm3, %v860_v24  ;;  %2264 = vmatmul.mubr.msk.f32.vlgmr.msra.gmra.mrb[2].mxu0 %vm811_vm3, %v860_v24  ;;  %v3868_v24 = vshrl.u32 %v1221_v18, 7 }
 0x37f   : > { %2391 = vmatpush3.bf16.msra.mxu0 %v2390_v23  ;;  %2309 = vmatprep.mubr.msk.f32.mxu0 %vm3248_vm2, %v3249_v12 }
 0x380   : > { %2392 = vmatprep.subr.bf16.mxu0 %v3247_v9  ;;  %2367 = vmatpush3.bf16.msra.mxu1 %v2366_v27  ;;  %v1223_v26 = vsub.s32 %v1220_v25, %v3868_v24 }
 0x381   : > { %2368 = vmatprep.subr.bf16.mxu1 %v3247_v9  ;;  %2298 = vmatprep.mubr.msk.f32.mxu1 %vm3248_vm2, %v3249_v12 }
 0x383   : > { %2394 = vmatpush3.bf16.msra.mxu0 %v2393_v30 }
 0x384   : > { %2370 = vmatpush3.bf16.msra.mxu1 %v2369_v31  ;;  %2395 = vmatprep.subr.bf16.mxu0 %v3247_v9  ;;  %v3875_v31 = vsub.s32 0, %v3868_v24 }
 0x385   : > { %2371 = vmatprep.subr.bf16.mxu1 %v3247_v9 }
 0x386   : > { %2310 = vmatmul.mubr.msk.f32.vlgmr.msra.gmra.mrb[4].mxu0 %vm715_vm1, %v3816_v20  ;;  %v1044_v20 = vld [vmem:[#allocation22 + $0x60] sm:$0xff] }
 0x387   : > { %2328 = vmatprep.mubr.msk.f32.mxu0 %vm3248_vm2, %v3249_v12  ;;  %v2384_v12 = vpack.c.bf16 %v1045_v44, %v1044_v20 }
 0x388   : > { %2373 = vmatpush3.bf16.msra.mxu1 %v2372_v34 }
 0x389   : > { %2374 = vmatprep.subr.bf16.mxu1 %v3247_v9 }
 0x38c   : > { %2376 = vmatpush3.bf16.msra.mxu1 %v2375_v37 }
 0x38d   : > { %2377 = vmatprep.subr.bf16.mxu1 %v3247_v9 }
 0x390   : > { %2379 = vmatpush3.bf16.msra.mxu1 %v2378_v40 }
 0x391   : > { %2380 = vmatprep.subr.bf16.mxu1 %v3247_v9 }
 0x394   : > { %2382 = vmatpush3.bf16.msra.mxu1 %v2381_v43 }
 0x395   : > { %2383 = vmatprep.subr.bf16.mxu1 %v3247_v9 }
 0x398   : > { %2385 = vmatpush3.bf16.msra.mxu1 %v2384_v12 }
 0x399   : > { %2386 = vmatprep.subr.bf16.mxu1 %v3247_v9 }
 0x39c   : > { %2388 = vmatpush3.bf16.msra.mxu1 %v2387_v47 }
 0x451   : > { %v955_v48 = vpop.f32.mrb[0].mxu1  ;;  %v1026_v49 = vpop.f32.mrb[2].mxu0 }
 0x452   : > { %v957_v50 = vpop.f32.mrb[1].mxu1  ;;  %2299 = vmatmul.mubr.f32.vlgmr.msra.gmra.mrb[2].mxu1 %v955_v48  ;;  %1184 = vxpose.xlu1.b32.start.end [1/1] (short) (narrow) %v1026_v49, 16  ;;  %v2265_v51 = vpop.f32.mrb[3].mxu0 }
 0x453   : > { %1151 = vxpose.xlu0.b32.start.end [1/1] (short) (narrow) %v957_v50, 16  ;;  %v1766_v50 = vld [vmem:[#allocation28 + $0x10] sm:$0xff]  ;;  %v1767_v51 = vld [vmem:[#allocation28 + $0x18] sm:$0xff] }
 0x459   : > { %v3849_v52 = vpop.f32.mrb[4].mxu0 }
 0x45a   : > { %v2311_v53 = vpop.f32.mrb[5].mxu0 }
 0x470   : > { %2623 = vset.pattern.permute.xlu1 %v3250_v54 }
 0x47c   : > { %2624 = vset.pattern.permute.xlu0 %v3251_v55 }
 0x4d2   : > { %v3851_v56 = vpop.trf.xlu1 }
 0x4d3   : > { %1414 = vperm.xlu0 %2624, %v3851_v56   ;;  %1376 = vperm.xlu1 %2623, %v3851_v56   ;;  %v1167_v59 = vpop.trf.xlu0 }
 0x4d6   : > { %v1201_v63 = vpop.trf.xlu1 }
 0x4d7   : > { %2629 = vset.pattern.permute.xlu0 %v3252_v57  ;;  %2625 = vset.pattern.permute.xlu1 %v3253_v58  ;;  %v1168_v1 = vpop.trf.xlu0 }
 0x4d8   : > { %1599 = vperm.xlu0 %2629, %v3851_v56   ;;  %1451 = vperm.xlu1 %2625, %v3851_v56  }
 0x4dc   : > { %2632 = vset.pattern.permute.xlu0 %v3253_v58  ;;  %2626 = vset.pattern.permute.xlu1 %v3254_v60 }
 0x4dd   : > { %1435 = vperm.xlu0 %2632, %v1167_v59   ;;  %1488 = vperm.xlu1 %2626, %v3851_v56  }
 0x4e1   : > { %2637 = vset.pattern.permute.xlu0 %v3255_v61  ;;  %2627 = vset.pattern.permute.xlu1 %v3256_v62 }
 0x4e2   : > { %1620 = vperm.xlu0 %2637, %v1167_v59   ;;  %1525 = vperm.xlu1 %2627, %v3851_v56  }
 0x4e6   : > { %2628 = vset.pattern.permute.xlu1 %v3257_v0  ;;  %2640 = vset.pattern.permute.xlu0 %v3253_v58 }
 0x4e7   : > { %1562 = vperm.xlu1 %2628, %v3851_v56   ;;  %1455 = vperm.xlu0 %2640, %v1201_v63  }
 0x4eb   : > { %2630 = vset.pattern.permute.xlu1 %v3250_v54  ;;  %2642 = vset.pattern.permute.xlu0 %v3256_v62 }
 0x4ec   : > { %1358 = vperm.xlu1 %2630, %v1167_v59   ;;  %1529 = vperm.xlu0 %2642, %v1201_v63  }
 0x4f0   : > { %2631 = vset.pattern.permute.xlu1 %v3251_v55  ;;  %2653 = vset.pattern.permute.xlu0 %v3255_v61 }
 0x4f1   : > { %1398 = vperm.xlu1 %2631, %v1167_v59   ;;  %1640 = vperm.xlu0 %2653, %v1201_v63  }
 0x4f5   : > { %2633 = vset.pattern.permute.xlu1 %v3254_v60 }
 0x4f6   : > { %1472 = vperm.xlu1 %2633, %v1167_v59  }
 0x4fa   : > { %2634 = vset.pattern.permute.xlu1 %v3256_v62 }
 0x4fb   : > { %1509 = vperm.xlu1 %2634, %v1167_v59  }
 0x4ff   : > { %2635 = vset.pattern.permute.xlu1 %v3257_v0 }
 0x500   : > { %1546 = vperm.xlu1 %2635, %v1167_v59  }
 0x504   : > { %2636 = vset.pattern.permute.xlu1 %v3252_v57 }
 0x505   : > { %1583 = vperm.xlu1 %2636, %v1167_v59  }
 0x509   : > { %2638 = vset.pattern.permute.xlu1 %v3250_v54 }
 0x50a   : > { %1381 = vperm.xlu1 %2638, %v1201_v63  }
 0x50e   : > { %2639 = vset.pattern.permute.xlu1 %v3251_v55 }
 0x50f   : > { %1418 = vperm.xlu1 %2639, %v1201_v63  }
 0x513   : > { %2641 = vset.pattern.permute.xlu1 %v3254_v60 }
 0x514   : > { %1492 = vperm.xlu1 %2641, %v1201_v63  }
 0x518   : > { %2643 = vset.pattern.permute.xlu1 %v3257_v0 }
 0x519   : > { %1566 = vperm.xlu1 %2643, %v1201_v63  }
 0x51d   : > { %2644 = vset.pattern.permute.xlu1 %v3252_v57 }
 0x51e   : > { %1603 = vperm.xlu1 %2644, %v1201_v63  }
 0x522   : > { %2645 = vset.pattern.permute.xlu1 %v3250_v54 }
 0x523   : > { %1363 = vperm.xlu1 %2645, %v1168_v1  }
 0x525   : > { %v1121_v3 = vpop.f32.mrb[2].mxu1 }
 0x526   : > { %v1122_v4 = vadd.f32 %v2178_v2, %v1121_v3  ;;  %v2300_v5 = vpop.f32.mrb[3].mxu1 }
 0x527   : > { %2646 = vset.pattern.permute.xlu1 %v3251_v55 }
 0x528   : > { %v1126_v6 = vmin.f32 %v1122_v4, 20.0  ;;  %1402 = vperm.xlu1 %2646, %v1168_v1   ;;  %vm1125_vm5 = vcmp.gt.f32.partialorder %v1122_v4, 20.0 }
 0x52a   : > { %v1127_v7 = vmul.f32 1.442695, %v1126_v6  ;;  %v1142_v6 = vld [vmem:[#allocation2] sm:$0xff] }
 0x52c   : > { %2661 = vpow2.f32 %v1127_v7  ;;  %2647 = vset.pattern.permute.xlu1 %v3253_v58  ;;  %v3903_v58 = vld [vmem:[#allocation5] sm:$0xff] }
 0x52d   : > { %1439 = vperm.xlu1 %2647, %v1168_v1  }
 0x531   : > { %2648 = vset.pattern.permute.xlu1 %v3254_v60  ;;  %v1768_v60 = vld [vmem:[#allocation28 + $0x20] sm:$0xff] }
 0x532   : > { %1476 = vperm.xlu1 %2648, %v1168_v1  }
 0x536   : > { %v2662_v8 = vpop.eup %2661  ;;  %2649 = vset.pattern.permute.xlu1 %v3256_v62 }
 0x537   : > { %v1129_v10 = vadd.f32 1.0, %v2662_v8  ;;  %1513 = vperm.xlu1 %2649, %v1168_v1   ;;  %v1132_v11 = vmul.f32 -0.5, %v2662_v8  ;;  %v1135_v14 = vand.u32 2147483647, %v2662_v8 }
 0x539   : > { %2663 = vlog2.f32 %v1129_v10  ;;  %v1133_v13 = vadd.f32 1.0, %v1132_v11  ;;  %vm1136_vm4 = vcmp.lt.f32.partialorder %v1135_v14, 0.0004427343  ;;  %v1770_v10 = vld [vmem:[#allocation28 + $0x30] sm:$0xff]  ;;  %v1771_v11 = vld [vmem:[#allocation28 + $0x38] sm:$0xff] }
 0x53b   : > { %2650 = vset.pattern.permute.xlu1 %v3257_v0  ;;  %v1134_v17 = vmul.f32 %v2662_v8, %v1133_v13 }
 0x53c   : > { %1550 = vperm.xlu1 %2650, %v1168_v1  }
 0x540   : > { %2651 = vset.pattern.permute.xlu1 %v3252_v57  ;;  %v2399_v57 = vpack.c.bf16 %v1767_v51, %v1766_v50 }
 0x541   : > { %1587 = vperm.xlu1 %2651, %v1168_v1  }
 0x543   : > { %v2664_v15 = vpop.eup %2663 }
 0x544   : > { %v1131_v16 = vmul.f32 0.6931472, %v2664_v15 }
 0x545   : > { %2652 = vset.pattern.permute.xlu1 %v3255_v61  ;;  %v1769_v61 = vld [vmem:[#allocation28 + $0x28] sm:$0xff] }
 0x546   : > { %v1137_v22 = vsel %vm1136_vm4, %v1134_v17, %v1131_v16  ;;  %1624 = vperm.xlu1 %2652, %v1168_v1   ;;  %v1407_v17 = vsub.s32 1, %v3868_v24 }
 0x547   : > { %v1138_v23 = vsel %vm1125_vm5, %v1122_v4, %v1137_v22  ;;  %v2402_v4 = vpack.c.bf16 %v1769_v61, %v1768_v60  ;;  %v2405_v22 = vpack.c.bf16 %v1771_v11, %v1770_v10  ;;  %v1518_v60 = vsub.s32 4, %v3868_v24 }
 0x548   : > { %1139 = vst.msk [vmem:[#allocation4] sm:$0xff] %vm811_vm3, %v1138_v23 }
 0x54a   : > { %1636 = vperm.xlu1 %2652, %v3851_v56   ;;  %v2396_v56 = vpack.c.bf16 %v1765_v46, %v1764_v45 }
 0x54c   : > { %2397 = vmatpush3.bf16.msra.mxu0 %v2396_v56 }
 0x54d   : > { %2398 = vmatprep.subr.bf16.mxu0 %v3247_v9 }
 0x54f   : > { %v1144_v27 = vld [vmem:[#allocation4] sm:$0xff] }
 0x550   : > { %v1224_v28 = vrot.slane %v1144_v27, %v1223_v26  ;;  %v1217_v39 = vcombine.high %v1144_v27, %v1144_v27  ;;  %v3910_v63 = vmul.f32 %v3903_v58, %v1144_v27  ;;  %2400 = vmatpush3.bf16.msra.mxu0 %v2399_v57 }
 0x551   : > { %2401 = vmatprep.subr.bf16.mxu0 %v3247_v9 }
 0x552   : > { %v3872_v29 = vpop.permute.xlu1 %1376  ;;  %v1240_v30 = vrot.slane %v1224_v28, %v1223_v26  ;;  %v1232_v32 = vcombine.high %v1224_v28, %v1224_v28  ;;  %v1231_v20 = vrot.slane %v1217_v39, %v1223_v26  ;;  %v1415_v62 = vpop.permute.xlu0 %1414  ;;  %v3921_v13 = vrot.slane %v3910_v63, %v3875_v31 }
 0x554   : > { %v3880_v34 = vrot.slane %v1240_v30, %v3875_v31  ;;  %v1254_v35 = vrot.slane %v1232_v32, %v1223_v26  ;;  %v1262_v40 = vcombine.high %v1240_v30, %v1240_v30  ;;  %v1247_v49 = vrot.slane %v1231_v20, %v1223_v26  ;;  %2403 = vmatpush3.bf16.msra.mxu0 %v2402_v4 }
 0x555   : > { %v1233_v55 = vcombine.high %v1231_v20, %v1231_v20  ;;  %2404 = vmatprep.subr.bf16.mxu0 %v3247_v9  ;;  %v1444_v32 = vsub.s32 2, %v3868_v24  ;;  %v1555_v4 = vsub.s32 5, %v3868_v24 }
 0x556   : > { %v1306_v37 = vmul.f32 %v3880_v34, %v3877_v33  ;;  %v3887_v38 = vrot.slane %v1254_v35, %v3875_v31  ;;  %v3894_v44 = vrot.slane %v1262_v40, %v3875_v31  ;;  %v1264_v12 = vcombine.high %v1254_v35, %v1254_v35 }
 0x557   : > { %v3882_v36 = vpop.permute.xlu1 %1451  ;;  %v3906_v59 = vrot.slane %v1247_v49, %v3875_v31  ;;  %v1261_v3 = vrot.slane %v1233_v55, %v1223_v26  ;;  %v1263_v8 = vcombine.high %v1247_v49, %v1247_v49  ;;  %v3927_v18 = vpop.permute.xlu0 %1599  ;;  %v3938_v35 = vrot.slane %v3910_v63, %v1407_v17 }
 0x558   : > { %v1322_v41 = vmul.f32 1.442695, %v1306_v37  ;;  %v1308_v43 = vmul.f32 %v3887_v38, %v3877_v33  ;;  %v1310_v53 = vmul.f32 %v3894_v44, %v3877_v33  ;;  %v3901_v54 = vrot.slane %v1264_v12, %v3875_v31  ;;  %2406 = vmatpush3.bf16.msra.mxu0 %v2405_v22 }
 0x559   : > { %v1314_v7 = vmul.f32 %v3906_v59, %v3877_v33  ;;  %v3924_v15 = vrot.slane %v1261_v3, %v3875_v31  ;;  %v3931_v25 = vrot.slane %v1263_v8, %v3875_v31  ;;  %v1265_v28 = vcombine.high %v1261_v3, %v1261_v3 }
 0x55a   : > { %2665 = vpow2.f32 %v1322_v41  ;;  %v1326_v48 = vmul.f32 1.442695, %v1308_v43  ;;  %v1330_v1 = vmul.f32 1.442695, %v1310_v53  ;;  %v1312_v2 = vmul.f32 %v3901_v54, %v3877_v33 }
 0x55b   : > { %v1338_v23 = vmul.f32 1.442695, %v1314_v7  ;;  %v1316_v27 = vmul.f32 %v3924_v15, %v3877_v33  ;;  %v1318_v20 = vmul.f32 %v3931_v25, %v3877_v33  ;;  %v3947_v12 = vrot.slane %v1265_v28, %v3875_v31 }
 0x55c   : > { %v3889_v42 = vpop.permute.xlu1 %1488  ;;  %2667 = vpow2.f32 %v1326_v48  ;;  %v1334_v14 = vmul.f32 1.442695, %v1312_v2  ;;  %v1436_v41 = vpop.permute.xlu0 %1435  ;;  %v3950_v45 = vrot.slane %v3910_v63, %v1444_v32  ;;  %v3975_v11 = vrot.slane %v3910_v63, %v1555_v4 }
 0x55d   : > { %2669 = vpow2.f32 %v1330_v1  ;;  %v1342_v43 = vmul.f32 1.442695, %v1316_v27  ;;  %v1346_v55 = vmul.f32 1.442695, %v1318_v20  ;;  %v1320_v56 = vmul.f32 %v3947_v12, %v3877_v33 }
 0x55e   : > { %2671 = vpow2.f32 %v1334_v14  ;;  %v1446_v49 = vmul.f32 %v3950_v45, %v1436_v41  ;;  %v3968_v33 = vrot.slane %v3910_v63, %v1518_v60  ;;  %v1592_v17 = vsub.s32 6, %v3868_v24 }
 0x55f   : > { %2673 = vpow2.f32 %v1338_v23 }
 0x560   : > { %2675 = vpow2.f32 %v1342_v43  ;;  %v3984_v27 = vrot.slane %v3910_v63, %v1592_v17 }
 0x561   : > { %v3896_v47 = vpop.permute.xlu1 %1525  ;;  %2677 = vpow2.f32 %v1346_v55 }
 0x564   : > { %v2666_v5 = vpop.eup %2665 }
 0x565   : > { %v1354_v19 = vmul.f32 %v2666_v5, %v1142_v6  ;;  %v1350_v5 = vmul.f32 1.442695, %v1320_v56 }
 0x566   : > { %v3912_v0 = vpop.permute.xlu1 %1562  ;;  %v2668_v30 = vpop.eup %2667 }
 0x567   : > { %v2670_v48 = vpop.eup %2669  ;;  %2679 = vpow2.f32 %v1350_v5 }
 0x568   : > { %v2672_v61 = vpop.eup %2671 }
 0x569   : > { %v2674_v7 = vpop.eup %2673 }
 0x56b   : > { %v1359_v16 = vpop.permute.xlu1 %1358 }
 0x56c   : > { %v1370_v21 = vmul.f32 %v3921_v13, %v1359_v16 }
 0x56e   : > { %v1372_v26 = vadd.f32 %v1370_v21, %v1354_v19  ;;  %v2676_v19 = vpop.eup %2675 }
 0x56f   : > { %v2678_v28 = vpop.eup %2677 }
 0x570   : > { %v3941_v37 = vmul.f32 %v3872_v29, %v1372_v26  ;;  %v1395_v39 = vmul.f32 %v2668_v30, %v1372_v26  ;;  %v1399_v40 = vpop.permute.xlu1 %1398  ;;  %v1481_v29 = vsub.s32 3, %v3868_v24 }
 0x571   : > { %v1409_v9 = vmul.f32 %v3938_v35, %v1399_v40  ;;  %v2680_v43 = vpop.eup %2679 }
 0x572   : > { %v3959_v57 = vrot.slane %v3910_v63, %v1481_v29 }
 0x573   : > { %v1411_v46 = vadd.f32 %v1409_v9, %v1395_v39  ;;  %v1621_v9 = vpop.permute.xlu0 %1620 }
 0x575   : > { %v3954_v50 = vmul.f32 %v1415_v62, %v1411_v46  ;;  %v1432_v51 = vmul.f32 %v2670_v48, %v1411_v46  ;;  %v1473_v53 = vpop.permute.xlu1 %1472  ;;  %v1141_v48 = vld [vmem:[#allocation25 + $0x8] sm:$0xff] }
 0x576   : > { %v1483_v62 = vmul.f32 %v3959_v57, %v1473_v53  ;;  %v1309_v55 = vmul.f32 %v3887_v38, %v1141_v48 }
 0x577   : > { %v1448_v31 = vadd.f32 %v1446_v49, %v1432_v51  ;;  %v1307_v51 = vmul.f32 %v3880_v34, %v1141_v48 }
 0x579   : > { %v3963_v1 = vmul.f32 %v3882_v36, %v1448_v31  ;;  %v1469_v2 = vmul.f32 %v2672_v61, %v1448_v31  ;;  %v1311_v31 = vmul.f32 %v3894_v44, %v1141_v48 }
 0x57a   : > { %v1510_v3 = vpop.permute.xlu1 %1509 }
 0x57b   : > { %v1485_v6 = vadd.f32 %v1483_v62, %v1469_v2  ;;  %v1520_v36 = vmul.f32 %v3968_v33, %v1510_v3  ;;  %v1332_v61 = vmul.f32 1.442695, %v1311_v31  ;;  %v1313_v2 = vmul.f32 %v3901_v54, %v1141_v48  ;;  %v1143_v3 = vld [vmem:[#allocation2 + $0x8] sm:$0xff] }
 0x57c   : > { %v1317_v54 = vmul.f32 %v3924_v15, %v1141_v48  ;;  %v1423_v15 = vsel %vm811_vm3, %v3954_v50, 0.0 }
 0x57d   : > { %v3971_v8 = vmul.f32 %v3889_v42, %v1485_v6  ;;  %v1506_v10 = vmul.f32 %v2674_v7, %v1485_v6  ;;  %v1629_v42 = vsub.s32 7, %v3868_v24  ;;  %v1336_v4 = vmul.f32 1.442695, %v1313_v2 }
 0x57e   : > { %v1315_v6 = vmul.f32 %v3906_v59, %v1141_v48  ;;  %v1319_v59 = vmul.f32 %v3931_v25, %v1141_v48 }
 0x57f   : > { %v1522_v14 = vadd.f32 %v1520_v36, %v1506_v10  ;;  %v1547_v16 = vpop.permute.xlu1 %1546  ;;  %v3991_v41 = vrot.slane %v3910_v63, %v1629_v42  ;;  %v1324_v63 = vmul.f32 1.442695, %v1307_v51 }
 0x580   : > { %v1557_v21 = vmul.f32 %v3975_v11, %v1547_v16  ;;  %v1340_v16 = vmul.f32 1.442695, %v1315_v6  ;;  %v1348_v25 = vmul.f32 1.442695, %v1319_v59 }
 0x581   : > { %v3980_v22 = vmul.f32 %v3896_v47, %v1522_v14  ;;  %v1543_v23 = vmul.f32 %v2676_v19, %v1522_v14  ;;  %v1631_v24 = vmul.f32 %v3991_v41, %v1621_v9  ;;  %2681 = vpow2.f32 %v1324_v63 }
 0x582   : > { %v1386_v19 = vsel %vm811_vm3, %v3941_v37, 0.0 }
 0x583   : > { %v1559_v26 = vadd.f32 %v1557_v21, %v1543_v23 }
 0x584   : > { %v1584_v30 = vpop.permute.xlu1 %1583 }
 0x585   : > { %v3987_v32 = vmul.f32 %v3912_v0, %v1559_v26  ;;  %v1580_v39 = vmul.f32 %v2678_v28, %v1559_v26  ;;  %v1594_v40 = vmul.f32 %v3984_v27, %v1584_v30 }
 0x587   : > { %v1596_v47 = vadd.f32 %v1594_v40, %v1580_v39  ;;  %v1344_v40 = vmul.f32 1.442695, %v1317_v54 }
 0x589   : > { %v3995_v20 = vmul.f32 %v3927_v18, %v1596_v47  ;;  %v1382_v46 = vpop.permute.xlu1 %1381  ;;  %v1617_v29 = vmul.f32 %v2680_v43, %v1596_v47  ;;  %v1328_v18 = vmul.f32 1.442695, %v1309_v55 }
 0x58b   : > { %v3997_v49 = vadd.f32 %v1631_v24, %v1617_v29  ;;  %2683 = vpow2.f32 %v1328_v18  ;;  %v2682_v62 = vpop.eup %2681  ;;  %v1321_v18 = vmul.f32 %v3947_v12, %v1141_v48 }
 0x58c   : > { %2685 = vpow2.f32 %v1332_v61  ;;  %v1355_v5 = vmul.f32 %v2682_v62, %v1143_v3  ;;  %v1460_v61 = vsel %vm811_vm3, %v3963_v1, 0.0  ;;  %v1497_v1 = vsel %vm811_vm3, %v3971_v8, 0.0 }
 0x58d   : > { %1669 = vst.msk [vmem:[#allocation2] sm:$0xff] %vm811_vm3, %v3997_v49  ;;  %2687 = vpow2.f32 %v1336_v4 }
 0x58e   : > { %v1419_v0 = vpop.permute.xlu1 %1418  ;;  %2689 = vpow2.f32 %v1340_v16 }
 0x58f   : > { %2691 = vpow2.f32 %v1344_v40 }
 0x590   : > { %2693 = vpow2.f32 %v1348_v25 }
 0x593   : > { %v4002_v53 = vpop.permute.xlu1 %1492 }
 0x595   : > { %v2684_v10 = vpop.eup %2683 }
 0x596   : > { %v2686_v42 = vpop.eup %2685 }
 0x597   : > { %v2688_v24 = vpop.eup %2687 }
 0x598   : > { %v4005_v56 = vpop.permute.xlu1 %1566 }
 0x59d   : > { %v4008_v60 = vpop.permute.xlu1 %1603 }
 0x5a2   : > { %v1364_v34 = vpop.permute.xlu1 %1363 }
 0x5a3   : > { %v1371_v38 = vmul.f32 %v3921_v13, %v1364_v34  ;;  %v2690_v34 = vpop.eup %2689 }
 0x5a4   : > { %v2692_v54 = vpop.eup %2691 }
 0x5a5   : > { %v1373_v7 = vadd.f32 %v1371_v38, %v1355_v5  ;;  %v1352_v5 = vmul.f32 1.442695, %v1321_v18 }
 0x5a7   : > { %v1385_v44 = vmul.f32 %v1382_v46, %v1373_v7  ;;  %v1396_v36 = vmul.f32 %v2684_v10, %v1373_v7  ;;  %v1403_v14 = vpop.permute.xlu1 %1402  ;;  %v1456_v46 = vpop.permute.xlu0 %1455  ;;  %2695 = vpow2.f32 %v1352_v5  ;;  %v1608_v5 = vsel %vm811_vm3, %v3995_v20, 0.0 }
 0x5a8   : > { %v1410_v17 = vmul.f32 %v3938_v35, %v1403_v14 }
 0x5a9   : > { %v1387_v21 = vsel %vm811_vm3, %v1385_v44, 0.0 }
 0x5aa   : > { %v1388_v23 = vadd.f32 %v1387_v21, %v1386_v19  ;;  %v1412_v13 = vadd.f32 %v1410_v17, %v1396_v36 }
 0x5ab   : > { %v1530_v19 = vpop.permute.xlu0 %1529 }
 0x5ac   : > { %v1389_v26 = vrot.slane %v1388_v23, 4  ;;  %v1422_v28 = vmul.f32 %v1419_v0, %v1412_v13  ;;  %v1433_v30 = vmul.f32 %v2686_v42, %v1412_v13  ;;  %v1440_v39 = vpop.permute.xlu1 %1439 }
 0x5ad   : > { %v1447_v35 = vmul.f32 %v3950_v45, %v1440_v39 }
 0x5ae   : > { %v1390_v9 = vadd.f32 %v1389_v26, %v1388_v23  ;;  %v1424_v37 = vsel %vm811_vm3, %v1422_v28, 0.0  ;;  %v1534_v28 = vsel %vm811_vm3, %v3980_v22, 0.0 }
 0x5af   : > { %v1425_v47 = vadd.f32 %v1424_v37, %v1423_v15  ;;  %v1449_v43 = vadd.f32 %v1447_v35, %v1433_v30  ;;  %v2694_v37 = vpop.eup %2693 }
 0x5b0   : > { %v1391_v29 = vrot.slane %v1390_v9, 2 }
 0x5b1   : > { %v1426_v51 = vrot.slane %v1425_v47, 4  ;;  %v1459_v0 = vmul.f32 %v1456_v46, %v1449_v43  ;;  %v1470_v63 = vmul.f32 %v2688_v24, %v1449_v43  ;;  %v1477_v55 = vpop.permute.xlu1 %1476 }
 0x5b2   : > { %v1392_v45 = vadd.f32 %v1391_v29, %v1390_v9  ;;  %v1484_v31 = vmul.f32 %v3959_v57, %v1477_v55 }
 0x5b3   : > { %v1427_v50 = vadd.f32 %v1426_v51, %v1425_v47  ;;  %v1461_v2 = vsel %vm811_vm3, %v1459_v0, 0.0  ;;  %v1571_v0 = vsel %vm811_vm3, %v3987_v32, 0.0 }
 0x5b4   : > { %v1462_v62 = vadd.f32 %v1461_v2, %v1460_v61  ;;  %v1486_v3 = vadd.f32 %v1484_v31, %v1470_v63  ;;  %v1393_v38 = vrot.slane %v1392_v45, 1  ;;  %v2696_v61 = vpop.eup %2695 }
 0x5b5   : > { %v1428_v4 = vrot.slane %v1427_v50, 2 }
 0x5b6   : > { %v1463_v6 = vrot.slane %v1462_v62, 4  ;;  %v1496_v7 = vmul.f32 %v4002_v53, %v1486_v3  ;;  %v1507_v12 = vmul.f32 %v2690_v34, %v1486_v3  ;;  %v1514_v48 = vpop.permute.xlu1 %1513  ;;  %v1394_v21 = vadd.f32 %v1393_v38, %v1392_v45 }
 0x5b7   : > { %v1429_v10 = vadd.f32 %v1428_v4, %v1427_v50  ;;  %v1521_v57 = vmul.f32 %v3968_v33, %v1514_v48 }
 0x5b8   : > { %v1464_v44 = vadd.f32 %v1463_v6, %v1462_v62  ;;  %v1498_v36 = vsel %vm811_vm3, %v1496_v7, 0.0 }
 0x5b9   : > { %v1430_v14 = vrot.slane %v1429_v10, 1  ;;  %v1499_v16 = vadd.f32 %v1498_v36, %v1497_v1  ;;  %v1523_v17 = vadd.f32 %v1521_v57, %v1507_v12  ;;  %v1641_v57 = vpop.permute.xlu0 %1640 }
 0x5ba   : > { %v1465_v23 = vrot.slane %v1464_v44, 2 }
 0x5bb   : > { %v1431_v53 = vadd.f32 %v1430_v14, %v1429_v10  ;;  %v1500_v13 = vrot.slane %v1499_v16, 4  ;;  %v1533_v42 = vmul.f32 %v1530_v19, %v1523_v17  ;;  %v1544_v59 = vmul.f32 %v2692_v54, %v1523_v17  ;;  %v1551_v33 = vpop.permute.xlu1 %1550 }
 0x5bc   : > { %v1466_v26 = vadd.f32 %v1465_v23, %v1464_v44  ;;  %v1558_v8 = vmul.f32 %v3975_v11, %v1551_v33  ;;  %v2181_v11 = vmul.f32 -1.442695, %v3849_v52 }
 0x5bd   : > { %v1655_v30 = vsel %vm1654_vm6, %v1394_v21, %v1431_v53  ;;  %v1501_v39 = vadd.f32 %v1500_v13, %v1499_v16  ;;  %v1535_v40 = vsel %vm811_vm3, %v1533_v42, 0.0 }
 0x5be   : > { %v1467_v35 = vrot.slane %v1466_v26, 1  ;;  %v1536_v15 = vadd.f32 %v1535_v40, %v1534_v28  ;;  %v1560_v9 = vadd.f32 %v1558_v8, %v1544_v59  ;;  %2697 = vpow2.f32 %v2181_v11 }
 0x5bf   : > { %v1502_v47 = vrot.slane %v1501_v39, 2 }
 0x5c0   : > { %v1468_v43 = vadd.f32 %v1467_v35, %v1466_v26  ;;  %v1537_v24 = vrot.slane %v1536_v15, 4  ;;  %v1570_v46 = vmul.f32 %v4005_v56, %v1560_v9  ;;  %v1581_v29 = vmul.f32 %v2694_v37, %v1560_v9  ;;  %v1588_v25 = vpop.permute.xlu1 %1587 }
 0x5c1   : > { %v1503_v51 = vadd.f32 %v1502_v47, %v1501_v39  ;;  %v1595_v22 = vmul.f32 %v3984_v27, %v1588_v25  ;;  %v2180_v47 = vld [vmem:[#allocation26] ss:$0 sm:$0xff] }
 0x5c2   : > { %v1657_v63 = vsel %vm1656_vm7, %v1655_v30, %v1468_v43  ;;  %v1538_v55 = vadd.f32 %v1537_v24, %v1536_v15  ;;  %v1572_v18 = vsel %vm811_vm3, %v1570_v46, 0.0  ;;  %v1754_v24 = vmul.f32 %v2180_v47, %v3903_v58 }
 0x5c3   : > { %v1504_v45 = vrot.slane %v1503_v51, 1  ;;  %v1573_v31 = vadd.f32 %v1572_v18, %v1571_v0  ;;  %v1597_v50 = vadd.f32 %v1595_v22, %v1581_v29 }
 0x5c4   : > { %v1539_v56 = vrot.slane %v1538_v55, 2 }
 0x5c5   : > { %v1505_v2 = vadd.f32 %v1504_v45, %v1503_v51  ;;  %v1574_v62 = vrot.slane %v1573_v31, 4  ;;  %v1607_v3 = vmul.f32 %v4008_v60, %v1597_v50  ;;  %v1618_v34 = vmul.f32 %v2696_v61, %v1597_v50  ;;  %v1625_v4 = vpop.permute.xlu1 %1624 }
 0x5c6   : > { %v1540_v27 = vadd.f32 %v1539_v56, %v1538_v55  ;;  %v1632_v32 = vmul.f32 %v3991_v41, %v1625_v4 }
 0x5c7   : > { %v1659_v38 = vsel %vm1658_vm8, %v1657_v63, %v1505_v2  ;;  %v1575_v6 = vadd.f32 %v1574_v62, %v1573_v31  ;;  %v1609_v7 = vsel %vm811_vm3, %v1607_v3, 0.0 }
 0x5c8   : > { %v1541_v12 = vrot.slane %v1540_v27, 1  ;;  %v1610_v48 = vadd.f32 %v1609_v7, %v1608_v5  ;;  %v1634_v10 = vadd.f32 %v1632_v32, %v1618_v34  ;;  %v2698_v59 = vpop.eup %2697 }
 0x5c9   : > { %v1576_v1 = vrot.slane %v1575_v6, 2  ;;  %v1637_v60 = vpop.permute.xlu1 %1636  ;;  %v1759_v30 = vadd.f32 1.0, %v2698_v59 }
 0x5ca   : > { %v1542_v44 = vadd.f32 %v1541_v12, %v1540_v27  ;;  %v1611_v36 = vrot.slane %v1610_v48, 4  ;;  %v1644_v14 = vmul.f32 %v1641_v57, %v1634_v10  ;;  %1670 = vst.msk [vmem:[#allocation2 + $0x8] sm:$0xff] %vm811_vm3, %v1634_v10  ;;  %v1643_v41 = vmul.f32 %v1637_v60, %v3997_v49 }
 0x5cb   : > { %v1577_v16 = vadd.f32 %v1576_v1, %v1575_v6  ;;  %2699 = vrcp.f32 %v1759_v30 }
 0x5cc   : > { %v1661_v20 = vsel %vm1660_vm9, %v1659_v38, %v1542_v44  ;;  %v1612_v17 = vadd.f32 %v1611_v36, %v1610_v48  ;;  %v1646_v54 = vsel %vm811_vm3, %v1644_v14, 0.0  ;;  %v1645_v19 = vsel %vm811_vm3, %v1643_v41, 0.0 }
 0x5cd   : > { %v1578_v21 = vrot.slane %v1577_v16, 1  ;;  %v1647_v23 = vadd.f32 %v1646_v54, %v1645_v19 }
 0x5ce   : > { %v1613_v53 = vrot.slane %v1612_v17, 2 }
 0x5cf   : > { %v1579_v13 = vadd.f32 %v1578_v21, %v1577_v16  ;;  %v1648_v42 = vrot.slane %v1647_v23, 4 }
 0x5d0   : > { %v1614_v33 = vadd.f32 %v1613_v53, %v1612_v17 }
 0x5d1   : > { %v1663_v26 = vsel %vm1662_vm10, %v1661_v20, %v1579_v13  ;;  %v1649_v8 = vadd.f32 %v1648_v42, %v1647_v23 }
 0x5d2   : > { %v1615_v28 = vrot.slane %v1614_v33, 1 }
 0x5d3   : > { %v1650_v49 = vrot.slane %v1649_v8, 2 }
 0x5d4   : > { %v1616_v39 = vadd.f32 %v1615_v28, %v1614_v33 }
 0x5d5   : > { %v1651_v40 = vadd.f32 %v1650_v49, %v1649_v8  ;;  %v2700_v43 = vpop.eup %2699 }
 0x5d6   : > { %v1665_v35 = vsel %vm1664_vm11, %v1663_v26, %v1616_v39  ;;  %v1762_v29 = vmul.f32 %v2700_v43, %v3849_v52 }
 0x5d7   : > { %v1652_v15 = vrot.slane %v1651_v40, 1 }
 0x5d9   : > { %v1653_v9 = vadd.f32 %v1652_v15, %v1651_v40 }
 0x5db   : > { %v1667_v37 = vsel %vm1666_vm12, %v1665_v35, %v1653_v9 }
 0x5dc   : > { %1668 = vst.msk [vmem:[#allocation7] sm:$0xff] %vm811_vm3, %v1667_v37 }
 0x5e3   : > { %v1745_v46 = vld [vmem:[#allocation7] sm:$0xff] }
 0x5e4   : > { %v1755_v25 = vadd.f32 %v1754_v24, %v1745_v46 }
 0x5e6   : > { %v1763_v11 = vmul.f32 %v1762_v29, %v1755_v25 }
 0x5e8   : > { %2329 = vmatmul.mubr.msk.f32.vlgmr.msra.gmra.mrb[6].mxu0 %vm811_vm3, %v1763_v11 }
 0x5e9   : > { %3082 = shalt.err (!%p3079_p3)
}
 0x5ea   : > { %s3083_s24 = scalar_lea.hbm %s4066_s16, 128  ;;  %s3087_s21 = scalar_lea.hbm %s4244_s5, 512 }
 0x5eb   : > { %p3084_p10 = scmp.ne.s32.totalorder %s4066_s16, %s3083_s24  ;;  %p3088_p2 = scmp.lt.u32.totalorder %s4066_s16, %s4244_s5 }
 0x5ec   : > { %p3089_p11 = scmp.lt.u32.totalorder %s3087_s21, %s3083_s24  ;;  %p3091_p12 = scmp.lt.u32.totalorder %s3083_s24, %s4066_s16 }
 0x5ed   : > { %p3085_p13 = pnand %p3084_p10, %p4245_p7 }
 0x5ee   : > { %p3090_p9 = por %p3089_p11, %p3088_p2 }
 0x5ef   : > { %p3086_p0 = pneg %p3085_p13 }
 0x5f0   : > { %p3092_p8 = por %p3091_p12, %p3090_p9 }
 0x5f2   : > { %p3093_p4 = pnand %p3092_p8, %p3086_p0 }
 0x5f4   : > { %3096 = shalt.err (!%p3093_p4)
}
 0x5f5   : > { %2456 = dma.vmem_to_hbm [thread:$0]  (%p4245_p7), %s1883_s14, 128, %s4066_s16, %s1852_s7  }
 0x5f6   : > { %s1867_s1 = sshll.u32 %s696_s26, 4  ;;  %s4246_s6 = sld [smem:[#allocation58_spill]]  ;;  %s4097_s1 = int_to_ptr.vmem [resolvable:$true] %s1867_s1 }
 0x5f7   : > { %s1847_s24 = scalar_lea.sflag [#allocation10], %s3762_s10  ;;  %s3097_s16 = scalar_lea.vmem %s4097_s1, 128 }
 0x5f8   : > { %p3098_p6 = scmp.ne.s32.totalorder %s4097_s1, %s3097_s16  ;;  %s3260_s13 = smov [#allocation29]  }
 0x5f9   : > { %s3101_s14 = sshll.u32 %s3260_s13, 4  ;;  %s3102_s14 = int_to_ptr.vmem [resolvable:$false] %s3101_s14 }
 0x5fa   : > { %p3099_p5 = pnand %p3098_p6, %p4245_p7  ;;  %p3104_p3 = scmp.lt.s32.totalorder %s4097_s1, %s3102_s14 }
 0x5fc   : > { %s4095_s21 = scalar_lea.hbm %s4246_s6, %s2186_s25  ;;  %p3100_p1 = pneg %p3099_p5 }
 0x5fd   : > { %s3103_s25 = scalar_lea.vmem %s3102_s14, 256 }
 0x5fe   : > { %p3105_p10 = scmp.lt.s32.totalorder %s3103_s25, %s3097_s16 }
 0x600   : > { %p3106_p13 = por %p3105_p10, %p3104_p3 }
 0x602   : > { %p3107_p0 = pnand %p3106_p13, %p3100_p1 }
 0x6bb   : > { %v1841_v52 = vpop.f32.mrb[6].mxu0 }
 0x6bc   : > { %1845 = vst.msk [vmem:[%s696_s26] sm:$0xff] %vm715_vm1, %v1841_v52  ;;  %v2330_v58 = vpop.f32.mrb[7].mxu0 }
 0x6bd   : > { %3110 = shalt.err (!%p3107_p0)
}
 0x6be   : > { %s3111_s10 = scalar_lea.hbm %s4095_s21, 128  ;;  %s3115_s7 = scalar_lea.hbm %s4246_s6, 512 }
 0x6bf   : > { %p3112_p2 = scmp.ne.s32.totalorder %s4095_s21, %s3111_s10  ;;  %p3116_p12 = scmp.lt.u32.totalorder %s4095_s21, %s4246_s6 }
 0x6c0   : > { %p3117_p8 = scmp.lt.u32.totalorder %s3115_s7, %s3111_s10  ;;  %p3119_p6 = scmp.lt.u32.totalorder %s3111_s10, %s4095_s21 }
 0x6c1   : > { %p3113_p11 = pnand %p3112_p2, %p4245_p7 }
 0x6c2   : > { %p3118_p4 = por %p3117_p8, %p3116_p12 }
 0x6c3   : > { %p3114_p9 = pneg %p3113_p11 }
 0x6c4   : > { %p3120_p5 = por %p3119_p6, %p3118_p4 }
 0x6c6   : > { %p3121_p1 = pnand %p3120_p5, %p3114_p9 }
 0x6c8   : > { %3124 = shalt.err (!%p3121_p1)
}
 0x6c9   : > { %2455 = dma.vmem_to_hbm [thread:$0]  (%p4245_p7), %s4097_s1, 128, %s4095_s21, %s1847_s24  }
 0x6ca PF: > { %p2530_p3 = scmp.ge.s32.totalorder %s3227_s20, 2  ;;  %s1894_s4 = sand.u32 1, %s3199_s29  }
 0x6cb   : > { %p4247_p10 = scmp.ne.s32.totalorder %s4221_s3, 0  ;;  %s1895_s9 = scalar_lea.sflag [#allocation10], %s1894_s4 }
 0x6cd   : > { %p2501_p13 = pnand %p2530_p3, %p4247_p10 }
 0x6cf   : > { %3190 = dma.done.wait (!%p2501_p13), %s1895_s9, 128  }
 0x6d0   : > { %3192 = vsyncadd (!%p2501_p13), %s1895_s9, 4294967168  ;;  %s1904_s16 = scalar_lea.sflag [#allocation31], %s1894_s4 }
 0x6d1   : > { %3194 = dma.done.wait (!%p2501_p13), %s1904_s16, 128  }
 0x6d2   : > { %3196 = vsyncadd (!%p2501_p13), %s1904_s16, 4294967168  ;;  %s42_s20 = sadd.s32 1, %s3227_s20   ;;  %s4248_s22 = smov %s4257_s17 }
 0x6d3   : > { %p39_p0 = scmp.ge.s32.totalorder %s42_s20, 6   ;;  %s4249_s29 = smov %s3203_s30 }
 0x6d4   : > { %s4250_s30 = smov %s3207_s15  ;;  %s4251_s15 = smov %s3688_s2 }
 0x6d5   : > { %s4252_s16 = smov %s3219_s18  ;;  %s4253_s17 = smov %s3223_s19 }
 0x6d6   : > { %s4254_s18 = smov %s4248_s22  ;;  %s4255_s19 = smov %s4261_s28 }
 0x6d7   :  { %41 = sbr.rel (!%p39_p0) target bundleno = 31 (0x1f), region = 196 }
 0x6de   :  { %1909 = vsyncpa [#allocation9], 1 }
 0x6df   :  { %1911 = vsyncpa [#allocation9 + $0x1], 1 }
 0x6e0   :  { %1912 = vsyncpa [#allocation12], 1 }
 0x6e1   :  { %1914 = vsyncpa [#allocation12 + $0x1], 1 }
 0x6e2   :  { %1915 = vsyncpa [#allocation15], 1 }
 0x6e3   :  { %1916 = vsyncpa [#allocation18], 1 }
 0x6e4   :  { %1917 = vsyncpa [#allocation21], 1 }
 0x6e5   :  { %1918 = vsyncpa [#allocation24], 1 }
 0x6e6   :  { %1919 = vsyncpa [#allocation27], 1 }
 0x6e7   :  { %1920 = vsyncpa [#allocation10], 1 }
 0x6e8   :  { %1922 = vsyncpa [#allocation10 + $0x1], 1 }
 0x6e9   :  { %1923 = vsyncpa [#allocation31], 1 }
 0x6ea   :  { %1925 = vsyncpa [#allocation31 + $0x1], 1 }

</bundles_post_ra>
